<compile_context>
chip_gen: v7x
topology: tpu7x:2x2x1
jax: 0.10.0
libtpu: 0.0.40
codegen_flags: <defaults>
</compile_context>

<pallas_src>
import functools

import jax
import jax.numpy as jnp
from jax import lax
from jax.experimental import pallas as pl
from jax.experimental.pallas import tpu as pltpu


def _round_up(x, m):
    return (x + m - 1) // m * m


# ----------------------------------------------------------------------------
# Fused kernel: all LSTM layers + final FC + log-softmax, one batch tile per
# grid step.  All hidden/gate widths are padded so each gate block is a
# multiple of 128 lanes; gate order inside the kernel is [i, f, o, g].
#
# Kernel refs (leading batch-tile dim squeezed away by BlockSpec):
#   x_ref      : (T*BT, E)      bf16   embedded input, time-major, flattened
#   h0/c0      : (L, BT, Hp)    f32
#   per layer  : w_ih (in,4Hp) bf16, w_hh (Hp,4Hp) bf16, b (1,4Hp) f32
#   fc_w/fc_b  : (Hp, Vp) bf16 / (1, Vp) f32  (padded vocab bias = -1e30)
# Outputs:
#   logits     : (BT, Vp) f32, h_n/c_n : (L, BT, Hp) f32
# Scratch:
#   seq_sc     : (T*BT, Hp)      bf16   inter-layer activation sequence
#   gates_sc   : (Tc*BT, 4Hp)    f32    hoisted projection for current chunk
# ----------------------------------------------------------------------------
def _fused_rnn_kernel(n_layers, seq_len, chunk, hp, *refs):
    n_in = 3 + 3 * n_layers + 2
    x_ref, h0_ref, c0_ref = refs[0:3]
    layer_refs = refs[3:3 + 3 * n_layers]
    fcw_ref = refs[3 + 3 * n_layers]
    fcb_ref = refs[3 + 3 * n_layers + 1]
    logits_ref, hn_ref, cn_ref = refs[n_in:n_in + 3]
    seq_sc, gates_sc = refs[n_in + 3:]

    H = hp                      # padded per-gate width (multiple of 128)
    T = seq_len
    BT = h0_ref.shape[1]        # batch tile rows (multiple of 16)
    n_chunks = (T + chunk - 1) // chunk

    h_last = None
    for l in range(n_layers):
        wih_ref = layer_refs[3 * l]
        whh_ref = layer_refs[3 * l + 1]
        b_ref = layer_refs[3 * l + 2]

        w_hh = whh_ref[...]                         # (Hp, 4Hp) bf16
        h = h0_ref[l]                               # (BT, Hp) f32
        c = c0_ref[l]
        write_seq = l < (n_layers - 1)

        for ci in range(n_chunks):
            t0 = ci * chunk
            clen = min(chunk, T - t0)
            r0 = t0 * BT
            nrows = clen * BT

            # --- Hoisted input projection for this time chunk: one big MXU
            # matmul with no serial dependence; bias folded in here. ---
            if l == 0:
                inp = x_ref[pl.ds(r0, nrows), :]          # (nrows, E)  bf16
            else:
                inp = seq_sc[pl.ds(r0, nrows), :]         # (nrows, Hp) bf16
            gates_sc[pl.ds(0, nrows), :] = (
                jnp.dot(inp, wih_ref[...], preferred_element_type=jnp.float32)
                + b_ref[...])

            # --- Recurrence: only h @ W_hh per step; gate order [i,f,o,g]
            # so one sigmoid (3H lanes) + one tanh per step. ---
            def step(t, carry, _w_hh=w_hh, _write=write_seq, _r0=r0):
                h, c = carry
                raw = t * BT
                row = pl.multiple_of(raw, 16)
                gates = (gates_sc[pl.ds(row, BT), :]
                         + jnp.dot(h.astype(_w_hh.dtype), _w_hh,
                                   preferred_element_type=jnp.float32))
                ifo = jax.nn.sigmoid(gates[:, :3 * H])
                g_g = jnp.tanh(gates[:, 3 * H:])
                i_g = ifo[:, 0 * H:1 * H]
                f_g = ifo[:, 1 * H:2 * H]
                o_g = ifo[:, 2 * H:3 * H]
                c_new = f_g * c + i_g * g_g
                h_new = o_g * jnp.tanh(c_new)
                if _write:
                    grow = pl.multiple_of(_r0 + raw, 16)
                    seq_sc[pl.ds(grow, BT), :] = h_new.astype(seq_sc.dtype)
                return (h_new, c_new)

            h, c = lax.fori_loop(0, clen, step, (h, c),
                                 unroll=max(1, min(clen, 8)))

        hn_ref[l] = h.astype(hn_ref.dtype)
        cn_ref[l] = c.astype(cn_ref.dtype)
        h_last = h

    # --- Final projection + log-softmax on last step's hidden state.
    # Padded vocab columns carry a -1e30 bias so exp(.) underflows to 0. ---
    z = (jnp.dot(h_last.astype(fcw_ref.dtype), fcw_ref[...],
                 preferred_element_type=jnp.float32) + fcb_ref[...])
    m = jnp.max(z, axis=1, keepdims=True)
    s = jnp.sum(jnp.exp(z - m), axis=1, keepdims=True)
    logits_ref[...] = (z - m - jnp.log(s)).astype(logits_ref.dtype)


# ----------------------------------------------------------------------------
# Parameter init (deterministic, PyTorch-equivalent shapes, gate order i,f,g,o)
# ----------------------------------------------------------------------------
def init_params(key, num_embeddings, embedding_dim, hidden_dim, n_layers):
    keys = jax.random.split(key, 2 + 4 * n_layers)
    params = {
        "embed": 0.1 * jax.random.normal(
            keys[0], (num_embeddings, embedding_dim), jnp.float32),
        "fc_w": 0.1 * jax.random.normal(
            keys[1], (hidden_dim, num_embeddings), jnp.float32),
        "fc_b": jnp.zeros((1, num_embeddings), jnp.float32),
        "w_ih": [], "w_hh": [], "b": [],
    }
    for l in range(n_layers):
        in_dim = embedding_dim if l == 0 else hidden_dim
        k = keys[2 + 4 * l: 2 + 4 * (l + 1)]
        # PyTorch stores w_ih as (4H, in); we keep the transposed (in, 4H),
        # column blocks in PyTorch gate order [i, f, g, o].
        params["w_ih"].append(
            0.1 * jax.random.normal(k[0], (in_dim, 4 * hidden_dim), jnp.float32))
        params["w_hh"].append(
            0.1 * jax.random.normal(k[1], (hidden_dim, 4 * hidden_dim), jnp.float32))
        b_ih = 0.1 * jax.random.normal(k[2], (4 * hidden_dim,), jnp.float32)
        b_hh = 0.1 * jax.random.normal(k[3], (4 * hidden_dim,), jnp.float32)
        params["b"].append((b_ih + b_hh).reshape(1, 4 * hidden_dim))
    return params


# ----------------------------------------------------------------------------
# Forward wrapper: padding / gate permutation / tiling + pallas_call.
# ----------------------------------------------------------------------------
def rnn_forward(params, x, h):
    """x: (B, T) int32 token ids, h = (h0, c0) each (n_layers, B, H)."""
    h0, c0 = h
    L, B, H = h0.shape
    T = x.shape[1]
    V = params["fc_w"].shape[1]
    E = params["embed"].shape[1]

    Hp = _round_up(H, 128)                 # per-gate width -> lane multiple
    Vp = _round_up(max(V, 128), 128)       # lane-dense logits
    n_bt = 2 if B > 16 else 1              # >=2 batch tiles only when useful
    BT = _round_up(-(-B // n_bt), 16)      # 16 sublanes: bf16 packed alignment
    Bp = BT * n_bt
    TCHUNK = min(T, 64)                    # time chunk for hoisted projection

    # --- embedding lookup (gather) kept in plain JAX glue ---
    embeds = jnp.take(params["embed"], x, axis=0)          # (B, T, E)
    seq = jnp.transpose(embeds, (1, 0, 2))                 # (T, B, E)
    seq = jnp.pad(seq, ((0, 0), (0, Bp - B), (0, 0)))
    x_tiles = (seq.reshape(T, n_bt, BT, E).transpose(1, 0, 2, 3)
                  .reshape(n_bt, T * BT, E).astype(jnp.bfloat16))

    def tile_state(s):
        s = jnp.pad(s, ((0, 0), (0, Bp - B), (0, Hp - H))).astype(jnp.float32)
        return s.reshape(L, n_bt, BT, Hp).transpose(1, 0, 2, 3)

    h0p, c0p = tile_state(h0), tile_state(c0)

    def prep_gates(w, pad_rows):
        # Permute columns [i, f, g, o] -> [i, f, o, g]; pad each gate H -> Hp.
        gi, gf, gg, go = (w[:, k * H:(k + 1) * H] for k in range(4))
        blocks = [jnp.pad(m, ((0, pad_rows), (0, Hp - H)))
                  for m in (gi, gf, go, gg)]
        return jnp.concatenate(blocks, axis=1)

    layer_args = []
    for l in range(L):
        pad_in = 0 if l == 0 else Hp - H
        layer_args += [
            prep_gates(params["w_ih"][l], pad_in).astype(jnp.bfloat16),
            prep_gates(params["w_hh"][l], Hp - H).astype(jnp.bfloat16),
            prep_gates(params["b"][l], 0).astype(jnp.float32),
        ]

    fc_w = jnp.pad(params["fc_w"],
                   ((0, Hp - H), (0, Vp - V))).astype(jnp.bfloat16)
    fc_b = jnp.pad(params["fc_b"], ((0, 0), (0, Vp - V)),
                   constant_values=-1e30).astype(jnp.float32)

    # --- BlockSpecs: batch-tiled arrays squeeze the tile dim; weights are a
    # single block (same index every grid step -> fetched once). ---
    in_specs = [
        pl.BlockSpec((None, T * BT, E), lambda bi: (bi, 0, 0)),
        pl.BlockSpec((None, L, BT, Hp), lambda bi: (bi, 0, 0, 0)),
        pl.BlockSpec((None, L, BT, Hp), lambda bi: (bi, 0, 0, 0)),
    ]
    for l in range(L):
        in_l = E if l == 0 else Hp
        in_specs += [
            pl.BlockSpec((in_l, 4 * Hp), lambda bi: (0, 0)),
            pl.BlockSpec((Hp, 4 * Hp), lambda bi: (0, 0)),
            pl.BlockSpec((1, 4 * Hp), lambda bi: (0, 0)),
        ]
    in_specs += [
        pl.BlockSpec((Hp, Vp), lambda bi: (0, 0)),
        pl.BlockSpec((1, Vp), lambda bi: (0, 0)),
    ]
    out_specs = (
        pl.BlockSpec((None, BT, Vp), lambda bi: (bi, 0, 0)),
        pl.BlockSpec((None, L, BT, Hp), lambda bi: (bi, 0, 0, 0)),
        pl.BlockSpec((None, L, BT, Hp), lambda bi: (bi, 0, 0, 0)),
    )
    out_shape = (jax.ShapeDtypeStruct((n_bt, BT, Vp), jnp.float32),
                 jax.ShapeDtypeStruct((n_bt, L, BT, Hp), jnp.float32),
                 jax.ShapeDtypeStruct((n_bt, L, BT, Hp), jnp.float32))

    # --- VMEM budget derived from the actual buffers (x2 pipeline buffers). ---
    need = 2 * T * BT * E * 2                      # x block
    need += 2 * 2 * L * BT * Hp * 4                # h0 + c0
    for l in range(L):
        in_l = E if l == 0 else Hp
        need += 2 * (in_l * 4 * Hp * 2 + Hp * 4 * Hp * 2 + 4 * Hp * 4)
    need += 2 * (Hp * Vp * 2 + Vp * 4)             # fc weights
    need += 2 * (BT * Vp * 4 + 2 * L * BT * Hp * 4)  # outputs
    need += T * BT * Hp * 2 + TCHUNK * BT * 4 * Hp * 4  # scratch
    vmem_limit = int(min(need * 2 + (16 << 20), 100 << 20))

    flops = 2 * Bp * Hp * Vp
    for l in range(L):
        in_l = E if l == 0 else Hp
        flops += 2 * T * Bp * (in_l + Hp) * 4 * Hp
    cost = pl.CostEstimate(
        flops=flops,
        transcendentals=L * T * Bp * 4 * Hp + Bp * Vp,
        bytes_accessed=int(
            x_tiles.size * 2 + (h0p.size + c0p.size) * 4
            + sum(a.size * a.dtype.itemsize for a in layer_args)
            + fc_w.size * 2 + fc_b.size * 4
            + n_bt * (BT * Vp + 2 * L * BT * Hp) * 4))

    kernel = functools.partial(_fused_rnn_kernel, L, T, TCHUNK, Hp)

    logits_p, hn_p, cn_p = pl.pallas_call(
        kernel,
        grid=(n_bt,),
        in_specs=in_specs,
        out_specs=out_specs,
        out_shape=out_shape,
        scratch_shapes=[pltpu.VMEM((T * BT, Hp), jnp.bfloat16),        # seq_sc
                        pltpu.VMEM((TCHUNK * BT, 4 * Hp), jnp.float32)],  # gates
        compiler_params=pltpu.CompilerParams(
            dimension_semantics=("parallel",),
            vmem_limit_bytes=vmem_limit),
        cost_estimate=cost,
    )(x_tiles, h0p, c0p, *layer_args, fc_w, fc_b)

    logits = logits_p.reshape(Bp, Vp)[:B, :V]
    h_n = hn_p.transpose(1, 0, 2, 3).reshape(L, Bp, Hp)[:, :B, :H]
    c_n = cn_p.transpose(1, 0, 2, 3).reshape(L, Bp, Hp)[:, :B, :H]
    return logits, (h_n, c_n)


if __name__ == "__main__":
    NUM_EMBEDDINGS = 64
    EMBEDDING_DIM = 32
    HIDDEN_DIM = 32
    N_LAYERS = 2
    BATCH = 2
    SEQ = 8

    key = jax.random.PRNGKey(0)
    k_param, k_x = jax.random.split(key)
    params = init_params(k_param, NUM_EMBEDDINGS, EMBEDDING_DIM,
                         HIDDEN_DIM, N_LAYERS)

    x = jax.random.randint(k_x, (BATCH, SEQ), 0, NUM_EMBEDDINGS, jnp.int32)
    h0 = jnp.zeros((N_LAYERS, BATCH, HIDDEN_DIM), jnp.float32)
    c0 = jnp.zeros((N_LAYERS, BATCH, HIDDEN_DIM), jnp.float32)

    logits, (h_n, c_n) = jax.jit(rnn_forward)(params, x, (h0, c0))
    jax.block_until_ready((logits, h_n, c_n))

    assert logits.shape == (BATCH, NUM_EMBEDDINGS)
    assert h_n.shape == (N_LAYERS, BATCH, HIDDEN_DIM)
    assert c_n.shape == (N_LAYERS, BATCH, HIDDEN_DIM)
    # log-softmax rows must normalize to 1
    assert bool(jnp.allclose(jnp.exp(logits).sum(axis=1), 1.0, atol=1e-2))
    print("KERNEL_OK")
</pallas_src>

<mosaic_0001>
module attributes {stable_mosaic.version = 11 : i64} {
  func.func @_fused_rnn_kernel(%arg0: i32, %arg1: memref<1x128x32xbf16, #tpu.memory_space<vmem>>, %arg2: memref<1x2x16x128xf32, #tpu.memory_space<vmem>>, %arg3: memref<1x2x16x128xf32, #tpu.memory_space<vmem>>, %arg4: memref<32x512xbf16, #tpu.memory_space<vmem>>, %arg5: memref<128x512xbf16, #tpu.memory_space<vmem>>, %arg6: memref<1x512xf32, #tpu.memory_space<vmem>>, %arg7: memref<128x512xbf16, #tpu.memory_space<vmem>>, %arg8: memref<128x512xbf16, #tpu.memory_space<vmem>>, %arg9: memref<1x512xf32, #tpu.memory_space<vmem>>, %arg10: memref<128x128xbf16, #tpu.memory_space<vmem>>, %arg11: memref<1x128xf32, #tpu.memory_space<vmem>>, %arg12: memref<1x16x128xf32, #tpu.memory_space<vmem>>, %arg13: memref<1x2x16x128xf32, #tpu.memory_space<vmem>>, %arg14: memref<1x2x16x128xf32, #tpu.memory_space<vmem>>, %arg15: memref<128x128xbf16, #tpu.memory_space<vmem>>, %arg16: memref<128x512xf32, #tpu.memory_space<vmem>>) attributes {dimension_semantics = [#tpu.dimension_semantics<parallel>], iteration_bounds = array<i64: 1>, scalar_prefetch = 0 : i64, scratch_operands = 2 : i64, tpu.core_type = #tpu.core_type<tc>, window_params = [{transform_indices = @transform_0, window_bounds = array<i64: 1, 128, 32>}, {transform_indices = @transform_1, window_bounds = array<i64: 1, 2, 16, 128>}, {transform_indices = @transform_2, window_bounds = array<i64: 1, 2, 16, 128>}, {pipeline_mode = #tpu.pipeline_mode<synchronous>, transform_indices = @transform_3, window_bounds = array<i64: 32, 512>}, {pipeline_mode = #tpu.pipeline_mode<synchronous>, transform_indices = @transform_4, window_bounds = array<i64: 128, 512>}, {pipeline_mode = #tpu.pipeline_mode<synchronous>, transform_indices = @transform_5, window_bounds = array<i64: 1, 512>}, {pipeline_mode = #tpu.pipeline_mode<synchronous>, transform_indices = @transform_6, window_bounds = array<i64: 128, 512>}, {pipeline_mode = #tpu.pipeline_mode<synchronous>, transform_indices = @transform_7, window_bounds = array<i64: 128, 512>}, {pipeline_mode = #tpu.pipeline_mode<synchronous>, transform_indices = @transform_8, window_bounds = array<i64: 1, 512>}, {pipeline_mode = #tpu.pipeline_mode<synchronous>, transform_indices = @transform_9, window_bounds = array<i64: 128, 128>}, {pipeline_mode = #tpu.pipeline_mode<synchronous>, transform_indices = @transform_10, window_bounds = array<i64: 1, 128>}, {transform_indices = @transform_11, window_bounds = array<i64: 1, 16, 128>}, {transform_indices = @transform_12, window_bounds = array<i64: 1, 2, 16, 128>}, {transform_indices = @transform_13, window_bounds = array<i64: 1, 2, 16, 128>}]} {
    %c0 = arith.constant 0 : index
    %c0_0 = arith.constant 0 : index
    %0 = vector.load %arg5[%c0, %c0_0] : memref<128x512xbf16, #tpu.memory_space<vmem>>, vector<128x512xbf16>
    %c0_1 = arith.constant 0 : index
    %c0_2 = arith.constant 0 : index
    %c0_3 = arith.constant 0 : index
    %c0_4 = arith.constant 0 : index
    %1 = vector.load %arg2[%c0_1, %c0_2, %c0_3, %c0_4] : memref<1x2x16x128xf32, #tpu.memory_space<vmem>>, vector<1x1x16x128xf32>
    %2 = vector.shape_cast %1 : vector<1x1x16x128xf32> to vector<16x128xf32>
    %c0_5 = arith.constant 0 : index
    %c0_6 = arith.constant 0 : index
    %c0_7 = arith.constant 0 : index
    %c0_8 = arith.constant 0 : index
    %3 = vector.load %arg3[%c0_5, %c0_6, %c0_7, %c0_8] : memref<1x2x16x128xf32, #tpu.memory_space<vmem>>, vector<1x1x16x128xf32>
    %4 = vector.shape_cast %3 : vector<1x1x16x128xf32> to vector<16x128xf32>
    %c0_9 = arith.constant 0 : index
    %c0_10 = arith.constant 0 : index
    %c0_11 = arith.constant 0 : index
    %5 = vector.load %arg1[%c0_9, %c0_10, %c0_11] : memref<1x128x32xbf16, #tpu.memory_space<vmem>>, vector<1x128x32xbf16>
    %6 = vector.shape_cast %5 : vector<1x128x32xbf16> to vector<128x32xbf16>
    %c0_12 = arith.constant 0 : index
    %c0_13 = arith.constant 0 : index
    %7 = vector.load %arg4[%c0_12, %c0_13] : memref<32x512xbf16, #tpu.memory_space<vmem>>, vector<32x512xbf16>
    %cst = arith.constant dense<0.000000e+00> : vector<128x512xf32>
    %8 = tpu.matmul %6, %7, %cst {dimension_numbers = #tpu.dot_dimension_numbers<[1], [0], [0], [1], [0, 0, 1, 1], [], []>} : vector<128x32xbf16>, vector<32x512xbf16>, vector<128x512xf32> -> vector<128x512xf32>
    %c0_14 = arith.constant 0 : index
    %c0_15 = arith.constant 0 : index
    %9 = vector.load %arg6[%c0_14, %c0_15] : memref<1x512xf32, #tpu.memory_space<vmem>>, vector<1x512xf32>
    %10 = vector.broadcast %9 : vector<1x512xf32> to vector<128x512xf32>
    %11 = arith.addf %8, %10 : vector<128x512xf32>
    %c0_16 = arith.constant 0 : index
    %c0_17 = arith.constant 0 : index
    %12 = vector.load %arg16[%c0_16, %c0_17] : memref<128x512xf32, #tpu.memory_space<vmem>>, vector<128x512xf32>
    tpu.vector_store %arg16[%c0_16, %c0_17], %11 {strides = array<i32>} : memref<128x512xf32, #tpu.memory_space<vmem>>, vector<128x512xf32>,
    %c0_i32 = arith.constant 0 : i32
    %c16_i32 = arith.constant 16 : i32
    %13 = arith.muli %c0_i32, %c16_i32 : i32
    %14 = tpu.assume_multiple %13, 16 : i32
    %15 = arith.index_cast %14 : i32 to index
    %c0_18 = arith.constant 0 : index
    %16 = vector.load %arg16[%15, %c0_18] : memref<128x512xf32, #tpu.memory_space<vmem>>, vector<16x512xf32>
    %17 = arith.truncf %2 : vector<16x128xf32> to vector<16x128xbf16>
    %cst_19 = arith.constant dense<0.000000e+00> : vector<16x512xf32>
    %18 = tpu.matmul %17, %0, %cst_19 {dimension_numbers = #tpu.dot_dimension_numbers<[1], [0], [0], [1], [0, 0, 1, 1], [], []>} : vector<16x128xbf16>, vector<128x512xbf16>, vector<16x512xf32> -> vector<16x512xf32>
    %19 = arith.addf %16, %18 : vector<16x512xf32>
    %20 = vector.extract_strided_slice %19 {offsets = [0, 0], sizes = [16, 384], strides = [1, 1]} : vector<16x512xf32> to vector<16x384xf32>
    %21 = arith.negf %20 : vector<16x384xf32>
    %22 = math.exp %21 : vector<16x384xf32>
    %cst_20 = arith.constant 1.000000e+00 : f32
    %23 = vector.broadcast %cst_20 : f32 to vector<16x384xf32>
    %24 = arith.addf %23, %22 : vector<16x384xf32>
    %25 = arith.divf %23, %24 : vector<16x384xf32>
    %26 = vector.extract_strided_slice %19 {offsets = [0, 384], sizes = [16, 128], strides = [1, 1]} : vector<16x512xf32> to vector<16x128xf32>
    %27 = math.tanh %26 : vector<16x128xf32>
    %28 = vector.extract_strided_slice %25 {offsets = [0, 0], sizes = [16, 128], strides = [1, 1]} : vector<16x384xf32> to vector<16x128xf32>
    %29 = vector.extract_strided_slice %25 {offsets = [0, 128], sizes = [16, 128], strides = [1, 1]} : vector<16x384xf32> to vector<16x128xf32>
    %30 = vector.extract_strided_slice %25 {offsets = [0, 256], sizes = [16, 128], strides = [1, 1]} : vector<16x384xf32> to vector<16x128xf32>
    %31 = arith.mulf %29, %4 : vector<16x128xf32>
    %32 = arith.mulf %28, %27 : vector<16x128xf32>
    %33 = arith.addf %31, %32 : vector<16x128xf32>
    %34 = math.tanh %33 : vector<16x128xf32>
    %35 = arith.mulf %30, %34 : vector<16x128xf32>
    %c0_i32_21 = arith.constant 0 : i32
    %36 = arith.addi %c0_i32_21, %13 : i32
    %37 = tpu.assume_multiple %36, 16 : i32
    %38 = arith.truncf %35 : vector<16x128xf32> to vector<16x128xbf16>
    %39 = arith.index_cast %37 : i32 to index
    %c0_22 = arith.constant 0 : index
    %40 = vector.load %arg15[%39, %c0_22] : memref<128x128xbf16, #tpu.memory_space<vmem>>, vector<16x128xbf16>
    tpu.vector_store %arg15[%39, %c0_22], %38 {strides = array<i32>} : memref<128x128xbf16, #tpu.memory_space<vmem>>, vector<16x128xbf16>,
    %c1_i32 = arith.constant 1 : i32
    %c16_i32_23 = arith.constant 16 : i32
    %41 = arith.muli %c1_i32, %c16_i32_23 : i32
    %42 = tpu.assume_multiple %41, 16 : i32
    %43 = arith.index_cast %42 : i32 to index
    %c0_24 = arith.constant 0 : index
    %44 = vector.load %arg16[%43, %c0_24] : memref<128x512xf32, #tpu.memory_space<vmem>>, vector<16x512xf32>
    %45 = arith.truncf %35 : vector<16x128xf32> to vector<16x128xbf16>
    %cst_25 = arith.constant dense<0.000000e+00> : vector<16x512xf32>
    %46 = tpu.matmul %45, %0, %cst_25 {dimension_numbers = #tpu.dot_dimension_numbers<[1], [0], [0], [1], [0, 0, 1, 1], [], []>} : vector<16x128xbf16>, vector<128x512xbf16>, vector<16x512xf32> -> vector<16x512xf32>
    %47 = arith.addf %44, %46 : vector<16x512xf32>
    %48 = vector.extract_strided_slice %47 {offsets = [0, 0], sizes = [16, 384], strides = [1, 1]} : vector<16x512xf32> to vector<16x384xf32>
    %49 = arith.negf %48 : vector<16x384xf32>
    %50 = math.exp %49 : vector<16x384xf32>
    %cst_26 = arith.constant 1.000000e+00 : f32
    %51 = vector.broadcast %cst_26 : f32 to vector<16x384xf32>
    %52 = arith.addf %51, %50 : vector<16x384xf32>
    %53 = arith.divf %51, %52 : vector<16x384xf32>
    %54 = vector.extract_strided_slice %47 {offsets = [0, 384], sizes = [16, 128], strides = [1, 1]} : vector<16x512xf32> to vector<16x128xf32>
    %55 = math.tanh %54 : vector<16x128xf32>
    %56 = vector.extract_strided_slice %53 {offsets = [0, 0], sizes = [16, 128], strides = [1, 1]} : vector<16x384xf32> to vector<16x128xf32>
    %57 = vector.extract_strided_slice %53 {offsets = [0, 128], sizes = [16, 128], strides = [1, 1]} : vector<16x384xf32> to vector<16x128xf32>
    %58 = vector.extract_strided_slice %53 {offsets = [0, 256], sizes = [16, 128], strides = [1, 1]} : vector<16x384xf32> to vector<16x128xf32>
    %59 = arith.mulf %57, %33 : vector<16x128xf32>
    %60 = arith.mulf %56, %55 : vector<16x128xf32>
    %61 = arith.addf %59, %60 : vector<16x128xf32>
    %62 = math.tanh %61 : vector<16x128xf32>
    %63 = arith.mulf %58, %62 : vector<16x128xf32>
    %c0_i32_27 = arith.constant 0 : i32
    %64 = arith.addi %c0_i32_27, %41 : i32
    %65 = tpu.assume_multiple %64, 16 : i32
    %66 = arith.truncf %63 : vector<16x128xf32> to vector<16x128xbf16>
    %67 = arith.index_cast %65 : i32 to index
    %c0_28 = arith.constant 0 : index
    %68 = vector.load %arg15[%67, %c0_28] : memref<128x128xbf16, #tpu.memory_space<vmem>>, vector<16x128xbf16>
    tpu.vector_store %arg15[%67, %c0_28], %66 {strides = array<i32>} : memref<128x128xbf16, #tpu.memory_space<vmem>>, vector<16x128xbf16>,
    %c2_i32 = arith.constant 2 : i32
    %c16_i32_29 = arith.constant 16 : i32
    %69 = arith.muli %c2_i32, %c16_i32_29 : i32
    %70 = tpu.assume_multiple %69, 16 : i32
    %71 = arith.index_cast %70 : i32 to index
    %c0_30 = arith.constant 0 : index
    %72 = vector.load %arg16[%71, %c0_30] : memref<128x512xf32, #tpu.memory_space<vmem>>, vector<16x512xf32>
    %73 = arith.truncf %63 : vector<16x128xf32> to vector<16x128xbf16>
    %cst_31 = arith.constant dense<0.000000e+00> : vector<16x512xf32>
    %74 = tpu.matmul %73, %0, %cst_31 {dimension_numbers = #tpu.dot_dimension_numbers<[1], [0], [0], [1], [0, 0, 1, 1], [], []>} : vector<16x128xbf16>, vector<128x512xbf16>, vector<16x512xf32> -> vector<16x512xf32>
    %75 = arith.addf %72, %74 : vector<16x512xf32>
    %76 = vector.extract_strided_slice %75 {offsets = [0, 0], sizes = [16, 384], strides = [1, 1]} : vector<16x512xf32> to vector<16x384xf32>
    %77 = arith.negf %76 : vector<16x384xf32>
    %78 = math.exp %77 : vector<16x384xf32>
    %cst_32 = arith.constant 1.000000e+00 : f32
    %79 = vector.broadcast %cst_32 : f32 to vector<16x384xf32>
    %80 = arith.addf %79, %78 : vector<16x384xf32>
    %81 = arith.divf %79, %80 : vector<16x384xf32>
    %82 = vector.extract_strided_slice %75 {offsets = [0, 384], sizes = [16, 128], strides = [1, 1]} : vector<16x512xf32> to vector<16x128xf32>
    %83 = math.tanh %82 : vector<16x128xf32>
    %84 = vector.extract_strided_slice %81 {offsets = [0, 0], sizes = [16, 128], strides = [1, 1]} : vector<16x384xf32> to vector<16x128xf32>
    %85 = vector.extract_strided_slice %81 {offsets = [0, 128], sizes = [16, 128], strides = [1, 1]} : vector<16x384xf32> to vector<16x128xf32>
    %86 = vector.extract_strided_slice %81 {offsets = [0, 256], sizes = [16, 128], strides = [1, 1]} : vector<16x384xf32> to vector<16x128xf32>
    %87 = arith.mulf %85, %61 : vector<16x128xf32>
    %88 = arith.mulf %84, %83 : vector<16x128xf32>
    %89 = arith.addf %87, %88 : vector<16x128xf32>
    %90 = math.tanh %89 : vector<16x128xf32>
    %91 = arith.mulf %86, %90 : vector<16x128xf32>
    %c0_i32_33 = arith.constant 0 : i32
    %92 = arith.addi %c0_i32_33, %69 : i32
    %93 = tpu.assume_multiple %92, 16 : i32
    %94 = arith.truncf %91 : vector<16x128xf32> to vector<16x128xbf16>
    %95 = arith.index_cast %93 : i32 to index
    %c0_34 = arith.constant 0 : index
    %96 = vector.load %arg15[%95, %c0_34] : memref<128x128xbf16, #tpu.memory_space<vmem>>, vector<16x128xbf16>
    tpu.vector_store %arg15[%95, %c0_34], %94 {strides = array<i32>} : memref<128x128xbf16, #tpu.memory_space<vmem>>, vector<16x128xbf16>,
    %c3_i32 = arith.constant 3 : i32
    %c16_i32_35 = arith.constant 16 : i32
    %97 = arith.muli %c3_i32, %c16_i32_35 : i32
    %98 = tpu.assume_multiple %97, 16 : i32
    %99 = arith.index_cast %98 : i32 to index
    %c0_36 = arith.constant 0 : index
    %100 = vector.load %arg16[%99, %c0_36] : memref<128x512xf32, #tpu.memory_space<vmem>>, vector<16x512xf32>
    %101 = arith.truncf %91 : vector<16x128xf32> to vector<16x128xbf16>
    %cst_37 = arith.constant dense<0.000000e+00> : vector<16x512xf32>
    %102 = tpu.matmul %101, %0, %cst_37 {dimension_numbers = #tpu.dot_dimension_numbers<[1], [0], [0], [1], [0, 0, 1, 1], [], []>} : vector<16x128xbf16>, vector<128x512xbf16>, vector<16x512xf32> -> vector<16x512xf32>
    %103 = arith.addf %100, %102 : vector<16x512xf32>
    %104 = vector.extract_strided_slice %103 {offsets = [0, 0], sizes = [16, 384], strides = [1, 1]} : vector<16x512xf32> to vector<16x384xf32>
    %105 = arith.negf %104 : vector<16x384xf32>
    %106 = math.exp %105 : vector<16x384xf32>
    %cst_38 = arith.constant 1.000000e+00 : f32
    %107 = vector.broadcast %cst_38 : f32 to vector<16x384xf32>
    %108 = arith.addf %107, %106 : vector<16x384xf32>
    %109 = arith.divf %107, %108 : vector<16x384xf32>
    %110 = vector.extract_strided_slice %103 {offsets = [0, 384], sizes = [16, 128], strides = [1, 1]} : vector<16x512xf32> to vector<16x128xf32>
    %111 = math.tanh %110 : vector<16x128xf32>
    %112 = vector.extract_strided_slice %109 {offsets = [0, 0], sizes = [16, 128], strides = [1, 1]} : vector<16x384xf32> to vector<16x128xf32>
    %113 = vector.extract_strided_slice %109 {offsets = [0, 128], sizes = [16, 128], strides = [1, 1]} : vector<16x384xf32> to vector<16x128xf32>
    %114 = vector.extract_strided_slice %109 {offsets = [0, 256], sizes = [16, 128], strides = [1, 1]} : vector<16x384xf32> to vector<16x128xf32>
    %115 = arith.mulf %113, %89 : vector<16x128xf32>
    %116 = arith.mulf %112, %111 : vector<16x128xf32>
    %117 = arith.addf %115, %116 : vector<16x128xf32>
    %118 = math.tanh %117 : vector<16x128xf32>
    %119 = arith.mulf %114, %118 : vector<16x128xf32>
    %c0_i32_39 = arith.constant 0 : i32
    %120 = arith.addi %c0_i32_39, %97 : i32
    %121 = tpu.assume_multiple %120, 16 : i32
    %122 = arith.truncf %119 : vector<16x128xf32> to vector<16x128xbf16>
    %123 = arith.index_cast %121 : i32 to index
    %c0_40 = arith.constant 0 : index
    %124 = vector.load %arg15[%123, %c0_40] : memref<128x128xbf16, #tpu.memory_space<vmem>>, vector<16x128xbf16>
    tpu.vector_store %arg15[%123, %c0_40], %122 {strides = array<i32>} : memref<128x128xbf16, #tpu.memory_space<vmem>>, vector<16x128xbf16>,
    %c4_i32 = arith.constant 4 : i32
    %c16_i32_41 = arith.constant 16 : i32
    %125 = arith.muli %c4_i32, %c16_i32_41 : i32
    %126 = tpu.assume_multiple %125, 16 : i32
    %127 = arith.index_cast %126 : i32 to index
    %c0_42 = arith.constant 0 : index
    %128 = vector.load %arg16[%127, %c0_42] : memref<128x512xf32, #tpu.memory_space<vmem>>, vector<16x512xf32>
    %129 = arith.truncf %119 : vector<16x128xf32> to vector<16x128xbf16>
    %cst_43 = arith.constant dense<0.000000e+00> : vector<16x512xf32>
    %130 = tpu.matmul %129, %0, %cst_43 {dimension_numbers = #tpu.dot_dimension_numbers<[1], [0], [0], [1], [0, 0, 1, 1], [], []>} : vector<16x128xbf16>, vector<128x512xbf16>, vector<16x512xf32> -> vector<16x512xf32>
    %131 = arith.addf %128, %130 : vector<16x512xf32>
    %132 = vector.extract_strided_slice %131 {offsets = [0, 0], sizes = [16, 384], strides = [1, 1]} : vector<16x512xf32> to vector<16x384xf32>
    %133 = arith.negf %132 : vector<16x384xf32>
    %134 = math.exp %133 : vector<16x384xf32>
    %cst_44 = arith.constant 1.000000e+00 : f32
    %135 = vector.broadcast %cst_44 : f32 to vector<16x384xf32>
    %136 = arith.addf %135, %134 : vector<16x384xf32>
    %137 = arith.divf %135, %136 : vector<16x384xf32>
    %138 = vector.extract_strided_slice %131 {offsets = [0, 384], sizes = [16, 128], strides = [1, 1]} : vector<16x512xf32> to vector<16x128xf32>
    %139 = math.tanh %138 : vector<16x128xf32>
    %140 = vector.extract_strided_slice %137 {offsets = [0, 0], sizes = [16, 128], strides = [1, 1]} : vector<16x384xf32> to vector<16x128xf32>
    %141 = vector.extract_strided_slice %137 {offsets = [0, 128], sizes = [16, 128], strides = [1, 1]} : vector<16x384xf32> to vector<16x128xf32>
    %142 = vector.extract_strided_slice %137 {offsets = [0, 256], sizes = [16, 128], strides = [1, 1]} : vector<16x384xf32> to vector<16x128xf32>
    %143 = arith.mulf %141, %117 : vector<16x128xf32>
    %144 = arith.mulf %140, %139 : vector<16x128xf32>
    %145 = arith.addf %143, %144 : vector<16x128xf32>
    %146 = math.tanh %145 : vector<16x128xf32>
    %147 = arith.mulf %142, %146 : vector<16x128xf32>
    %c0_i32_45 = arith.constant 0 : i32
    %148 = arith.addi %c0_i32_45, %125 : i32
    %149 = tpu.assume_multiple %148, 16 : i32
    %150 = arith.truncf %147 : vector<16x128xf32> to vector<16x128xbf16>
    %151 = arith.index_cast %149 : i32 to index
    %c0_46 = arith.constant 0 : index
    %152 = vector.load %arg15[%151, %c0_46] : memref<128x128xbf16, #tpu.memory_space<vmem>>, vector<16x128xbf16>
    tpu.vector_store %arg15[%151, %c0_46], %150 {strides = array<i32>} : memref<128x128xbf16, #tpu.memory_space<vmem>>, vector<16x128xbf16>,
    %c5_i32 = arith.constant 5 : i32
    %c16_i32_47 = arith.constant 16 : i32
    %153 = arith.muli %c5_i32, %c16_i32_47 : i32
    %154 = tpu.assume_multiple %153, 16 : i32
    %155 = arith.index_cast %154 : i32 to index
    %c0_48 = arith.constant 0 : index
    %156 = vector.load %arg16[%155, %c0_48] : memref<128x512xf32, #tpu.memory_space<vmem>>, vector<16x512xf32>
    %157 = arith.truncf %147 : vector<16x128xf32> to vector<16x128xbf16>
    %cst_49 = arith.constant dense<0.000000e+00> : vector<16x512xf32>
    %158 = tpu.matmul %157, %0, %cst_49 {dimension_numbers = #tpu.dot_dimension_numbers<[1], [0], [0], [1], [0, 0, 1, 1], [], []>} : vector<16x128xbf16>, vector<128x512xbf16>, vector<16x512xf32> -> vector<16x512xf32>
    %159 = arith.addf %156, %158 : vector<16x512xf32>
    %160 = vector.extract_strided_slice %159 {offsets = [0, 0], sizes = [16, 384], strides = [1, 1]} : vector<16x512xf32> to vector<16x384xf32>
    %161 = arith.negf %160 : vector<16x384xf32>
    %162 = math.exp %161 : vector<16x384xf32>
    %cst_50 = arith.constant 1.000000e+00 : f32
    %163 = vector.broadcast %cst_50 : f32 to vector<16x384xf32>
    %164 = arith.addf %163, %162 : vector<16x384xf32>
    %165 = arith.divf %163, %164 : vector<16x384xf32>
    %166 = vector.extract_strided_slice %159 {offsets = [0, 384], sizes = [16, 128], strides = [1, 1]} : vector<16x512xf32> to vector<16x128xf32>
    %167 = math.tanh %166 : vector<16x128xf32>
    %168 = vector.extract_strided_slice %165 {offsets = [0, 0], sizes = [16, 128], strides = [1, 1]} : vector<16x384xf32> to vector<16x128xf32>
    %169 = vector.extract_strided_slice %165 {offsets = [0, 128], sizes = [16, 128], strides = [1, 1]} : vector<16x384xf32> to vector<16x128xf32>
    %170 = vector.extract_strided_slice %165 {offsets = [0, 256], sizes = [16, 128], strides = [1, 1]} : vector<16x384xf32> to vector<16x128xf32>
    %171 = arith.mulf %169, %145 : vector<16x128xf32>
    %172 = arith.mulf %168, %167 : vector<16x128xf32>
    %173 = arith.addf %171, %172 : vector<16x128xf32>
    %174 = math.tanh %173 : vector<16x128xf32>
    %175 = arith.mulf %170, %174 : vector<16x128xf32>
    %c0_i32_51 = arith.constant 0 : i32
    %176 = arith.addi %c0_i32_51, %153 : i32
    %177 = tpu.assume_multiple %176, 16 : i32
    %178 = arith.truncf %175 : vector<16x128xf32> to vector<16x128xbf16>
    %179 = arith.index_cast %177 : i32 to index
    %c0_52 = arith.constant 0 : index
    %180 = vector.load %arg15[%179, %c0_52] : memref<128x128xbf16, #tpu.memory_space<vmem>>, vector<16x128xbf16>
    tpu.vector_store %arg15[%179, %c0_52], %178 {strides = array<i32>} : memref<128x128xbf16, #tpu.memory_space<vmem>>, vector<16x128xbf16>,
    %c6_i32 = arith.constant 6 : i32
    %c16_i32_53 = arith.constant 16 : i32
    %181 = arith.muli %c6_i32, %c16_i32_53 : i32
    %182 = tpu.assume_multiple %181, 16 : i32
    %183 = arith.index_cast %182 : i32 to index
    %c0_54 = arith.constant 0 : index
    %184 = vector.load %arg16[%183, %c0_54] : memref<128x512xf32, #tpu.memory_space<vmem>>, vector<16x512xf32>
    %185 = arith.truncf %175 : vector<16x128xf32> to vector<16x128xbf16>
    %cst_55 = arith.constant dense<0.000000e+00> : vector<16x512xf32>
    %186 = tpu.matmul %185, %0, %cst_55 {dimension_numbers = #tpu.dot_dimension_numbers<[1], [0], [0], [1], [0, 0, 1, 1], [], []>} : vector<16x128xbf16>, vector<128x512xbf16>, vector<16x512xf32> -> vector<16x512xf32>
    %187 = arith.addf %184, %186 : vector<16x512xf32>
    %188 = vector.extract_strided_slice %187 {offsets = [0, 0], sizes = [16, 384], strides = [1, 1]} : vector<16x512xf32> to vector<16x384xf32>
    %189 = arith.negf %188 : vector<16x384xf32>
    %190 = math.exp %189 : vector<16x384xf32>
    %cst_56 = arith.constant 1.000000e+00 : f32
    %191 = vector.broadcast %cst_56 : f32 to vector<16x384xf32>
    %192 = arith.addf %191, %190 : vector<16x384xf32>
    %193 = arith.divf %191, %192 : vector<16x384xf32>
    %194 = vector.extract_strided_slice %187 {offsets = [0, 384], sizes = [16, 128], strides = [1, 1]} : vector<16x512xf32> to vector<16x128xf32>
    %195 = math.tanh %194 : vector<16x128xf32>
    %196 = vector.extract_strided_slice %193 {offsets = [0, 0], sizes = [16, 128], strides = [1, 1]} : vector<16x384xf32> to vector<16x128xf32>
    %197 = vector.extract_strided_slice %193 {offsets = [0, 128], sizes = [16, 128], strides = [1, 1]} : vector<16x384xf32> to vector<16x128xf32>
    %198 = vector.extract_strided_slice %193 {offsets = [0, 256], sizes = [16, 128], strides = [1, 1]} : vector<16x384xf32> to vector<16x128xf32>
    %199 = arith.mulf %197, %173 : vector<16x128xf32>
    %200 = arith.mulf %196, %195 : vector<16x128xf32>
    %201 = arith.addf %199, %200 : vector<16x128xf32>
    %202 = math.tanh %201 : vector<16x128xf32>
    %203 = arith.mulf %198, %202 : vector<16x128xf32>
    %c0_i32_57 = arith.constant 0 : i32
    %204 = arith.addi %c0_i32_57, %181 : i32
    %205 = tpu.assume_multiple %204, 16 : i32
    %206 = arith.truncf %203 : vector<16x128xf32> to vector<16x128xbf16>
    %207 = arith.index_cast %205 : i32 to index
    %c0_58 = arith.constant 0 : index
    %208 = vector.load %arg15[%207, %c0_58] : memref<128x128xbf16, #tpu.memory_space<vmem>>, vector<16x128xbf16>
    tpu.vector_store %arg15[%207, %c0_58], %206 {strides = array<i32>} : memref<128x128xbf16, #tpu.memory_space<vmem>>, vector<16x128xbf16>,
    %c7_i32 = arith.constant 7 : i32
    %c16_i32_59 = arith.constant 16 : i32
    %209 = arith.muli %c7_i32, %c16_i32_59 : i32
    %210 = tpu.assume_multiple %209, 16 : i32
    %211 = arith.index_cast %210 : i32 to index
    %c0_60 = arith.constant 0 : index
    %212 = vector.load %arg16[%211, %c0_60] : memref<128x512xf32, #tpu.memory_space<vmem>>, vector<16x512xf32>
    %213 = arith.truncf %203 : vector<16x128xf32> to vector<16x128xbf16>
    %cst_61 = arith.constant dense<0.000000e+00> : vector<16x512xf32>
    %214 = tpu.matmul %213, %0, %cst_61 {dimension_numbers = #tpu.dot_dimension_numbers<[1], [0], [0], [1], [0, 0, 1, 1], [], []>} : vector<16x128xbf16>, vector<128x512xbf16>, vector<16x512xf32> -> vector<16x512xf32>
    %215 = arith.addf %212, %214 : vector<16x512xf32>
    %216 = vector.extract_strided_slice %215 {offsets = [0, 0], sizes = [16, 384], strides = [1, 1]} : vector<16x512xf32> to vector<16x384xf32>
    %217 = arith.negf %216 : vector<16x384xf32>
    %218 = math.exp %217 : vector<16x384xf32>
    %cst_62 = arith.constant 1.000000e+00 : f32
    %219 = vector.broadcast %cst_62 : f32 to vector<16x384xf32>
    %220 = arith.addf %219, %218 : vector<16x384xf32>
    %221 = arith.divf %219, %220 : vector<16x384xf32>
    %222 = vector.extract_strided_slice %215 {offsets = [0, 384], sizes = [16, 128], strides = [1, 1]} : vector<16x512xf32> to vector<16x128xf32>
    %223 = math.tanh %222 : vector<16x128xf32>
    %224 = vector.extract_strided_slice %221 {offsets = [0, 0], sizes = [16, 128], strides = [1, 1]} : vector<16x384xf32> to vector<16x128xf32>
    %225 = vector.extract_strided_slice %221 {offsets = [0, 128], sizes = [16, 128], strides = [1, 1]} : vector<16x384xf32> to vector<16x128xf32>
    %226 = vector.extract_strided_slice %221 {offsets = [0, 256], sizes = [16, 128], strides = [1, 1]} : vector<16x384xf32> to vector<16x128xf32>
    %227 = arith.mulf %225, %201 : vector<16x128xf32>
    %228 = arith.mulf %224, %223 : vector<16x128xf32>
    %229 = arith.addf %227, %228 : vector<16x128xf32>
    %230 = math.tanh %229 : vector<16x128xf32>
    %231 = arith.mulf %226, %230 : vector<16x128xf32>
    %c0_i32_63 = arith.constant 0 : i32
    %232 = arith.addi %c0_i32_63, %209 : i32
    %233 = tpu.assume_multiple %232, 16 : i32
    %234 = arith.truncf %231 : vector<16x128xf32> to vector<16x128xbf16>
    %235 = arith.index_cast %233 : i32 to index
    %c0_64 = arith.constant 0 : index
    %236 = vector.load %arg15[%235, %c0_64] : memref<128x128xbf16, #tpu.memory_space<vmem>>, vector<16x128xbf16>
    tpu.vector_store %arg15[%235, %c0_64], %234 {strides = array<i32>} : memref<128x128xbf16, #tpu.memory_space<vmem>>, vector<16x128xbf16>,
    %c8_i32 = arith.constant 8 : i32
    %c0_65 = arith.constant 0 : index
    %c0_66 = arith.constant 0 : index
    %c0_67 = arith.constant 0 : index
    %c0_68 = arith.constant 0 : index
    %237 = vector.load %arg13[%c0_65, %c0_66, %c0_67, %c0_68] : memref<1x2x16x128xf32, #tpu.memory_space<vmem>>, vector<1x1x16x128xf32>
    %238 = vector.shape_cast %237 : vector<1x1x16x128xf32> to vector<16x128xf32>
    %239 = vector.shape_cast %231 : vector<16x128xf32> to vector<1x1x16x128xf32>
    tpu.vector_store %arg13[%c0_65, %c0_66, %c0_67, %c0_68], %239 {strides = array<i32>} : memref<1x2x16x128xf32, #tpu.memory_space<vmem>>, vector<1x1x16x128xf32>,
    %c0_69 = arith.constant 0 : index
    %c0_70 = arith.constant 0 : index
    %c0_71 = arith.constant 0 : index
    %c0_72 = arith.constant 0 : index
    %240 = vector.load %arg14[%c0_69, %c0_70, %c0_71, %c0_72] : memref<1x2x16x128xf32, #tpu.memory_space<vmem>>, vector<1x1x16x128xf32>
    %241 = vector.shape_cast %240 : vector<1x1x16x128xf32> to vector<16x128xf32>
    %242 = vector.shape_cast %229 : vector<16x128xf32> to vector<1x1x16x128xf32>
    tpu.vector_store %arg14[%c0_69, %c0_70, %c0_71, %c0_72], %242 {strides = array<i32>} : memref<1x2x16x128xf32, #tpu.memory_space<vmem>>, vector<1x1x16x128xf32>,
    %c0_73 = arith.constant 0 : index
    %c0_74 = arith.constant 0 : index
    %243 = vector.load %arg8[%c0_73, %c0_74] : memref<128x512xbf16, #tpu.memory_space<vmem>>, vector<128x512xbf16>
    %c0_75 = arith.constant 0 : index
    %c1 = arith.constant 1 : index
    %c0_76 = arith.constant 0 : index
    %c0_77 = arith.constant 0 : index
    %244 = vector.load %arg2[%c0_75, %c1, %c0_76, %c0_77] : memref<1x2x16x128xf32, #tpu.memory_space<vmem>>, vector<1x1x16x128xf32>
    %245 = vector.shape_cast %244 : vector<1x1x16x128xf32> to vector<16x128xf32>
    %c0_78 = arith.constant 0 : index
    %c1_79 = arith.constant 1 : index
    %c0_80 = arith.constant 0 : index
    %c0_81 = arith.constant 0 : index
    %246 = vector.load %arg3[%c0_78, %c1_79, %c0_80, %c0_81] : memref<1x2x16x128xf32, #tpu.memory_space<vmem>>, vector<1x1x16x128xf32>
    %247 = vector.shape_cast %246 : vector<1x1x16x128xf32> to vector<16x128xf32>
    %c0_82 = arith.constant 0 : index
    %c0_83 = arith.constant 0 : index
    %248 = vector.load %arg15[%c0_82, %c0_83] : memref<128x128xbf16, #tpu.memory_space<vmem>>, vector<128x128xbf16>
    %c0_84 = arith.constant 0 : index
    %c0_85 = arith.constant 0 : index
    %249 = vector.load %arg7[%c0_84, %c0_85] : memref<128x512xbf16, #tpu.memory_space<vmem>>, vector<128x512xbf16>
    %cst_86 = arith.constant dense<0.000000e+00> : vector<128x512xf32>
    %250 = tpu.matmul %248, %249, %cst_86 {dimension_numbers = #tpu.dot_dimension_numbers<[1], [0], [0], [1], [0, 0, 1, 1], [], []>} : vector<128x128xbf16>, vector<128x512xbf16>, vector<128x512xf32> -> vector<128x512xf32>
    %c0_87 = arith.constant 0 : index
    %c0_88 = arith.constant 0 : index
    %251 = vector.load %arg9[%c0_87, %c0_88] : memref<1x512xf32, #tpu.memory_space<vmem>>, vector<1x512xf32>
    %252 = vector.broadcast %251 : vector<1x512xf32> to vector<128x512xf32>
    %253 = arith.addf %250, %252 : vector<128x512xf32>
    %c0_89 = arith.constant 0 : index
    %c0_90 = arith.constant 0 : index
    %254 = vector.load %arg16[%c0_89, %c0_90] : memref<128x512xf32, #tpu.memory_space<vmem>>, vector<128x512xf32>
    tpu.vector_store %arg16[%c0_89, %c0_90], %253 {strides = array<i32>} : memref<128x512xf32, #tpu.memory_space<vmem>>, vector<128x512xf32>,
    %c0_i32_91 = arith.constant 0 : i32
    %c16_i32_92 = arith.constant 16 : i32
    %255 = arith.muli %c0_i32_91, %c16_i32_92 : i32
    %256 = tpu.assume_multiple %255, 16 : i32
    %257 = arith.index_cast %256 : i32 to index
    %c0_93 = arith.constant 0 : index
    %258 = vector.load %arg16[%257, %c0_93] : memref<128x512xf32, #tpu.memory_space<vmem>>, vector<16x512xf32>
    %259 = arith.truncf %245 : vector<16x128xf32> to vector<16x128xbf16>
    %cst_94 = arith.constant dense<0.000000e+00> : vector<16x512xf32>
    %260 = tpu.matmul %259, %243, %cst_94 {dimension_numbers = #tpu.dot_dimension_numbers<[1], [0], [0], [1], [0, 0, 1, 1], [], []>} : vector<16x128xbf16>, vector<128x512xbf16>, vector<16x512xf32> -> vector<16x512xf32>
    %261 = arith.addf %258, %260 : vector<16x512xf32>
    %262 = vector.extract_strided_slice %261 {offsets = [0, 0], sizes = [16, 384], strides = [1, 1]} : vector<16x512xf32> to vector<16x384xf32>
    %263 = arith.negf %262 : vector<16x384xf32>
    %264 = math.exp %263 : vector<16x384xf32>
    %cst_95 = arith.constant 1.000000e+00 : f32
    %265 = vector.broadcast %cst_95 : f32 to vector<16x384xf32>
    %266 = arith.addf %265, %264 : vector<16x384xf32>
    %267 = arith.divf %265, %266 : vector<16x384xf32>
    %268 = vector.extract_strided_slice %261 {offsets = [0, 384], sizes = [16, 128], strides = [1, 1]} : vector<16x512xf32> to vector<16x128xf32>
    %269 = math.tanh %268 : vector<16x128xf32>
    %270 = vector.extract_strided_slice %267 {offsets = [0, 0], sizes = [16, 128], strides = [1, 1]} : vector<16x384xf32> to vector<16x128xf32>
    %271 = vector.extract_strided_slice %267 {offsets = [0, 128], sizes = [16, 128], strides = [1, 1]} : vector<16x384xf32> to vector<16x128xf32>
    %272 = vector.extract_strided_slice %267 {offsets = [0, 256], sizes = [16, 128], strides = [1, 1]} : vector<16x384xf32> to vector<16x128xf32>
    %273 = arith.mulf %271, %247 : vector<16x128xf32>
    %274 = arith.mulf %270, %269 : vector<16x128xf32>
    %275 = arith.addf %273, %274 : vector<16x128xf32>
    %276 = math.tanh %275 : vector<16x128xf32>
    %277 = arith.mulf %272, %276 : vector<16x128xf32>
    %c1_i32_96 = arith.constant 1 : i32
    %c16_i32_97 = arith.constant 16 : i32
    %278 = arith.muli %c1_i32_96, %c16_i32_97 : i32
    %279 = tpu.assume_multiple %278, 16 : i32
    %280 = arith.index_cast %279 : i32 to index
    %c0_98 = arith.constant 0 : index
    %281 = vector.load %arg16[%280, %c0_98] : memref<128x512xf32, #tpu.memory_space<vmem>>, vector<16x512xf32>
    %282 = arith.truncf %277 : vector<16x128xf32> to vector<16x128xbf16>
    %cst_99 = arith.constant dense<0.000000e+00> : vector<16x512xf32>
    %283 = tpu.matmul %282, %243, %cst_99 {dimension_numbers = #tpu.dot_dimension_numbers<[1], [0], [0], [1], [0, 0, 1, 1], [], []>} : vector<16x128xbf16>, vector<128x512xbf16>, vector<16x512xf32> -> vector<16x512xf32>
    %284 = arith.addf %281, %283 : vector<16x512xf32>
    %285 = vector.extract_strided_slice %284 {offsets = [0, 0], sizes = [16, 384], strides = [1, 1]} : vector<16x512xf32> to vector<16x384xf32>
    %286 = arith.negf %285 : vector<16x384xf32>
    %287 = math.exp %286 : vector<16x384xf32>
    %cst_100 = arith.constant 1.000000e+00 : f32
    %288 = vector.broadcast %cst_100 : f32 to vector<16x384xf32>
    %289 = arith.addf %288, %287 : vector<16x384xf32>
    %290 = arith.divf %288, %289 : vector<16x384xf32>
    %291 = vector.extract_strided_slice %284 {offsets = [0, 384], sizes = [16, 128], strides = [1, 1]} : vector<16x512xf32> to vector<16x128xf32>
    %292 = math.tanh %291 : vector<16x128xf32>
    %293 = vector.extract_strided_slice %290 {offsets = [0, 0], sizes = [16, 128], strides = [1, 1]} : vector<16x384xf32> to vector<16x128xf32>
    %294 = vector.extract_strided_slice %290 {offsets = [0, 128], sizes = [16, 128], strides = [1, 1]} : vector<16x384xf32> to vector<16x128xf32>
    %295 = vector.extract_strided_slice %290 {offsets = [0, 256], sizes = [16, 128], strides = [1, 1]} : vector<16x384xf32> to vector<16x128xf32>
    %296 = arith.mulf %294, %275 : vector<16x128xf32>
    %297 = arith.mulf %293, %292 : vector<16x128xf32>
    %298 = arith.addf %296, %297 : vector<16x128xf32>
    %299 = math.tanh %298 : vector<16x128xf32>
    %300 = arith.mulf %295, %299 : vector<16x128xf32>
    %c2_i32_101 = arith.constant 2 : i32
    %c16_i32_102 = arith.constant 16 : i32
    %301 = arith.muli %c2_i32_101, %c16_i32_102 : i32
    %302 = tpu.assume_multiple %301, 16 : i32
    %303 = arith.index_cast %302 : i32 to index
    %c0_103 = arith.constant 0 : index
    %304 = vector.load %arg16[%303, %c0_103] : memref<128x512xf32, #tpu.memory_space<vmem>>, vector<16x512xf32>
    %305 = arith.truncf %300 : vector<16x128xf32> to vector<16x128xbf16>
    %cst_104 = arith.constant dense<0.000000e+00> : vector<16x512xf32>
    %306 = tpu.matmul %305, %243, %cst_104 {dimension_numbers = #tpu.dot_dimension_numbers<[1], [0], [0], [1], [0, 0, 1, 1], [], []>} : vector<16x128xbf16>, vector<128x512xbf16>, vector<16x512xf32> -> vector<16x512xf32>
    %307 = arith.addf %304, %306 : vector<16x512xf32>
    %308 = vector.extract_strided_slice %307 {offsets = [0, 0], sizes = [16, 384], strides = [1, 1]} : vector<16x512xf32> to vector<16x384xf32>
    %309 = arith.negf %308 : vector<16x384xf32>
    %310 = math.exp %309 : vector<16x384xf32>
    %cst_105 = arith.constant 1.000000e+00 : f32
    %311 = vector.broadcast %cst_105 : f32 to vector<16x384xf32>
    %312 = arith.addf %311, %310 : vector<16x384xf32>
    %313 = arith.divf %311, %312 : vector<16x384xf32>
    %314 = vector.extract_strided_slice %307 {offsets = [0, 384], sizes = [16, 128], strides = [1, 1]} : vector<16x512xf32> to vector<16x128xf32>
    %315 = math.tanh %314 : vector<16x128xf32>
    %316 = vector.extract_strided_slice %313 {offsets = [0, 0], sizes = [16, 128], strides = [1, 1]} : vector<16x384xf32> to vector<16x128xf32>
    %317 = vector.extract_strided_slice %313 {offsets = [0, 128], sizes = [16, 128], strides = [1, 1]} : vector<16x384xf32> to vector<16x128xf32>
    %318 = vector.extract_strided_slice %313 {offsets = [0, 256], sizes = [16, 128], strides = [1, 1]} : vector<16x384xf32> to vector<16x128xf32>
    %319 = arith.mulf %317, %298 : vector<16x128xf32>
    %320 = arith.mulf %316, %315 : vector<16x128xf32>
    %321 = arith.addf %319, %320 : vector<16x128xf32>
    %322 = math.tanh %321 : vector<16x128xf32>
    %323 = arith.mulf %318, %322 : vector<16x128xf32>
    %c3_i32_106 = arith.constant 3 : i32
    %c16_i32_107 = arith.constant 16 : i32
    %324 = arith.muli %c3_i32_106, %c16_i32_107 : i32
    %325 = tpu.assume_multiple %324, 16 : i32
    %326 = arith.index_cast %325 : i32 to index
    %c0_108 = arith.constant 0 : index
    %327 = vector.load %arg16[%326, %c0_108] : memref<128x512xf32, #tpu.memory_space<vmem>>, vector<16x512xf32>
    %328 = arith.truncf %323 : vector<16x128xf32> to vector<16x128xbf16>
    %cst_109 = arith.constant dense<0.000000e+00> : vector<16x512xf32>
    %329 = tpu.matmul %328, %243, %cst_109 {dimension_numbers = #tpu.dot_dimension_numbers<[1], [0], [0], [1], [0, 0, 1, 1], [], []>} : vector<16x128xbf16>, vector<128x512xbf16>, vector<16x512xf32> -> vector<16x512xf32>
    %330 = arith.addf %327, %329 : vector<16x512xf32>
    %331 = vector.extract_strided_slice %330 {offsets = [0, 0], sizes = [16, 384], strides = [1, 1]} : vector<16x512xf32> to vector<16x384xf32>
    %332 = arith.negf %331 : vector<16x384xf32>
    %333 = math.exp %332 : vector<16x384xf32>
    %cst_110 = arith.constant 1.000000e+00 : f32
    %334 = vector.broadcast %cst_110 : f32 to vector<16x384xf32>
    %335 = arith.addf %334, %333 : vector<16x384xf32>
    %336 = arith.divf %334, %335 : vector<16x384xf32>
    %337 = vector.extract_strided_slice %330 {offsets = [0, 384], sizes = [16, 128], strides = [1, 1]} : vector<16x512xf32> to vector<16x128xf32>
    %338 = math.tanh %337 : vector<16x128xf32>
    %339 = vector.extract_strided_slice %336 {offsets = [0, 0], sizes = [16, 128], strides = [1, 1]} : vector<16x384xf32> to vector<16x128xf32>
    %340 = vector.extract_strided_slice %336 {offsets = [0, 128], sizes = [16, 128], strides = [1, 1]} : vector<16x384xf32> to vector<16x128xf32>
    %341 = vector.extract_strided_slice %336 {offsets = [0, 256], sizes = [16, 128], strides = [1, 1]} : vector<16x384xf32> to vector<16x128xf32>
    %342 = arith.mulf %340, %321 : vector<16x128xf32>
    %343 = arith.mulf %339, %338 : vector<16x128xf32>
    %344 = arith.addf %342, %343 : vector<16x128xf32>
    %345 = math.tanh %344 : vector<16x128xf32>
    %346 = arith.mulf %341, %345 : vector<16x128xf32>
    %c4_i32_111 = arith.constant 4 : i32
    %c16_i32_112 = arith.constant 16 : i32
    %347 = arith.muli %c4_i32_111, %c16_i32_112 : i32
    %348 = tpu.assume_multiple %347, 16 : i32
    %349 = arith.index_cast %348 : i32 to index
    %c0_113 = arith.constant 0 : index
    %350 = vector.load %arg16[%349, %c0_113] : memref<128x512xf32, #tpu.memory_space<vmem>>, vector<16x512xf32>
    %351 = arith.truncf %346 : vector<16x128xf32> to vector<16x128xbf16>
    %cst_114 = arith.constant dense<0.000000e+00> : vector<16x512xf32>
    %352 = tpu.matmul %351, %243, %cst_114 {dimension_numbers = #tpu.dot_dimension_numbers<[1], [0], [0], [1], [0, 0, 1, 1], [], []>} : vector<16x128xbf16>, vector<128x512xbf16>, vector<16x512xf32> -> vector<16x512xf32>
    %353 = arith.addf %350, %352 : vector<16x512xf32>
    %354 = vector.extract_strided_slice %353 {offsets = [0, 0], sizes = [16, 384], strides = [1, 1]} : vector<16x512xf32> to vector<16x384xf32>
    %355 = arith.negf %354 : vector<16x384xf32>
    %356 = math.exp %355 : vector<16x384xf32>
    %cst_115 = arith.constant 1.000000e+00 : f32
    %357 = vector.broadcast %cst_115 : f32 to vector<16x384xf32>
    %358 = arith.addf %357, %356 : vector<16x384xf32>
    %359 = arith.divf %357, %358 : vector<16x384xf32>
    %360 = vector.extract_strided_slice %353 {offsets = [0, 384], sizes = [16, 128], strides = [1, 1]} : vector<16x512xf32> to vector<16x128xf32>
    %361 = math.tanh %360 : vector<16x128xf32>
    %362 = vector.extract_strided_slice %359 {offsets = [0, 0], sizes = [16, 128], strides = [1, 1]} : vector<16x384xf32> to vector<16x128xf32>
    %363 = vector.extract_strided_slice %359 {offsets = [0, 128], sizes = [16, 128], strides = [1, 1]} : vector<16x384xf32> to vector<16x128xf32>
    %364 = vector.extract_strided_slice %359 {offsets = [0, 256], sizes = [16, 128], strides = [1, 1]} : vector<16x384xf32> to vector<16x128xf32>
    %365 = arith.mulf %363, %344 : vector<16x128xf32>
    %366 = arith.mulf %362, %361 : vector<16x128xf32>
    %367 = arith.addf %365, %366 : vector<16x128xf32>
    %368 = math.tanh %367 : vector<16x128xf32>
    %369 = arith.mulf %364, %368 : vector<16x128xf32>
    %c5_i32_116 = arith.constant 5 : i32
    %c16_i32_117 = arith.constant 16 : i32
    %370 = arith.muli %c5_i32_116, %c16_i32_117 : i32
    %371 = tpu.assume_multiple %370, 16 : i32
    %372 = arith.index_cast %371 : i32 to index
    %c0_118 = arith.constant 0 : index
    %373 = vector.load %arg16[%372, %c0_118] : memref<128x512xf32, #tpu.memory_space<vmem>>, vector<16x512xf32>
    %374 = arith.truncf %369 : vector<16x128xf32> to vector<16x128xbf16>
    %cst_119 = arith.constant dense<0.000000e+00> : vector<16x512xf32>
    %375 = tpu.matmul %374, %243, %cst_119 {dimension_numbers = #tpu.dot_dimension_numbers<[1], [0], [0], [1], [0, 0, 1, 1], [], []>} : vector<16x128xbf16>, vector<128x512xbf16>, vector<16x512xf32> -> vector<16x512xf32>
    %376 = arith.addf %373, %375 : vector<16x512xf32>
    %377 = vector.extract_strided_slice %376 {offsets = [0, 0], sizes = [16, 384], strides = [1, 1]} : vector<16x512xf32> to vector<16x384xf32>
    %378 = arith.negf %377 : vector<16x384xf32>
    %379 = math.exp %378 : vector<16x384xf32>
    %cst_120 = arith.constant 1.000000e+00 : f32
    %380 = vector.broadcast %cst_120 : f32 to vector<16x384xf32>
    %381 = arith.addf %380, %379 : vector<16x384xf32>
    %382 = arith.divf %380, %381 : vector<16x384xf32>
    %383 = vector.extract_strided_slice %376 {offsets = [0, 384], sizes = [16, 128], strides = [1, 1]} : vector<16x512xf32> to vector<16x128xf32>
    %384 = math.tanh %383 : vector<16x128xf32>
    %385 = vector.extract_strided_slice %382 {offsets = [0, 0], sizes = [16, 128], strides = [1, 1]} : vector<16x384xf32> to vector<16x128xf32>
    %386 = vector.extract_strided_slice %382 {offsets = [0, 128], sizes = [16, 128], strides = [1, 1]} : vector<16x384xf32> to vector<16x128xf32>
    %387 = vector.extract_strided_slice %382 {offsets = [0, 256], sizes = [16, 128], strides = [1, 1]} : vector<16x384xf32> to vector<16x128xf32>
    %388 = arith.mulf %386, %367 : vector<16x128xf32>
    %389 = arith.mulf %385, %384 : vector<16x128xf32>
    %390 = arith.addf %388, %389 : vector<16x128xf32>
    %391 = math.tanh %390 : vector<16x128xf32>
    %392 = arith.mulf %387, %391 : vector<16x128xf32>
    %c6_i32_121 = arith.constant 6 : i32
    %c16_i32_122 = arith.constant 16 : i32
    %393 = arith.muli %c6_i32_121, %c16_i32_122 : i32
    %394 = tpu.assume_multiple %393, 16 : i32
    %395 = arith.index_cast %394 : i32 to index
    %c0_123 = arith.constant 0 : index
    %396 = vector.load %arg16[%395, %c0_123] : memref<128x512xf32, #tpu.memory_space<vmem>>, vector<16x512xf32>
    %397 = arith.truncf %392 : vector<16x128xf32> to vector<16x128xbf16>
    %cst_124 = arith.constant dense<0.000000e+00> : vector<16x512xf32>
    %398 = tpu.matmul %397, %243, %cst_124 {dimension_numbers = #tpu.dot_dimension_numbers<[1], [0], [0], [1], [0, 0, 1, 1], [], []>} : vector<16x128xbf16>, vector<128x512xbf16>, vector<16x512xf32> -> vector<16x512xf32>
    %399 = arith.addf %396, %398 : vector<16x512xf32>
    %400 = vector.extract_strided_slice %399 {offsets = [0, 0], sizes = [16, 384], strides = [1, 1]} : vector<16x512xf32> to vector<16x384xf32>
    %401 = arith.negf %400 : vector<16x384xf32>
    %402 = math.exp %401 : vector<16x384xf32>
    %cst_125 = arith.constant 1.000000e+00 : f32
    %403 = vector.broadcast %cst_125 : f32 to vector<16x384xf32>
    %404 = arith.addf %403, %402 : vector<16x384xf32>
    %405 = arith.divf %403, %404 : vector<16x384xf32>
    %406 = vector.extract_strided_slice %399 {offsets = [0, 384], sizes = [16, 128], strides = [1, 1]} : vector<16x512xf32> to vector<16x128xf32>
    %407 = math.tanh %406 : vector<16x128xf32>
    %408 = vector.extract_strided_slice %405 {offsets = [0, 0], sizes = [16, 128], strides = [1, 1]} : vector<16x384xf32> to vector<16x128xf32>
    %409 = vector.extract_strided_slice %405 {offsets = [0, 128], sizes = [16, 128], strides = [1, 1]} : vector<16x384xf32> to vector<16x128xf32>
    %410 = vector.extract_strided_slice %405 {offsets = [0, 256], sizes = [16, 128], strides = [1, 1]} : vector<16x384xf32> to vector<16x128xf32>
    %411 = arith.mulf %409, %390 : vector<16x128xf32>
    %412 = arith.mulf %408, %407 : vector<16x128xf32>
    %413 = arith.addf %411, %412 : vector<16x128xf32>
    %414 = math.tanh %413 : vector<16x128xf32>
    %415 = arith.mulf %410, %414 : vector<16x128xf32>
    %c7_i32_126 = arith.constant 7 : i32
    %c16_i32_127 = arith.constant 16 : i32
    %416 = arith.muli %c7_i32_126, %c16_i32_127 : i32
    %417 = tpu.assume_multiple %416, 16 : i32
    %418 = arith.index_cast %417 : i32 to index
    %c0_128 = arith.constant 0 : index
    %419 = vector.load %arg16[%418, %c0_128] : memref<128x512xf32, #tpu.memory_space<vmem>>, vector<16x512xf32>
    %420 = arith.truncf %415 : vector<16x128xf32> to vector<16x128xbf16>
    %cst_129 = arith.constant dense<0.000000e+00> : vector<16x512xf32>
    %421 = tpu.matmul %420, %243, %cst_129 {dimension_numbers = #tpu.dot_dimension_numbers<[1], [0], [0], [1], [0, 0, 1, 1], [], []>} : vector<16x128xbf16>, vector<128x512xbf16>, vector<16x512xf32> -> vector<16x512xf32>
    %422 = arith.addf %419, %421 : vector<16x512xf32>
    %423 = vector.extract_strided_slice %422 {offsets = [0, 0], sizes = [16, 384], strides = [1, 1]} : vector<16x512xf32> to vector<16x384xf32>
    %424 = arith.negf %423 : vector<16x384xf32>
    %425 = math.exp %424 : vector<16x384xf32>
    %cst_130 = arith.constant 1.000000e+00 : f32
    %426 = vector.broadcast %cst_130 : f32 to vector<16x384xf32>
    %427 = arith.addf %426, %425 : vector<16x384xf32>
    %428 = arith.divf %426, %427 : vector<16x384xf32>
    %429 = vector.extract_strided_slice %422 {offsets = [0, 384], sizes = [16, 128], strides = [1, 1]} : vector<16x512xf32> to vector<16x128xf32>
    %430 = math.tanh %429 : vector<16x128xf32>
    %431 = vector.extract_strided_slice %428 {offsets = [0, 0], sizes = [16, 128], strides = [1, 1]} : vector<16x384xf32> to vector<16x128xf32>
    %432 = vector.extract_strided_slice %428 {offsets = [0, 128], sizes = [16, 128], strides = [1, 1]} : vector<16x384xf32> to vector<16x128xf32>
    %433 = vector.extract_strided_slice %428 {offsets = [0, 256], sizes = [16, 128], strides = [1, 1]} : vector<16x384xf32> to vector<16x128xf32>
    %434 = arith.mulf %432, %413 : vector<16x128xf32>
    %435 = arith.mulf %431, %430 : vector<16x128xf32>
    %436 = arith.addf %434, %435 : vector<16x128xf32>
    %437 = math.tanh %436 : vector<16x128xf32>
    %438 = arith.mulf %433, %437 : vector<16x128xf32>
    %c8_i32_131 = arith.constant 8 : i32
    %c0_132 = arith.constant 0 : index
    %c1_133 = arith.constant 1 : index
    %c0_134 = arith.constant 0 : index
    %c0_135 = arith.constant 0 : index
    %439 = vector.load %arg13[%c0_132, %c1_133, %c0_134, %c0_135] : memref<1x2x16x128xf32, #tpu.memory_space<vmem>>, vector<1x1x16x128xf32>
    %440 = vector.shape_cast %439 : vector<1x1x16x128xf32> to vector<16x128xf32>
    %441 = vector.shape_cast %438 : vector<16x128xf32> to vector<1x1x16x128xf32>
    tpu.vector_store %arg13[%c0_132, %c1_133, %c0_134, %c0_135], %441 {strides = array<i32>} : memref<1x2x16x128xf32, #tpu.memory_space<vmem>>, vector<1x1x16x128xf32>,
    %c0_136 = arith.constant 0 : index
    %c1_137 = arith.constant 1 : index
    %c0_138 = arith.constant 0 : index
    %c0_139 = arith.constant 0 : index
    %442 = vector.load %arg14[%c0_136, %c1_137, %c0_138, %c0_139] : memref<1x2x16x128xf32, #tpu.memory_space<vmem>>, vector<1x1x16x128xf32>
    %443 = vector.shape_cast %442 : vector<1x1x16x128xf32> to vector<16x128xf32>
    %444 = vector.shape_cast %436 : vector<16x128xf32> to vector<1x1x16x128xf32>
    tpu.vector_store %arg14[%c0_136, %c1_137, %c0_138, %c0_139], %444 {strides = array<i32>} : memref<1x2x16x128xf32, #tpu.memory_space<vmem>>, vector<1x1x16x128xf32>,
    %445 = arith.truncf %438 : vector<16x128xf32> to vector<16x128xbf16>
    %c0_140 = arith.constant 0 : index
    %c0_141 = arith.constant 0 : index
    %446 = vector.load %arg10[%c0_140, %c0_141] : memref<128x128xbf16, #tpu.memory_space<vmem>>, vector<128x128xbf16>
    %cst_142 = arith.constant dense<0.000000e+00> : vector<16x128xf32>
    %447 = tpu.matmul %445, %446, %cst_142 {dimension_numbers = #tpu.dot_dimension_numbers<[1], [0], [0], [1], [0, 0, 1, 1], [], []>} : vector<16x128xbf16>, vector<128x128xbf16>, vector<16x128xf32> -> vector<16x128xf32>
    %c0_143 = arith.constant 0 : index
    %c0_144 = arith.constant 0 : index
    %448 = vector.load %arg11[%c0_143, %c0_144] : memref<1x128xf32, #tpu.memory_space<vmem>>, vector<1x128xf32>
    %449 = vector.broadcast %448 : vector<1x128xf32> to vector<16x128xf32>
    %450 = arith.addf %447, %449 : vector<16x128xf32>
    %cst_145 = arith.constant dense<0xFF800000> : vector<16xf32>
    %451 = vector.multi_reduction <maximumf>, %450, %cst_145 [1] : vector<16x128xf32> to vector<16xf32>
    %452 = vector.shape_cast %451 : vector<16xf32> to vector<16x1xf32>
    %453 = vector.broadcast %452 : vector<16x1xf32> to vector<16x128xf32>
    %454 = arith.subf %450, %453 : vector<16x128xf32>
    %455 = math.exp %454 : vector<16x128xf32>
    %cst_146 = arith.constant dense<0.000000e+00> : vector<16xf32>
    %456 = vector.multi_reduction <add>, %455, %cst_146 [1] : vector<16x128xf32> to vector<16xf32>
    %457 = vector.shape_cast %456 : vector<16xf32> to vector<16x1xf32>
    %458 = vector.broadcast %452 : vector<16x1xf32> to vector<16x128xf32>
    %459 = arith.subf %450, %458 : vector<16x128xf32>
    %460 = math.log %457 : vector<16x1xf32>
    %461 = vector.broadcast %460 : vector<16x1xf32> to vector<16x128xf32>
    %462 = arith.subf %459, %461 : vector<16x128xf32>
    %c0_147 = arith.constant 0 : index
    %c0_148 = arith.constant 0 : index
    %c0_149 = arith.constant 0 : index
    %463 = vector.load %arg12[%c0_147, %c0_148, %c0_149] : memref<1x16x128xf32, #tpu.memory_space<vmem>>, vector<1x16x128xf32>
    %464 = vector.shape_cast %463 : vector<1x16x128xf32> to vector<16x128xf32>
    %465 = vector.shape_cast %462 : vector<16x128xf32> to vector<1x16x128xf32>
    tpu.vector_store %arg12[%c0_147, %c0_148, %c0_149], %465 {strides = array<i32>} : memref<1x16x128xf32, #tpu.memory_space<vmem>>, vector<1x16x128xf32>,
    return
  }
  func.func @transform_0(%arg0: i32) -> (i32, i32, i32) {
    %c0_i32 = arith.constant 0 : i32
    %c0_i32_0 = arith.constant 0 : i32
    %c0_i32_1 = arith.constant 0 : i32
    return %arg0, %c0_i32, %c0_i32_0 : i32, i32, i32
  }
  func.func @transform_1(%arg0: i32) -> (i32, i32, i32, i32) {
    %c0_i32 = arith.constant 0 : i32
    %c0_i32_0 = arith.constant 0 : i32
    %c0_i32_1 = arith.constant 0 : i32
    %c0_i32_2 = arith.constant 0 : i32
    return %arg0, %c0_i32, %c0_i32_0, %c0_i32_1 : i32, i32, i32, i32
  }
  func.func @transform_2(%arg0: i32) -> (i32, i32, i32, i32) {
    %c0_i32 = arith.constant 0 : i32
    %c0_i32_0 = arith.constant 0 : i32
    %c0_i32_1 = arith.constant 0 : i32
    %c0_i32_2 = arith.constant 0 : i32
    return %arg0, %c0_i32, %c0_i32_0, %c0_i32_1 : i32, i32, i32, i32
  }
  func.func @transform_3(%arg0: i32) -> (i32, i32) {
    %c0_i32 = arith.constant 0 : i32
    %c0_i32_0 = arith.constant 0 : i32
    %c0_i32_1 = arith.constant 0 : i32
    return %c0_i32, %c0_i32_0 : i32, i32
  }
  func.func @transform_4(%arg0: i32) -> (i32, i32) {
    %c0_i32 = arith.constant 0 : i32
    %c0_i32_0 = arith.constant 0 : i32
    %c0_i32_1 = arith.constant 0 : i32
    return %c0_i32, %c0_i32_0 : i32, i32
  }
  func.func @transform_5(%arg0: i32) -> (i32, i32) {
    %c0_i32 = arith.constant 0 : i32
    %c0_i32_0 = arith.constant 0 : i32
    %c0_i32_1 = arith.constant 0 : i32
    return %c0_i32, %c0_i32_0 : i32, i32
  }
  func.func @transform_6(%arg0: i32) -> (i32, i32) {
    %c0_i32 = arith.constant 0 : i32
    %c0_i32_0 = arith.constant 0 : i32
    %c0_i32_1 = arith.constant 0 : i32
    return %c0_i32, %c0_i32_0 : i32, i32
  }
  func.func @transform_7(%arg0: i32) -> (i32, i32) {
    %c0_i32 = arith.constant 0 : i32
    %c0_i32_0 = arith.constant 0 : i32
    %c0_i32_1 = arith.constant 0 : i32
    return %c0_i32, %c0_i32_0 : i32, i32
  }
  func.func @transform_8(%arg0: i32) -> (i32, i32) {
    %c0_i32 = arith.constant 0 : i32
    %c0_i32_0 = arith.constant 0 : i32
    %c0_i32_1 = arith.constant 0 : i32
    return %c0_i32, %c0_i32_0 : i32, i32
  }
  func.func @transform_9(%arg0: i32) -> (i32, i32) {
    %c0_i32 = arith.constant 0 : i32
    %c0_i32_0 = arith.constant 0 : i32
    %c0_i32_1 = arith.constant 0 : i32
    return %c0_i32, %c0_i32_0 : i32, i32
  }
  func.func @transform_10(%arg0: i32) -> (i32, i32) {
    %c0_i32 = arith.constant 0 : i32
    %c0_i32_0 = arith.constant 0 : i32
    %c0_i32_1 = arith.constant 0 : i32
    return %c0_i32, %c0_i32_0 : i32, i32
  }
  func.func @transform_11(%arg0: i32) -> (i32, i32, i32) {
    %c0_i32 = arith.constant 0 : i32
    %c0_i32_0 = arith.constant 0 : i32
    %c0_i32_1 = arith.constant 0 : i32
    return %arg0, %c0_i32, %c0_i32_0 : i32, i32, i32
  }
  func.func @transform_12(%arg0: i32) -> (i32, i32, i32, i32) {
    %c0_i32 = arith.constant 0 : i32
    %c0_i32_0 = arith.constant 0 : i32
    %c0_i32_1 = arith.constant 0 : i32
    %c0_i32_2 = arith.constant 0 : i32
    return %arg0, %c0_i32, %c0_i32_0, %c0_i32_1 : i32, i32, i32, i32
  }
  func.func @transform_13(%arg0: i32) -> (i32, i32, i32, i32) {
    %c0_i32 = arith.constant 0 : i32
    %c0_i32_0 = arith.constant 0 : i32
    %c0_i32_1 = arith.constant 0 : i32
    %c0_i32_2 = arith.constant 0 : i32
    return %arg0, %c0_i32, %c0_i32_0, %c0_i32_1 : i32, i32, i32, i32
  }
}

</mosaic_0001>

<bundles_post_ra>
// kernel: rnn_forward.1
= control target key start
LH: loop header
LB: loop body
LE: loop exit
PB: predicated region body
PF: predicated region fallthrough
CT: control target
= control target key end

     0   :  { %v7204_v1 = vmov 0   ;;  %vm204_vm0 = vcmask 261120   ;;  %v104_v60 = vlaneseq  ;;  %vm5300_vm1 = vmmov 0   ;;  %s7186_s3 = inlined_call_operand.vmem [shape: bf16[32,512], index: 3, kind: input, shape index: {}]   ;;  %s7187_s0 = inlined_call_operand.vmem [shape: bf16[1,128,32], index: 0, kind: input, shape index: {}]   ;;  %s7188_s4 = inlined_call_operand.vmem [shape: bf16[128,512], index: 4, kind: input, shape index: {}]   ;;  %s7189_s1 = inlined_call_operand.vmem [shape: f32[1,2,16,128], index: 1, kind: input, shape index: {}]   ;;  %s7190_s5 = inlined_call_operand.vmem [shape: f32[1,512], index: 5, kind: input, shape index: {}]   ;;  %s7191_s2 = inlined_call_operand.vmem [shape: f32[1,2,16,128], index: 2, kind: input, shape index: {}]   ;;  %s7192_s6 = inlined_call_operand.vmem [shape: bf16[128,512], index: 6, kind: input, shape index: {}]   ;;  %s7193_s7 = inlined_call_operand.vmem [shape: bf16[128,512], index: 7, kind: input, shape index: {}]   ;;  %s7194_s13 = inlined_call_operand.vmem [shape: f32[1,2,16,128], index: 13, kind: output, shape index: {2}]   ;;  %s7195_s12 = inlined_call_operand.vmem [shape: f32[1,2,16,128], index: 12, kind: output, shape index: {1}]   ;;  %s7196_s8 = inlined_call_operand.vmem [shape: f32[1,512], index: 8, kind: input, shape index: {}]   ;;  %s7197_s9 = inlined_call_operand.vmem [shape: bf16[128,128], index: 9, kind: input, shape index: {}]   ;;  %s7198_s10 = inlined_call_operand.vmem [shape: f32[1,128], index: 10, kind: input, shape index: {}]   ;;  %s7199_s11 = inlined_call_operand.vmem [shape: f32[1,16,128], index: 11, kind: output, shape index: {0}]  }
   0x1   :  { %v4542_v0 = vld [vmem:[%s7186_s3 + $0x4] ss:$16 sps:$4 sm:$0xff]   ;;  %261 = vmatprep.mubr.bf16.mxu0 %v7204_v1  ;;  %321 = vmatprep.mubr.bf16.mxu1 %v7204_v1  ;;  %v4544_v2 = vld [vmem:[%s7186_s3] ss:$16 sps:$4 sm:$0xff]   ;;  %v4552_v6 = vld [vmem:[%s7186_s3 + $0xc] ss:$16 sps:$4 sm:$0xff]  }
   0x2   :  { %229 = vmatprep.subr.bf16.mxu0 %v4542_v0  ;;  %4279 = vmatprep.subr.bf16.mxu1 %v4542_v0  ;;  %v4545_v3 = vld [vmem:[%s7186_s3 + $0x24] ss:$16 sps:$4 sm:$0xff]   ;;  %v4547_v4 = vld [vmem:[%s7186_s3 + $0x20] ss:$16 sps:$4 sm:$0xff]   ;;  %v4550_v8 = vld [vmem:[%s7186_s3 + $0x8] ss:$16 sps:$4 sm:$0xff]  }
   0x3   :  { %230 = vmatpush1.bf16.msra.mxu0 %v4544_v2  ;;  %4281 = vmatpush1.bf16.msra.mxu1 %v4544_v2  ;;  %v4548_v5 = vld [vmem:[%s7187_s0] sm:$0xff]   ;;  %v5394_v7 = vld [vmem:[%s7187_s0 + $0x30] sm:$0xff]   ;;  %v4557_v9 = vld [vmem:[%s7186_s3 + $0x2c] ss:$16 sps:$4 sm:$0xff]   ;;  %v5711_v61 = vshrl.u32 %v104_v60, 7 }
   0x4   :  { %231 = vmatprep.subr.bf16.mxu0 %v4545_v3  ;;  %4280 = vmatprep.subr.bf16.mxu1 %v4545_v3  ;;  %v4555_v10 = vld [vmem:[%s7186_s3 + $0x28] ss:$16 sps:$4 sm:$0xff]   ;;  %v5412_v11 = vld [vmem:[%s7188_s4 + $0x4] ss:$16 sps:$4 sm:$0xff]   ;;  %v5421_v13 = vld [vmem:[%s7188_s4 + $0xc] ss:$16 sps:$4 sm:$0xff]  }
   0x5   :  { %v4553_v12 = vld [vmem:[%s7187_s0 + $0x8] sm:$0xff]   ;;  %v5426_v14 = vld [vmem:[%s7188_s4] ss:$16 sps:$4 sm:$0xff]   ;;  %v5432_v15 = vld [vmem:[%s7188_s4 + $0x24] ss:$16 sps:$4 sm:$0xff]   ;;  %7214 = vst [vmem:[#allocation8_spill] sm:$0xff] %v5711_v61 }
   0x6   :  { %v5437_v16 = vld [vmem:[%s7187_s0 + $0x38] sm:$0xff]   ;;  %v5445_v17 = vld [vmem:[%s7188_s4 + $0x20] ss:$16 sps:$4 sm:$0xff]   ;;  %v5450_v18 = vld [vmem:[%s7188_s4 + $0x44] ss:$16 sps:$4 sm:$0xff]   ;;  %v7203_v63 = vsub.s32 0, %v5711_v61 }
   0x7   :  { %232 = vmatpush1.bf16.msra.mxu0 %v4547_v4  ;;  %4282 = vmatpush1.bf16.msra.mxu1 %v4547_v4  ;;  %v5461_v19 = vld [vmem:[%s7188_s4 + $0x40] ss:$16 sps:$4 sm:$0xff]   ;;  %v5467_v20 = vld [vmem:[%s7188_s4 + $0x64] ss:$16 sps:$4 sm:$0xff]   ;;  %v5475_v22 = vld [vmem:[%s7188_s4 + $0x8] ss:$16 sps:$4 sm:$0xff]  }
   0x8   :  { %342 = vmatprep.subr.bf16.mxu1 %v4552_v6  ;;  %691 = vmatprep.subr.bf16.mxu0 %v5412_v11  ;;  %v4558_v21 = vld [vmem:[%s7187_s0 + $0x10] sm:$0xff]   ;;  %v5480_v23 = vld [vmem:[%s7188_s4 + $0x2c] ss:$16 sps:$4 sm:$0xff]   ;;  %v5501_v26 = vld [vmem:[%s7188_s4 + $0x28] ss:$16 sps:$4 sm:$0xff]   ;;  %v7202_v3 = vsub.s32 1, %v5711_v61 }
   0x9   :  { %v5487_v24 = vld [vmem:[%s7188_s4 + $0x60] ss:$16 sps:$4 sm:$0xff]   ;;  %v5494_v25 = vld [vmem:[%s7188_s4 + $0x84] ss:$16 sps:$4 sm:$0xff]   ;;  %v5508_v27 = vld [vmem:[%s7188_s4 + $0x4c] ss:$16 sps:$4 sm:$0xff]  }
   0xa   :  { %4025 = vmatmul.mubr.msk.bf16.vlgmr.msra.gmra.mrb[0].mxu0 %vm204_vm0, %v4548_v5  ;;  %4031 = vmatmul.mubr.msk.bf16.vlgmr.msra.gmra.mrb[0].mxu1 %vm204_vm0, %v5394_v7  ;;  %v5514_v28 = vld [vmem:[%s7188_s4 + $0x80] ss:$16 sps:$4 sm:$0xff]   ;;  %v4568_v29 = vld [vmem:[%s7187_s0 + $0x18] sm:$0xff]   ;;  %v5530_v31 = vld [vmem:[%s7188_s4 + $0xa4] ss:$16 sps:$4 sm:$0xff]  }
   0xb   :  { %343 = vmatpush1.bf16.msra.mxu1 %v4550_v8  ;;  %271 = vmatprep.mubr.bf16.mxu0 %v7204_v1  ;;  %v5525_v30 = vld [vmem:[%s7188_s4 + $0x48] ss:$16 sps:$4 sm:$0xff]   ;;  %v5536_v32 = vld [vmem:[%s7188_s4 + $0xa0] ss:$16 sps:$4 sm:$0xff]   ;;  %v5541_v33 = vld [vmem:[%s7188_s4 + $0x6c] ss:$16 sps:$4 sm:$0xff]  }
   0xc   :  { %331 = vmatprep.mubr.bf16.mxu1 %v7204_v1  ;;  %344 = vmatprep.subr.bf16.mxu1 %v4557_v9  ;;  %v5548_v34 = vld [vmem:[%s7188_s4 + $0xc4] ss:$16 sps:$4 sm:$0xff]   ;;  %v5557_v35 = vld [vmem:[%s7188_s4 + $0x68] ss:$16 sps:$4 sm:$0xff]   ;;  %v5564_v36 = vld [vmem:[%s7188_s4 + $0xc0] ss:$16 sps:$4 sm:$0xff]  }
   0xd   :  { %692 = vmatpush1.bf16.msra.mxu0 %v5426_v14  ;;  %v5569_v37 = vld [vmem:[%s7188_s4 + $0x8c] ss:$16 sps:$4 sm:$0xff]   ;;  %v4578_v38 = vld [vmem:[%s7187_s0 + $0x20] sm:$0xff]   ;;  %v5584_v40 = vld [vmem:[%s7188_s4 + $0x88] ss:$16 sps:$4 sm:$0xff]  }
   0xe   :  { %693 = vmatprep.subr.bf16.mxu0 %v5432_v15  ;;  %v5579_v39 = vld [vmem:[%s7188_s4 + $0xe4] ss:$16 sps:$4 sm:$0xff]   ;;  %v5590_v41 = vld [vmem:[%s7188_s4 + $0xe0] ss:$16 sps:$4 sm:$0xff]   ;;  %v5596_v42 = vld [vmem:[%s7188_s4 + $0xac] ss:$16 sps:$4 sm:$0xff]  }
   0xf   :  { %345 = vmatpush1.bf16.msra.mxu1 %v4555_v10  ;;  %v5607_v43 = vld [vmem:[%s7188_s4 + $0xa8] ss:$16 sps:$4 sm:$0xff]   ;;  %v5614_v44 = vld [vmem:[%s7188_s4 + $0xcc] ss:$16 sps:$4 sm:$0xff]   ;;  %v74_v48 = vld [vmem:[%s7189_s1] sm:$0xff] }
  0x10   :  { %734 = vmatprep.subr.bf16.mxu1 %v5421_v13  ;;  %v4588_v45 = vld [vmem:[%s7187_s0 + $0x28] sm:$0xff]   ;;  %v102_v2 = vld [vmem:[%s7190_s5] sm:$0xf] }
  0x11   :  { %694 = vmatpush1.bf16.msra.mxu0 %v5445_v17  ;;  %v5624_v46 = vld [vmem:[%s7188_s4 + $0xc8] ss:$16 sps:$4 sm:$0xff]   ;;  %v5630_v47 = vld [vmem:[%s7188_s4 + $0xec] ss:$16 sps:$4 sm:$0xff]   ;;  %v5720_v6 = vrot.slane %v102_v2, %v7203_v63 }
  0x12   :  { %4026 = vmatmul.mubr.msk.bf16.gmra.mrb[4].mxu0 %vm204_vm0, %v4553_v12  ;;  %4032 = vmatmul.mubr.msk.bf16.gmra.mrb[4].mxu1 %vm204_vm0, %v5437_v16  ;;  %v75_v49 = vld [vmem:[%s7189_s1 + $0x8] sm:$0xff] }
  0x13   :  { %281 = vmatprep.mubr.bf16.mxu0 %v7204_v1  ;;  %374 = vmatprep.mubr.bf16.mxu1 %v7204_v1  ;;  %v5646_v50 = vld [vmem:[%s7188_s4 + $0xe8] ss:$16 sps:$4 sm:$0xff]   ;;  %v530_v51 = vpack.c.bf16 %v75_v49, %v74_v48  ;;  %v7201_v48 = vsub.s32 2, %v5711_v61 }
  0x14   :  { %695 = vmatprep.subr.bf16.mxu0 %v5450_v18 }
  0x15   :  { %696 = vmatpush1.bf16.msra.mxu0 %v5461_v19 }
  0x16   :  { %697 = vmatprep.subr.bf16.mxu0 %v5467_v20 }
  0x19   :  { %698 = vmatpush1.bf16.msra.mxu0 %v5487_v24 }
  0x1a   :  { %4027 = vmatmul.mubr.msk.bf16.gmra.mrb[8].mxu0 %vm204_vm0, %v4558_v21  ;;  %4033 = vmatmul.mubr.msk.bf16.vlgmr.msra.gmra.mrb[8].mxu1 %vm204_vm0, %v4548_v5 }
  0x1b   :  { %735 = vmatpush1.bf16.msra.mxu1 %v5475_v22  ;;  %291 = vmatprep.mubr.bf16.mxu0 %v7204_v1 }
  0x1c   :  { %384 = vmatprep.mubr.bf16.mxu1 %v7204_v1  ;;  %736 = vmatprep.subr.bf16.mxu1 %v5480_v23 }
  0x1d   :  { %699 = vmatprep.subr.bf16.mxu0 %v5494_v25 }
  0x1e   :  { %700 = vmatpush1.bf16.msra.mxu0 %v5514_v28 }
  0x1f   :  { %737 = vmatpush1.bf16.msra.mxu1 %v5501_v26  ;;  %701 = vmatprep.subr.bf16.mxu0 %v5530_v31 }
  0x20   :  { %738 = vmatprep.subr.bf16.mxu1 %v5508_v27 }
  0x22   :  { %4028 = vmatmul.mubr.msk.bf16.gmra.mrb[12].mxu0 %vm204_vm0, %v4568_v29  ;;  %4034 = vmatmul.mubr.msk.bf16.gmra.mrb[12].mxu1 %vm204_vm0, %v4553_v12 }
  0x23   :  { %301 = vmatprep.mubr.bf16.mxu0 %v7204_v1  ;;  %394 = vmatprep.mubr.bf16.mxu1 %v7204_v1 }
  0x24   :  { %739 = vmatpush1.bf16.msra.mxu1 %v5525_v30  ;;  %702 = vmatpush1.bf16.msra.mxu0 %v5536_v32 }
  0x25   :  { %740 = vmatprep.subr.bf16.mxu1 %v5541_v33  ;;  %703 = vmatprep.subr.bf16.mxu0 %v5548_v34 }
  0x28   :  { %741 = vmatpush1.bf16.msra.mxu1 %v5557_v35  ;;  %704 = vmatpush1.bf16.msra.mxu0 %v5564_v36 }
  0x29   :  { %742 = vmatprep.subr.bf16.mxu1 %v5569_v37  ;;  %705 = vmatprep.subr.bf16.mxu0 %v5579_v39 }
  0x2a   :  { %4029 = vmatmul.mubr.msk.bf16.gmra.mrb[16].mxu0 %vm204_vm0, %v4578_v38  ;;  %4035 = vmatmul.mubr.msk.bf16.gmra.mrb[16].mxu1 %vm204_vm0, %v4558_v21 }
  0x2b   :  { %311 = vmatprep.mubr.bf16.mxu0 %v7204_v1  ;;  %404 = vmatprep.mubr.bf16.mxu1 %v7204_v1 }
  0x2c   :  { %743 = vmatpush1.bf16.msra.mxu1 %v5584_v40  ;;  %706 = vmatpush1.bf16.msra.mxu0 %v5590_v41 }
  0x2d   :  { %744 = vmatprep.subr.bf16.mxu1 %v5596_v42  ;;  %846 = vmatprep.subr.bf16.mxu0 %v5412_v11 }
  0x30   :  { %745 = vmatpush1.bf16.msra.mxu1 %v5607_v43 }
  0x31   :  { %746 = vmatprep.subr.bf16.mxu1 %v5614_v44 }
  0x32   :  { %4030 = vmatmul.mubr.msk.bf16.gmra.mrb[20].mxu0 %vm204_vm0, %v4588_v45  ;;  %4036 = vmatmul.mubr.msk.bf16.gmra.mrb[20].mxu1 %vm204_vm0, %v4568_v29 }
  0x33   :  { %414 = vmatprep.mubr.bf16.mxu1 %v7204_v1  ;;  %723 = vmatprep.mubr.bf16.mxu0 %v7204_v1 }
  0x34   :  { %747 = vmatpush1.bf16.msra.mxu1 %v5624_v46 }
  0x35   :  { %748 = vmatprep.subr.bf16.mxu1 %v5630_v47 }
  0x38   :  { %749 = vmatpush1.bf16.msra.mxu1 %v5646_v50 }
  0x39   :  { %889 = vmatprep.subr.bf16.mxu1 %v5421_v13 }
  0x3a   :  { %4037 = vmatmul.mubr.msk.bf16.gmra.mrb[24].mxu1 %vm204_vm0, %v4578_v38  ;;  %724 = vmatmul.mubr.bf16.vlgmr.msra.gmra.mrb[0].mxu0 %v530_v51 }
  0x3b   :  { %424 = vmatprep.mubr.bf16.mxu1 %v7204_v1  ;;  %847 = vmatpush1.bf16.msra.mxu0 %v5426_v14 }
  0x3c   :  { %848 = vmatprep.subr.bf16.mxu0 %v5432_v15  ;;  %878 = vmatprep.mubr.bf16.mxu0 %v7204_v1 }
  0x3f   :  { %849 = vmatpush1.bf16.msra.mxu0 %v5445_v17 }
  0x40   :  { %850 = vmatprep.subr.bf16.mxu0 %v5450_v18 }
  0x42   :  { %4038 = vmatmul.mubr.msk.bf16.gmra.mrb[28].mxu1 %vm204_vm0, %v4588_v45 }
  0x43   :  { %434 = vmatprep.mubr.bf16.mxu1 %v7204_v1  ;;  %851 = vmatpush1.bf16.msra.mxu0 %v5461_v19 }
  0x44   :  { %852 = vmatprep.subr.bf16.mxu0 %v5467_v20 }
  0x47   :  { %853 = vmatpush1.bf16.msra.mxu0 %v5487_v24 }
  0x48   :  { %854 = vmatprep.subr.bf16.mxu0 %v5494_v25 }
  0x4a   :  { %4039 = vmatmul.mubr.msk.bf16.gmra.mrb[32].mxu1 %vm204_vm0, %v5394_v7  ;;  %v5724_v7 = vrot.slane %v102_v2, %v7202_v3 }
  0x4b   :  { %444 = vmatprep.mubr.bf16.mxu1 %v7204_v1  ;;  %855 = vmatpush1.bf16.msra.mxu0 %v5514_v28 }
  0x4c   :  { %856 = vmatprep.subr.bf16.mxu0 %v5530_v31 }
  0x4f   :  { %857 = vmatpush1.bf16.msra.mxu0 %v5536_v32 }
  0x50   :  { %858 = vmatprep.subr.bf16.mxu0 %v5548_v34 }
  0x52   :  { %4040 = vmatmul.mubr.msk.bf16.gmra.mrb[36].mxu1 %vm204_vm0, %v5437_v16 }
  0x53   :  { %766 = vmatprep.mubr.bf16.mxu1 %v7204_v1  ;;  %859 = vmatpush1.bf16.msra.mxu0 %v5564_v36 }
  0x54   :  { %860 = vmatprep.subr.bf16.mxu0 %v5579_v39 }
  0x57   :  { %861 = vmatpush1.bf16.msra.mxu0 %v5590_v41 }
  0x58   :  { %1002 = vmatprep.subr.bf16.mxu0 %v5412_v11 }
  0x5a   :  { %767 = vmatmul.mubr.bf16.vlgmr.msra.gmra.mrb[8].mxu1 %v530_v51  ;;  %v7200_v51 = vsub.s32 3, %v5711_v61 }
  0x5b   :  { %890 = vmatpush1.bf16.msra.mxu1 %v5475_v22  ;;  %921 = vmatprep.mubr.bf16.mxu1 %v7204_v1 }
  0x5c   :  { %891 = vmatprep.subr.bf16.mxu1 %v5480_v23 }
  0x5f   :  { %892 = vmatpush1.bf16.msra.mxu1 %v5501_v26 }
  0x60   :  { %893 = vmatprep.subr.bf16.mxu1 %v5508_v27 }
  0x63   :  { %894 = vmatpush1.bf16.msra.mxu1 %v5525_v30 }
  0x64   :  { %895 = vmatprep.subr.bf16.mxu1 %v5541_v33 }
  0x67   :  { %896 = vmatpush1.bf16.msra.mxu1 %v5557_v35 }
  0x68   :  { %897 = vmatprep.subr.bf16.mxu1 %v5569_v37 }
  0x6b   :  { %898 = vmatpush1.bf16.msra.mxu1 %v5584_v40 }
  0x6c   :  { %899 = vmatprep.subr.bf16.mxu1 %v5596_v42 }
  0x6f   :  { %900 = vmatpush1.bf16.msra.mxu1 %v5607_v43 }
  0x70   :  { %901 = vmatprep.subr.bf16.mxu1 %v5614_v44 }
  0x73   :  { %902 = vmatpush1.bf16.msra.mxu1 %v5624_v46 }
  0x74   :  { %903 = vmatprep.subr.bf16.mxu1 %v5630_v47 }
  0x77   :  { %904 = vmatpush1.bf16.msra.mxu1 %v5646_v50 }
  0x78   :  { %1045 = vmatprep.subr.bf16.mxu1 %v5421_v13 }
  0xdd   :  { %v5695_v52 = vpop.f32.mrb[0].mxu1 }
  0xde   :  { %v5697_v53 = vpop.f32.mrb[1].mxu1 }
  0xdf   :  { %v5699_v54 = vpop.f32.mrb[2].mxu1 }
  0xe0   :  { %v5701_v55 = vpop.f32.mrb[3].mxu1 }
  0xe5   :  { %v5703_v56 = vpop.f32.mrb[4].mxu1 }
  0xe6   :  { %7210 = vst [vmem:[#allocation4_spill] sm:$0xff] %v5703_v56  ;;  %v5705_v57 = vpop.f32.mrb[5].mxu1 }
  0xe7   :  { %7211 = vst [vmem:[#allocation5_spill] sm:$0xff] %v5705_v57  ;;  %v5707_v58 = vpop.f32.mrb[6].mxu1 }
  0xe8   :  { %7212 = vst [vmem:[#allocation6_spill] sm:$0xff] %v5707_v58  ;;  %v5709_v59 = vpop.f32.mrb[7].mxu1 }
  0xe9   :  { %7213 = vst [vmem:[#allocation7_spill] sm:$0xff] %v5709_v59 }
 0x10d   :  { %v725_v62 = vpop.f32.mrb[0].mxu0 }
 0x10e   :  { %v727_v0 = vpop.f32.mrb[1].mxu0  ;;  %v4283_v8 = vadd.f32 %v725_v62, %v5720_v6 }
 0x10f   :  { %v729_v4 = vpop.f32.mrb[2].mxu0  ;;  %v4284_v9 = vadd.f32 %v727_v0, %v5724_v7 }
 0x110   :  { %v731_v5 = vpop.f32.mrb[3].mxu0  ;;  %v4285_v10 = vadd.f32 %v729_v4, %v5720_v6  ;;  %v4073_v16 = vmul.f32 -1.442695, %v4283_v8 }
 0x111   :  { %v4286_v12 = vadd.f32 %v731_v5, %v5724_v7  ;;  %v4074_v21 = vmul.f32 -1.442695, %v4284_v9  ;;  %v5734_v5 = vrot.slane %v102_v2, %v7201_v48  ;;  %v5738_v9 = vrot.slane %v102_v2, %v7200_v51 }
 0x112   :  { %v4076_v29 = vmul.f32 -1.442695, %v4285_v10  ;;  %4714 = vpow2.f32 %v4073_v16 }
 0x113   :  { %v4077_v38 = vmul.f32 -1.442695, %v4286_v12  ;;  %4716 = vpow2.f32 %v4074_v21 }
 0x114   :  { %4718 = vpow2.f32 %v4076_v29 }
 0x115   :  { %4720 = vpow2.f32 %v4077_v38 }
 0x11c   :  { %v4715_v45 = vpop.eup %4714 }
 0x11d   :  { %v4717_v49 = vpop.eup %4716  ;;  %v803_v0 = vadd.f32 1.0, %v4715_v45 }
 0x11e   :  { %v4719_v60 = vpop.eup %4718  ;;  %v804_v4 = vadd.f32 1.0, %v4717_v49 }
 0x11f   :  { %v4721_v62 = vpop.eup %4720  ;;  %v806_v8 = vadd.f32 1.0, %v4719_v60  ;;  %4722 = vrcp.f32 %v803_v0 }
 0x120   :  { %v807_v10 = vadd.f32 1.0, %v4721_v62  ;;  %4724 = vrcp.f32 %v804_v4 }
 0x121   :  { %4726 = vrcp.f32 %v806_v8  ;;  %v76_v8 = vld [vmem:[%s7191_s2] sm:$0xff] }
 0x122   :  { %4728 = vrcp.f32 %v807_v10 }
 0x129   :  { %v4723_v0 = vpop.eup %4722 }
 0x12a   :  { %v4725_v4 = vpop.eup %4724 }
 0x12d   :  { %v768_v12 = vpop.f32.mrb[8].mxu1 }
 0x12e   :  { %v4323_v16 = vadd.f32 %v768_v12, %v5734_v5  ;;  %v770_v21 = vpop.f32.mrb[9].mxu1  ;;  %v4727_v12 = vpop.eup %4726 }
 0x12f   :  { %v4324_v29 = vadd.f32 %v770_v21, %v5738_v9  ;;  %v772_v38 = vpop.f32.mrb[10].mxu1  ;;  %v4729_v21 = vpop.eup %4728 }
 0x130   :  { %v4075_v45 = vmul.f32 -1.442695, %v4323_v16  ;;  %v4325_v49 = vadd.f32 %v772_v38, %v5734_v5  ;;  %v774_v60 = vpop.f32.mrb[11].mxu1  ;;  %v77_v16 = vld [vmem:[%s7191_s2 + $0x8] sm:$0xff]  ;;  %v823_v38 = vmul.f32 %v4725_v4, %v76_v8 }
 0x131   :  { %4730 = vtanh.f32 %v4324_v29  ;;  %v4326_v2 = vadd.f32 %v774_v60, %v5738_v9 }
 0x132   :  { %4732 = vpow2.f32 %v4075_v45  ;;  %v4078_v62 = vmul.f32 -1.442695, %v4325_v49 }
 0x133   :  { %4734 = vtanh.f32 %v4326_v2 }
 0x134   :  { %4736 = vpow2.f32 %v4078_v62  ;;  %v824_v62 = vmul.f32 %v4729_v21, %v77_v16 }
 0x13b   :  { %v4731_v10 = vpop.eup %4730 }
 0x13c   :  { %v4733_v29 = vpop.eup %4732  ;;  %v825_v60 = vmul.f32 %v4731_v10, %v4723_v0 }
 0x13d   :  { %v4735_v45 = vpop.eup %4734  ;;  %v805_v49 = vadd.f32 1.0, %v4733_v29 }
 0x13e   :  { %v4737_v2 = vpop.eup %4736  ;;  %v5750_v51 = vadd.f32 %v825_v60, %v823_v38  ;;  %v826_v48 = vmul.f32 %v4735_v45, %v4727_v12 }
 0x13f   :  { %4738 = vrcp.f32 %v805_v49  ;;  %v808_v3 = vadd.f32 1.0, %v4737_v2 }
 0x140   :  { %4740 = vtanh.f32 %v5750_v51  ;;  %v5753_v63 = vadd.f32 %v826_v48, %v824_v62 }
 0x141   :  { %4742 = vrcp.f32 %v808_v3  ;;  %v7215_v3 = vmov 0  }
 0x142   :  { %4744 = vtanh.f32 %v5753_v63 }
 0x149   :  { %v4739_v1 = vpop.eup %4738 }
 0x14a   :  { %v4741_v61 = vpop.eup %4740 }
 0x14b   :  { %v4743_v4 = vpop.eup %4742  ;;  %v831_v8 = vmul.f32 %v4741_v61, %v4739_v1 }
 0x14c   :  { %v4745_v0 = vpop.eup %4744 }
 0x14d   :  { %v832_v10 = vmul.f32 %v4745_v0, %v4743_v4 }
 0x14f   :  { %v5756_v29 = vpack.c.bf16 %v832_v10, %v831_v8 }
 0x151   :  { %879 = vmatmul.mubr.bf16.vlgmr.msra.gmra.mrb[4].mxu0 %v5756_v29  ;;  %922 = vmatmul.mubr.bf16.vlgmr.msra.gmra.mrb[12].mxu1 %v5756_v29 }
 0x152   :  { %1003 = vmatpush1.bf16.msra.mxu0 %v5426_v14  ;;  %1046 = vmatpush1.bf16.msra.mxu1 %v5475_v22 }
 0x153   :  { %1004 = vmatprep.subr.bf16.mxu0 %v5432_v15  ;;  %1047 = vmatprep.subr.bf16.mxu1 %v5480_v23 }
 0x154   :  { %1034 = vmatprep.mubr.bf16.mxu0 %v7215_v3  ;;  %1077 = vmatprep.mubr.bf16.mxu1 %v7215_v3 }
 0x156   :  { %1005 = vmatpush1.bf16.msra.mxu0 %v5445_v17  ;;  %1048 = vmatpush1.bf16.msra.mxu1 %v5501_v26 }
 0x157   :  { %1006 = vmatprep.subr.bf16.mxu0 %v5450_v18  ;;  %1049 = vmatprep.subr.bf16.mxu1 %v5508_v27 }
 0x15a   :  { %1007 = vmatpush1.bf16.msra.mxu0 %v5461_v19  ;;  %1050 = vmatpush1.bf16.msra.mxu1 %v5525_v30 }
 0x15b   :  { %1008 = vmatprep.subr.bf16.mxu0 %v5467_v20  ;;  %1051 = vmatprep.subr.bf16.mxu1 %v5541_v33 }
 0x15e   :  { %1009 = vmatpush1.bf16.msra.mxu0 %v5487_v24  ;;  %1052 = vmatpush1.bf16.msra.mxu1 %v5557_v35 }
 0x15f   :  { %1010 = vmatprep.subr.bf16.mxu0 %v5494_v25  ;;  %1053 = vmatprep.subr.bf16.mxu1 %v5569_v37 }
 0x162   :  { %1011 = vmatpush1.bf16.msra.mxu0 %v5514_v28  ;;  %1054 = vmatpush1.bf16.msra.mxu1 %v5584_v40 }
 0x163   :  { %1012 = vmatprep.subr.bf16.mxu0 %v5530_v31  ;;  %1055 = vmatprep.subr.bf16.mxu1 %v5596_v42 }
 0x166   :  { %1013 = vmatpush1.bf16.msra.mxu0 %v5536_v32  ;;  %1056 = vmatpush1.bf16.msra.mxu1 %v5607_v43 }
 0x167   :  { %1014 = vmatprep.subr.bf16.mxu0 %v5548_v34  ;;  %1057 = vmatprep.subr.bf16.mxu1 %v5614_v44 }
 0x16a   :  { %1015 = vmatpush1.bf16.msra.mxu0 %v5564_v36  ;;  %1058 = vmatpush1.bf16.msra.mxu1 %v5624_v46 }
 0x16b   :  { %1016 = vmatprep.subr.bf16.mxu0 %v5579_v39  ;;  %1059 = vmatprep.subr.bf16.mxu1 %v5630_v47 }
 0x16e   :  { %1017 = vmatpush1.bf16.msra.mxu0 %v5590_v41  ;;  %1060 = vmatpush1.bf16.msra.mxu1 %v5646_v50 }
 0x16f   :  { %1158 = vmatprep.subr.bf16.mxu0 %v5412_v11  ;;  %1201 = vmatprep.subr.bf16.mxu1 %v5421_v13 }
 0x224   :  { %v880_v1 = vpop.f32.mrb[4].mxu0  ;;  %v923_v61 = vpop.f32.mrb[12].mxu1 }
 0x225   :  { %v4287_v48 = vadd.f32 %v880_v1, %v5720_v6  ;;  %v882_v12 = vpop.f32.mrb[5].mxu0  ;;  %v925_v21 = vpop.f32.mrb[13].mxu1  ;;  %v4327_v1 = vadd.f32 %v923_v61, %v5734_v5 }
 0x226   :  { %v4288_v16 = vadd.f32 %v882_v12, %v5724_v7  ;;  %v884_v38 = vpop.f32.mrb[6].mxu0  ;;  %v927_v60 = vpop.f32.mrb[14].mxu1  ;;  %v4328_v12 = vadd.f32 %v925_v21, %v5738_v9 }
 0x227   :  { %v4079_v45 = vmul.f32 -1.442695, %v4287_v48  ;;  %v4289_v49 = vadd.f32 %v884_v38, %v5720_v6  ;;  %v886_v2 = vpop.f32.mrb[7].mxu0  ;;  %v929_v62 = vpop.f32.mrb[15].mxu1  ;;  %v4329_v59 = vadd.f32 %v927_v60, %v5734_v5  ;;  %v4081_v48 = vmul.f32 -1.442695, %v4327_v1 }
 0x228   :  { %v4080_v4 = vmul.f32 -1.442695, %v4288_v16  ;;  %v4290_v0 = vadd.f32 %v886_v2, %v5724_v7  ;;  %v4330_v16 = vadd.f32 %v929_v62, %v5738_v9 }
 0x229   :  { %4746 = vpow2.f32 %v4079_v45  ;;  %v4082_v8 = vmul.f32 -1.442695, %v4289_v49  ;;  %v4084_v58 = vmul.f32 -1.442695, %v4329_v59 }
 0x22a   :  { %v4083_v10 = vmul.f32 -1.442695, %v4290_v0  ;;  %4748 = vpow2.f32 %v4080_v4 }
 0x22b   :  { %4750 = vpow2.f32 %v4082_v8 }
 0x22c   :  { %4752 = vpow2.f32 %v4083_v10 }
 0x22d   :  { %4754 = vtanh.f32 %v4328_v12 }
 0x22e   :  { %4756 = vpow2.f32 %v4081_v48 }
 0x22f   :  { %4758 = vpow2.f32 %v4084_v58 }
 0x233   :  { %v4747_v38 = vpop.eup %4746 }
 0x234   :  { %v958_v57 = vadd.f32 1.0, %v4747_v38  ;;  %v4749_v45 = vpop.eup %4748 }
 0x235   :  { %v4751_v49 = vpop.eup %4750  ;;  %v959_v2 = vadd.f32 1.0, %v4749_v45 }
 0x236   :  { %4760 = vrcp.f32 %v958_v57  ;;  %v961_v61 = vadd.f32 1.0, %v4751_v49  ;;  %v4753_v4 = vpop.eup %4752 }
 0x237   :  { %4762 = vtanh.f32 %v4330_v16  ;;  %v962_v60 = vadd.f32 1.0, %v4753_v4  ;;  %v4755_v21 = vpop.eup %4754 }
 0x238   :  { %4764 = vrcp.f32 %v959_v2  ;;  %v4757_v59 = vpop.eup %4756 }
 0x239   :  { %4766 = vrcp.f32 %v961_v61  ;;  %v4759_v0 = vpop.eup %4758  ;;  %v960_v48 = vadd.f32 1.0, %v4757_v59 }
 0x23a   :  { %4768 = vrcp.f32 %v962_v60  ;;  %v963_v16 = vadd.f32 1.0, %v4759_v0 }
 0x23b   :  { %4770 = vrcp.f32 %v960_v48 }
 0x240   :  { %v4761_v8 = vpop.eup %4760 }
 0x241   :  { %v4763_v10 = vpop.eup %4762  ;;  %v980_v62 = vmul.f32 %v4761_v8, %v4755_v21 }
 0x242   :  { %v4765_v1 = vpop.eup %4764 }
 0x243   :  { %v4767_v12 = vpop.eup %4766  ;;  %v978_v58 = vmul.f32 %v4765_v1, %v5750_v51 }
 0x244   :  { %v981_v57 = vmul.f32 %v4767_v12, %v4763_v10  ;;  %v4769_v38 = vpop.eup %4768 }
 0x245   :  { %v5803_v45 = vadd.f32 %v980_v62, %v978_v58  ;;  %v979_v49 = vmul.f32 %v4769_v38, %v5753_v63  ;;  %v4771_v61 = vpop.eup %4770 }
 0x247   :  { %4772 = vtanh.f32 %v5803_v45  ;;  %v5807_v2 = vadd.f32 %v981_v57, %v979_v49 }
 0x248   :  { %4774 = vrcp.f32 %v963_v16 }
 0x249   :  { %4776 = vtanh.f32 %v5807_v2 }
 0x251   :  { %v4773_v4 = vpop.eup %4772 }
 0x252   :  { %v4775_v60 = vpop.eup %4774  ;;  %v986_v51 = vmul.f32 %v4773_v4, %v4771_v61 }
 0x253   :  { %v4777_v21 = vpop.eup %4776 }
 0x254   :  { %v987_v59 = vmul.f32 %v4777_v21, %v4775_v60 }
 0x256   :  { %v5810_v8 = vpack.c.bf16 %v987_v59, %v986_v51 }
 0x258   :  { %1035 = vmatmul.mubr.bf16.vlgmr.msra.gmra.mrb[8].mxu0 %v5810_v8  ;;  %1078 = vmatmul.mubr.bf16.vlgmr.msra.gmra.mrb[16].mxu1 %v5810_v8 }
 0x259   :  { %1159 = vmatpush1.bf16.msra.mxu0 %v5426_v14  ;;  %1202 = vmatpush1.bf16.msra.mxu1 %v5475_v22 }
 0x25a   :  { %1160 = vmatprep.subr.bf16.mxu0 %v5432_v15  ;;  %1203 = vmatprep.subr.bf16.mxu1 %v5480_v23 }
 0x25b   :  { %1190 = vmatprep.mubr.bf16.mxu0 %v7215_v3  ;;  %1233 = vmatprep.mubr.bf16.mxu1 %v7215_v3 }
 0x25d   :  { %1161 = vmatpush1.bf16.msra.mxu0 %v5445_v17  ;;  %1204 = vmatpush1.bf16.msra.mxu1 %v5501_v26 }
 0x25e   :  { %1162 = vmatprep.subr.bf16.mxu0 %v5450_v18  ;;  %1205 = vmatprep.subr.bf16.mxu1 %v5508_v27 }
 0x261   :  { %1163 = vmatpush1.bf16.msra.mxu0 %v5461_v19  ;;  %1206 = vmatpush1.bf16.msra.mxu1 %v5525_v30 }
 0x262   :  { %1164 = vmatprep.subr.bf16.mxu0 %v5467_v20  ;;  %1207 = vmatprep.subr.bf16.mxu1 %v5541_v33 }
 0x265   :  { %1165 = vmatpush1.bf16.msra.mxu0 %v5487_v24  ;;  %1208 = vmatpush1.bf16.msra.mxu1 %v5557_v35 }
 0x266   :  { %1166 = vmatprep.subr.bf16.mxu0 %v5494_v25  ;;  %1209 = vmatprep.subr.bf16.mxu1 %v5569_v37 }
 0x269   :  { %1167 = vmatpush1.bf16.msra.mxu0 %v5514_v28  ;;  %1210 = vmatpush1.bf16.msra.mxu1 %v5584_v40 }
 0x26a   :  { %1168 = vmatprep.subr.bf16.mxu0 %v5530_v31  ;;  %1211 = vmatprep.subr.bf16.mxu1 %v5596_v42 }
 0x26d   :  { %1169 = vmatpush1.bf16.msra.mxu0 %v5536_v32  ;;  %1212 = vmatpush1.bf16.msra.mxu1 %v5607_v43 }
 0x26e   :  { %1170 = vmatprep.subr.bf16.mxu0 %v5548_v34  ;;  %1213 = vmatprep.subr.bf16.mxu1 %v5614_v44 }
 0x271   :  { %1171 = vmatpush1.bf16.msra.mxu0 %v5564_v36  ;;  %1214 = vmatpush1.bf16.msra.mxu1 %v5624_v46 }
 0x272   :  { %1172 = vmatprep.subr.bf16.mxu0 %v5579_v39  ;;  %1215 = vmatprep.subr.bf16.mxu1 %v5630_v47 }
 0x275   :  { %1173 = vmatpush1.bf16.msra.mxu0 %v5590_v41  ;;  %1216 = vmatpush1.bf16.msra.mxu1 %v5646_v50 }
 0x276   :  { %1314 = vmatprep.subr.bf16.mxu0 %v5412_v11  ;;  %1357 = vmatprep.subr.bf16.mxu1 %v5421_v13 }
 0x32b   :  { %v1036_v63 = vpop.f32.mrb[8].mxu0  ;;  %v1079_v0 = vpop.f32.mrb[16].mxu1 }
 0x32c   :  { %v4291_v10 = vadd.f32 %v1036_v63, %v5720_v6  ;;  %v1038_v62 = vpop.f32.mrb[9].mxu0  ;;  %v1081_v1 = vpop.f32.mrb[17].mxu1  ;;  %v4331_v21 = vadd.f32 %v1079_v0, %v5734_v5 }
 0x32d   :  { %v4292_v12 = vadd.f32 %v1038_v62, %v5724_v7  ;;  %v1040_v48 = vpop.f32.mrb[10].mxu0  ;;  %v1083_v58 = vpop.f32.mrb[18].mxu1  ;;  %v4332_v59 = vadd.f32 %v1081_v1, %v5738_v9 }
 0x32e   :  { %v4085_v57 = vmul.f32 -1.442695, %v4291_v10  ;;  %v4293_v38 = vadd.f32 %v1040_v48, %v5720_v6  ;;  %v1042_v16 = vpop.f32.mrb[11].mxu0  ;;  %v1085_v49 = vpop.f32.mrb[19].mxu1  ;;  %v4333_v51 = vadd.f32 %v1083_v58, %v5734_v5  ;;  %v4087_v63 = vmul.f32 -1.442695, %v4331_v21 }
 0x32f   :  { %v4086_v61 = vmul.f32 -1.442695, %v4292_v12  ;;  %v4294_v11 = vadd.f32 %v1042_v16, %v5724_v7  ;;  %v4334_v12 = vadd.f32 %v1085_v49, %v5738_v9 }
 0x330   :  { %4778 = vpow2.f32 %v4085_v57  ;;  %v4088_v4 = vmul.f32 -1.442695, %v4293_v38  ;;  %v4090_v10 = vmul.f32 -1.442695, %v4333_v51 }
 0x331   :  { %v4089_v60 = vmul.f32 -1.442695, %v4294_v11  ;;  %4780 = vpow2.f32 %v4086_v61 }
 0x332   :  { %4782 = vpow2.f32 %v4088_v4 }
 0x333   :  { %4784 = vpow2.f32 %v4089_v60 }
 0x334   :  { %4786 = vtanh.f32 %v4332_v59 }
 0x335   :  { %4788 = vpow2.f32 %v4087_v63 }
 0x336   :  { %4790 = vpow2.f32 %v4090_v10 }
 0x33a   :  { %v4779_v62 = vpop.eup %4778 }
 0x33b   :  { %v1114_v48 = vadd.f32 1.0, %v4779_v62  ;;  %v4781_v57 = vpop.eup %4780 }
 0x33c   :  { %v4783_v38 = vpop.eup %4782  ;;  %v1115_v16 = vadd.f32 1.0, %v4781_v57 }
 0x33d   :  { %4792 = vrcp.f32 %v1114_v48  ;;  %v1117_v0 = vadd.f32 1.0, %v4783_v38  ;;  %v4785_v61 = vpop.eup %4784 }
 0x33e   :  { %4794 = vtanh.f32 %v4334_v12  ;;  %v1118_v58 = vadd.f32 1.0, %v4785_v61  ;;  %v4787_v1 = vpop.eup %4786 }
 0x33f   :  { %4796 = vrcp.f32 %v1115_v16  ;;  %v4789_v11 = vpop.eup %4788 }
 0x340   :  { %4798 = vrcp.f32 %v1117_v0  ;;  %v4791_v4 = vpop.eup %4790  ;;  %v1116_v63 = vadd.f32 1.0, %v4789_v11 }
 0x341   :  { %4800 = vrcp.f32 %v1118_v58  ;;  %v1119_v12 = vadd.f32 1.0, %v4791_v4 }
 0x342   :  { %4802 = vrcp.f32 %v1116_v63 }
 0x347   :  { %v4793_v60 = vpop.eup %4792 }
 0x348   :  { %v4795_v21 = vpop.eup %4794  ;;  %v1136_v49 = vmul.f32 %v4793_v60, %v4787_v1 }
 0x349   :  { %v4797_v51 = vpop.eup %4796 }
 0x34a   :  { %v4799_v59 = vpop.eup %4798  ;;  %v1134_v10 = vmul.f32 %v4797_v51, %v5803_v45 }
 0x34b   :  { %v1137_v62 = vmul.f32 %v4799_v59, %v4795_v21  ;;  %v4801_v48 = vpop.eup %4800 }
 0x34c   :  { %v5857_v57 = vadd.f32 %v1136_v49, %v1134_v10  ;;  %v1135_v38 = vmul.f32 %v4801_v48, %v5807_v2  ;;  %v4803_v0 = vpop.eup %4802 }
 0x34e   :  { %4804 = vtanh.f32 %v5857_v57  ;;  %v5861_v16 = vadd.f32 %v1137_v62, %v1135_v38 }
 0x34f   :  { %4806 = vrcp.f32 %v1119_v12 }
 0x350   :  { %4808 = vtanh.f32 %v5861_v16 }
 0x358   :  { %v4805_v61 = vpop.eup %4804 }
 0x359   :  { %v4807_v58 = vpop.eup %4806  ;;  %v1142_v45 = vmul.f32 %v4805_v61, %v4803_v0 }
 0x35a   :  { %v4809_v1 = vpop.eup %4808 }
 0x35b   :  { %v1143_v11 = vmul.f32 %v4809_v1, %v4807_v58 }
 0x35d   :  { %v5864_v60 = vpack.c.bf16 %v1143_v11, %v1142_v45 }
 0x35f   :  { %1191 = vmatmul.mubr.bf16.vlgmr.msra.gmra.mrb[12].mxu0 %v5864_v60  ;;  %1234 = vmatmul.mubr.bf16.vlgmr.msra.gmra.mrb[20].mxu1 %v5864_v60 }
 0x360   :  { %1315 = vmatpush1.bf16.msra.mxu0 %v5426_v14  ;;  %1358 = vmatpush1.bf16.msra.mxu1 %v5475_v22  ;;  %v5903_v14 = vld [vmem:[%s7188_s4 + $0x4] ss:$16 sps:$4 sm:$0xff]  }
 0x361   :  { %1316 = vmatprep.subr.bf16.mxu0 %v5432_v15  ;;  %1359 = vmatprep.subr.bf16.mxu1 %v5480_v23 }
 0x362   :  { %1346 = vmatprep.mubr.bf16.mxu0 %v7215_v3  ;;  %1389 = vmatprep.mubr.bf16.mxu1 %v7215_v3 }
 0x364   :  { %1317 = vmatpush1.bf16.msra.mxu0 %v5445_v17  ;;  %1360 = vmatpush1.bf16.msra.mxu1 %v5501_v26 }
 0x365   :  { %1318 = vmatprep.subr.bf16.mxu0 %v5450_v18  ;;  %1361 = vmatprep.subr.bf16.mxu1 %v5508_v27 }
 0x368   :  { %1319 = vmatpush1.bf16.msra.mxu0 %v5461_v19  ;;  %1362 = vmatpush1.bf16.msra.mxu1 %v5525_v30 }
 0x369   :  { %1320 = vmatprep.subr.bf16.mxu0 %v5467_v20  ;;  %1363 = vmatprep.subr.bf16.mxu1 %v5541_v33 }
 0x36c   :  { %1321 = vmatpush1.bf16.msra.mxu0 %v5487_v24  ;;  %1364 = vmatpush1.bf16.msra.mxu1 %v5557_v35 }
 0x36d   :  { %1322 = vmatprep.subr.bf16.mxu0 %v5494_v25  ;;  %1365 = vmatprep.subr.bf16.mxu1 %v5569_v37 }
 0x370   :  { %1323 = vmatpush1.bf16.msra.mxu0 %v5514_v28  ;;  %1366 = vmatpush1.bf16.msra.mxu1 %v5584_v40 }
 0x371   :  { %1324 = vmatprep.subr.bf16.mxu0 %v5530_v31  ;;  %1367 = vmatprep.subr.bf16.mxu1 %v5596_v42 }
 0x374   :  { %1325 = vmatpush1.bf16.msra.mxu0 %v5536_v32  ;;  %1368 = vmatpush1.bf16.msra.mxu1 %v5607_v43 }
 0x375   :  { %1326 = vmatprep.subr.bf16.mxu0 %v5548_v34  ;;  %1369 = vmatprep.subr.bf16.mxu1 %v5614_v44 }
 0x378   :  { %1327 = vmatpush1.bf16.msra.mxu0 %v5564_v36  ;;  %1370 = vmatpush1.bf16.msra.mxu1 %v5624_v46 }
 0x379   :  { %1328 = vmatprep.subr.bf16.mxu0 %v5579_v39  ;;  %1371 = vmatprep.subr.bf16.mxu1 %v5630_v47 }
 0x37c   :  { %1329 = vmatpush1.bf16.msra.mxu0 %v5590_v41  ;;  %1372 = vmatpush1.bf16.msra.mxu1 %v5646_v50 }
 0x37d   :  { %1470 = vmatprep.subr.bf16.mxu0 %v5903_v14  ;;  %1513 = vmatprep.subr.bf16.mxu1 %v5421_v13 }
 0x432   :  { %v1192_v15 = vpop.f32.mrb[12].mxu0  ;;  %v1235_v17 = vpop.f32.mrb[20].mxu1 }
 0x433   :  { %v4295_v18 = vadd.f32 %v1192_v15, %v5720_v6  ;;  %v1194_v19 = vpop.f32.mrb[13].mxu0  ;;  %v1237_v20 = vpop.f32.mrb[21].mxu1  ;;  %v4335_v33 = vadd.f32 %v1235_v17, %v5734_v5 }
 0x434   :  { %v4296_v22 = vadd.f32 %v1194_v19, %v5724_v7  ;;  %v1196_v23 = vpop.f32.mrb[14].mxu0  ;;  %v1239_v24 = vpop.f32.mrb[22].mxu1  ;;  %v4336_v36 = vadd.f32 %v1237_v20, %v5738_v9 }
 0x435   :  { %v4091_v25 = vmul.f32 -1.442695, %v4295_v18  ;;  %v4297_v26 = vadd.f32 %v1196_v23, %v5720_v6  ;;  %v1198_v27 = vpop.f32.mrb[15].mxu0  ;;  %v1241_v28 = vpop.f32.mrb[23].mxu1  ;;  %v4337_v34 = vadd.f32 %v1239_v24, %v5734_v5  ;;  %v4093_v39 = vmul.f32 -1.442695, %v4335_v33 }
 0x436   :  { %v4092_v30 = vmul.f32 -1.442695, %v4296_v22  ;;  %v4298_v31 = vadd.f32 %v1198_v27, %v5724_v7  ;;  %v4338_v4 = vadd.f32 %v1241_v28, %v5738_v9  ;;  %v5956_v33 = vld [vmem:[%s7188_s4 + $0x20] ss:$16 sps:$4 sm:$0xff]  }
 0x437   :  { %4810 = vpow2.f32 %v4091_v25  ;;  %v4094_v13 = vmul.f32 -1.442695, %v4297_v26  ;;  %v4096_v41 = vmul.f32 -1.442695, %v4337_v34  ;;  %v5962_v34 = vld [vmem:[%s7188_s4 + $0x28] ss:$16 sps:$4 sm:$0xff]  }
 0x438   :  { %v4095_v32 = vmul.f32 -1.442695, %v4298_v31  ;;  %4812 = vpow2.f32 %v4092_v30  ;;  %v5936_v31 = vld [vmem:[%s7188_s4 + $0x8] ss:$16 sps:$4 sm:$0xff]  }
 0x439   :  { %4814 = vpow2.f32 %v4094_v13  ;;  %v5942_v13 = vld [vmem:[%s7188_s4 + $0x24] ss:$16 sps:$4 sm:$0xff]  }
 0x43a   :  { %4816 = vpow2.f32 %v4095_v32  ;;  %v5948_v32 = vld [vmem:[%s7188_s4 + $0x2c] ss:$16 sps:$4 sm:$0xff]  }
 0x43b   :  { %4818 = vtanh.f32 %v4336_v36  ;;  %v5968_v36 = vld [vmem:[%s7188_s4 + $0x44] ss:$16 sps:$4 sm:$0xff]  }
 0x43c   :  { %4820 = vpow2.f32 %v4093_v39  ;;  %v5974_v39 = vld [vmem:[%s7188_s4 + $0x4c] ss:$16 sps:$4 sm:$0xff]  }
 0x43d   :  { %4822 = vpow2.f32 %v4096_v41  ;;  %v5980_v41 = vld [vmem:[%s7188_s4 + $0x40] ss:$16 sps:$4 sm:$0xff]  }
 0x441   :  { %v4811_v2 = vpop.eup %4810 }
 0x442   :  { %v1270_v21 = vadd.f32 1.0, %v4811_v2  ;;  %v4813_v49 = vpop.eup %4812  ;;  %v5986_v2 = vld [vmem:[%s7188_s4 + $0x48] ss:$16 sps:$4 sm:$0xff]  }
 0x443   :  { %v4815_v51 = vpop.eup %4814  ;;  %v1271_v59 = vadd.f32 1.0, %v4813_v49  ;;  %v6004_v49 = vld [vmem:[%s7188_s4 + $0x60] ss:$16 sps:$4 sm:$0xff]  }
 0x444   :  { %4824 = vrcp.f32 %v1270_v21  ;;  %v1273_v63 = vadd.f32 1.0, %v4815_v51  ;;  %v4817_v10 = vpop.eup %4816  ;;  %v5998_v21 = vld [vmem:[%s7188_s4 + $0x6c] ss:$16 sps:$4 sm:$0xff]   ;;  %v6011_v51 = vld [vmem:[%s7188_s4 + $0x84] ss:$16 sps:$4 sm:$0xff]  }
 0x445   :  { %4826 = vtanh.f32 %v4338_v4  ;;  %v1274_v62 = vadd.f32 1.0, %v4817_v10  ;;  %v4819_v48 = vpop.eup %4818  ;;  %v5992_v4 = vld [vmem:[%s7188_s4 + $0x64] ss:$16 sps:$4 sm:$0xff]  }
 0x446   :  { %4828 = vrcp.f32 %v1271_v59  ;;  %v4821_v12 = vpop.eup %4820  ;;  %v6018_v59 = vld [vmem:[%s7188_s4 + $0x80] ss:$16 sps:$4 sm:$0xff]  }
 0x447   :  { %4830 = vrcp.f32 %v1273_v63  ;;  %v4823_v38 = vpop.eup %4822  ;;  %v1272_v11 = vadd.f32 1.0, %v4821_v12 }
 0x448   :  { %4832 = vrcp.f32 %v1274_v62  ;;  %v1275_v20 = vadd.f32 1.0, %v4823_v38 }
 0x449   :  { %4834 = vrcp.f32 %v1272_v11 }
 0x44e   :  { %v4825_v0 = vpop.eup %4824 }
 0x44f   :  { %v4827_v61 = vpop.eup %4826  ;;  %v1292_v58 = vmul.f32 %v4825_v0, %v4819_v48 }
 0x450   :  { %v4829_v1 = vpop.eup %4828 }
 0x451   :  { %v4831_v45 = vpop.eup %4830  ;;  %v1290_v15 = vmul.f32 %v4829_v1, %v5857_v57 }
 0x452   :  { %v1293_v17 = vmul.f32 %v4831_v45, %v4827_v61  ;;  %v4833_v18 = vpop.eup %4832 }
 0x453   :  { %v5916_v19 = vadd.f32 %v1292_v58, %v1290_v15  ;;  %v1291_v22 = vmul.f32 %v4833_v18, %v5861_v16  ;;  %v4835_v24 = vpop.eup %4834  ;;  %v5930_v16 = vld [vmem:[%s7188_s4] ss:$16 sps:$4 sm:$0xff]  }
 0x455   :  { %4836 = vtanh.f32 %v5916_v19  ;;  %v5920_v23 = vadd.f32 %v1293_v17, %v1291_v22 }
 0x456   :  { %4838 = vrcp.f32 %v1275_v20 }
 0x457   :  { %4840 = vtanh.f32 %v5920_v23 }
 0x45f   :  { %v4837_v25 = vpop.eup %4836 }
 0x460   :  { %v4839_v26 = vpop.eup %4838  ;;  %v1298_v57 = vmul.f32 %v4837_v25, %v4835_v24 }
 0x461   :  { %v4841_v27 = vpop.eup %4840 }
 0x462   :  { %v1299_v28 = vmul.f32 %v4841_v27, %v4839_v26 }
 0x464   :  { %v5923_v30 = vpack.c.bf16 %v1299_v28, %v1298_v57 }
 0x466   :  { %1347 = vmatmul.mubr.bf16.vlgmr.msra.gmra.mrb[16].mxu0 %v5923_v30  ;;  %1390 = vmatmul.mubr.bf16.vlgmr.msra.gmra.mrb[24].mxu1 %v5923_v30 }
 0x467   :  { %1471 = vmatpush1.bf16.msra.mxu0 %v5930_v16  ;;  %1514 = vmatpush1.bf16.msra.mxu1 %v5936_v31 }
 0x468   :  { %1472 = vmatprep.subr.bf16.mxu0 %v5942_v13  ;;  %1515 = vmatprep.subr.bf16.mxu1 %v5948_v32 }
 0x469   :  { %1502 = vmatprep.mubr.bf16.mxu0 %v7215_v3  ;;  %1545 = vmatprep.mubr.bf16.mxu1 %v7215_v3 }
 0x46b   :  { %1473 = vmatpush1.bf16.msra.mxu0 %v5956_v33  ;;  %1516 = vmatpush1.bf16.msra.mxu1 %v5962_v34 }
 0x46c   :  { %1474 = vmatprep.subr.bf16.mxu0 %v5968_v36  ;;  %1517 = vmatprep.subr.bf16.mxu1 %v5974_v39 }
 0x46f   :  { %1475 = vmatpush1.bf16.msra.mxu0 %v5980_v41  ;;  %1518 = vmatpush1.bf16.msra.mxu1 %v5986_v2 }
 0x470   :  { %1476 = vmatprep.subr.bf16.mxu0 %v5992_v4  ;;  %1519 = vmatprep.subr.bf16.mxu1 %v5998_v21 }
 0x473   :  { %1477 = vmatpush1.bf16.msra.mxu0 %v6004_v49  ;;  %1520 = vmatpush1.bf16.msra.mxu1 %v5557_v35  ;;  %v6025_v35 = vld [vmem:[%s7188_s4 + $0xa4] ss:$16 sps:$4 sm:$0xff]  }
 0x474   :  { %1478 = vmatprep.subr.bf16.mxu0 %v6011_v51  ;;  %1521 = vmatprep.subr.bf16.mxu1 %v5569_v37  ;;  %v6032_v37 = vld [vmem:[%s7188_s4 + $0xa0] ss:$16 sps:$4 sm:$0xff]  }
 0x477   :  { %1479 = vmatpush1.bf16.msra.mxu0 %v6018_v59  ;;  %1522 = vmatpush1.bf16.msra.mxu1 %v5584_v40  ;;  %v6039_v40 = vld [vmem:[%s7188_s4 + $0xc4] ss:$16 sps:$4 sm:$0xff]  }
 0x478   :  { %1480 = vmatprep.subr.bf16.mxu0 %v6025_v35  ;;  %1523 = vmatprep.subr.bf16.mxu1 %v5596_v42  ;;  %v6046_v42 = vld [vmem:[%s7188_s4 + $0xc0] ss:$16 sps:$4 sm:$0xff]  }
 0x47b   :  { %1481 = vmatpush1.bf16.msra.mxu0 %v6032_v37  ;;  %1524 = vmatpush1.bf16.msra.mxu1 %v5607_v43  ;;  %v6053_v43 = vld [vmem:[%s7188_s4 + $0xe4] ss:$16 sps:$4 sm:$0xff]  }
 0x47c   :  { %1482 = vmatprep.subr.bf16.mxu0 %v6039_v40  ;;  %1525 = vmatprep.subr.bf16.mxu1 %v5614_v44  ;;  %v6060_v44 = vld [vmem:[%s7188_s4 + $0xe0] ss:$16 sps:$4 sm:$0xff]  }
 0x47f   :  { %1483 = vmatpush1.bf16.msra.mxu0 %v6046_v42  ;;  %1526 = vmatpush1.bf16.msra.mxu1 %v5624_v46  ;;  %v6068_v46 = vld [vmem:[%s7188_s4 + $0xc] ss:$16 sps:$4 sm:$0xff]  }
 0x480   :  { %1484 = vmatprep.subr.bf16.mxu0 %v6053_v43  ;;  %1527 = vmatprep.subr.bf16.mxu1 %v5630_v47 }
 0x483   :  { %1485 = vmatpush1.bf16.msra.mxu0 %v6060_v44  ;;  %1528 = vmatpush1.bf16.msra.mxu1 %v5646_v50 }
 0x484   :  { %1626 = vmatprep.subr.bf16.mxu0 %v5903_v14  ;;  %1669 = vmatprep.subr.bf16.mxu1 %v6068_v46 }
 0x539   :  { %v1348_v63 = vpop.f32.mrb[16].mxu0  ;;  %v1391_v47 = vpop.f32.mrb[24].mxu1 }
 0x53a   :  { %v4299_v10 = vadd.f32 %v1348_v63, %v5720_v6  ;;  %v1350_v62 = vpop.f32.mrb[17].mxu0  ;;  %v1393_v48 = vpop.f32.mrb[25].mxu1  ;;  %v4339_v18 = vadd.f32 %v1391_v47, %v5734_v5 }
 0x53b   :  { %v4300_v12 = vadd.f32 %v1350_v62, %v5724_v7  ;;  %v1352_v38 = vpop.f32.mrb[18].mxu0  ;;  %v1395_v0 = vpop.f32.mrb[26].mxu1  ;;  %v4340_v22 = vadd.f32 %v1393_v48, %v5738_v9 }
 0x53c   :  { %v4097_v50 = vmul.f32 -1.442695, %v4299_v10  ;;  %v4301_v61 = vadd.f32 %v1352_v38, %v5720_v6  ;;  %v1354_v58 = vpop.f32.mrb[19].mxu0  ;;  %v1397_v1 = vpop.f32.mrb[27].mxu1  ;;  %v4341_v20 = vadd.f32 %v1395_v0, %v5734_v5  ;;  %v4099_v24 = vmul.f32 -1.442695, %v4339_v18 }
 0x53d   :  { %v4098_v45 = vmul.f32 -1.442695, %v4300_v12  ;;  %v4302_v11 = vadd.f32 %v1354_v58, %v5724_v7  ;;  %v4342_v27 = vadd.f32 %v1397_v1, %v5738_v9 }
 0x53e   :  { %4842 = vpow2.f32 %v4097_v50  ;;  %v4100_v15 = vmul.f32 -1.442695, %v4301_v61  ;;  %v4102_v25 = vmul.f32 -1.442695, %v4341_v20 }
 0x53f   :  { %v4101_v17 = vmul.f32 -1.442695, %v4302_v11  ;;  %4844 = vpow2.f32 %v4098_v45 }
 0x540   :  { %4846 = vpow2.f32 %v4100_v15 }
 0x541   :  { %4848 = vpow2.f32 %v4101_v17 }
 0x542   :  { %4850 = vtanh.f32 %v4340_v22 }
 0x543   :  { %4852 = vpow2.f32 %v4099_v24 }
 0x544   :  { %4854 = vpow2.f32 %v4102_v25 }
 0x548   :  { %v4843_v26 = vpop.eup %4842 }
 0x549   :  { %v1426_v57 = vadd.f32 1.0, %v4843_v26  ;;  %v4845_v28 = vpop.eup %4844 }
 0x54a   :  { %v4847_v63 = vpop.eup %4846  ;;  %v1427_v10 = vadd.f32 1.0, %v4845_v28 }
 0x54b   :  { %4856 = vrcp.f32 %v1426_v57  ;;  %v1429_v47 = vadd.f32 1.0, %v4847_v63  ;;  %v4849_v62 = vpop.eup %4848 }
 0x54c   :  { %4858 = vtanh.f32 %v4342_v27  ;;  %v1430_v12 = vadd.f32 1.0, %v4849_v62  ;;  %v4851_v48 = vpop.eup %4850  ;;  %v6123_v62 = vld [vmem:[%s7188_s4 + $0x88] ss:$16 sps:$4 sm:$0xff]  }
 0x54d   :  { %4860 = vrcp.f32 %v1427_v10  ;;  %v4853_v38 = vpop.eup %4852 }
 0x54e   :  { %4862 = vrcp.f32 %v1429_v47  ;;  %v4855_v0 = vpop.eup %4854  ;;  %v1428_v11 = vadd.f32 1.0, %v4853_v38  ;;  %v6116_v47 = vld [vmem:[%s7188_s4 + $0x8c] ss:$16 sps:$4 sm:$0xff]  }
 0x54f   :  { %4864 = vrcp.f32 %v1430_v12  ;;  %v1431_v22 = vadd.f32 1.0, %v4855_v0  ;;  %v6130_v12 = vld [vmem:[%s7188_s4 + $0xac] ss:$16 sps:$4 sm:$0xff]   ;;  %v6151_v0 = vld [vmem:[%s7188_s4 + $0xc8] ss:$16 sps:$4 sm:$0xff]  }
 0x550   :  { %4866 = vrcp.f32 %v1428_v11  ;;  %v6144_v38 = vld [vmem:[%s7188_s4 + $0xcc] ss:$16 sps:$4 sm:$0xff]  }
 0x555   :  { %v4857_v50 = vpop.eup %4856 }
 0x556   :  { %v4859_v61 = vpop.eup %4858  ;;  %v1448_v58 = vmul.f32 %v4857_v50, %v4851_v48  ;;  %v6137_v48 = vld [vmem:[%s7188_s4 + $0xa8] ss:$16 sps:$4 sm:$0xff]   ;;  %v6158_v50 = vld [vmem:[%s7188_s4 + $0xec] ss:$16 sps:$4 sm:$0xff]  }
 0x557   :  { %v4861_v1 = vpop.eup %4860 }
 0x558   :  { %v4863_v45 = vpop.eup %4862  ;;  %v1446_v15 = vmul.f32 %v4861_v1, %v5916_v19 }
 0x559   :  { %v1449_v17 = vmul.f32 %v4863_v45, %v4859_v61  ;;  %v4865_v18 = vpop.eup %4864  ;;  %v6165_v61 = vld [vmem:[%s7188_s4 + $0xe8] ss:$16 sps:$4 sm:$0xff]  }
 0x55a   :  { %v6080_v20 = vadd.f32 %v1448_v58, %v1446_v15  ;;  %v1447_v24 = vmul.f32 %v4865_v18, %v5920_v23  ;;  %v4867_v26 = vpop.eup %4866  ;;  %v6109_v23 = vld [vmem:[%s7188_s4 + $0x68] ss:$16 sps:$4 sm:$0xff]  }
 0x55c   :  { %4868 = vtanh.f32 %v6080_v20  ;;  %v6084_v25 = vadd.f32 %v1449_v17, %v1447_v24 }
 0x55d   :  { %4870 = vrcp.f32 %v1431_v22 }
 0x55e   :  { %4872 = vtanh.f32 %v6084_v25 }
 0x566   :  { %v4869_v27 = vpop.eup %4868 }
 0x567   :  { %v4871_v57 = vpop.eup %4870  ;;  %v1454_v19 = vmul.f32 %v4869_v27, %v4867_v26 }
 0x568   :  { %v4873_v28 = vpop.eup %4872 }
 0x569   :  { %v1455_v63 = vmul.f32 %v4873_v28, %v4871_v57 }
 0x56b   :  { %v6087_v10 = vpack.c.bf16 %v1455_v63, %v1454_v19 }
 0x56d   :  { %7216 = vst [vmem:[#allocation9_spill] sm:$0xff] %v6087_v10  ;;  %1503 = vmatmul.mubr.bf16.vlgmr.msra.gmra.mrb[20].mxu0 %v6087_v10  ;;  %1546 = vmatmul.mubr.bf16.vlgmr.msra.gmra.mrb[28].mxu1 %v6087_v10 }
 0x56e   :  { %1627 = vmatpush1.bf16.msra.mxu0 %v5930_v16  ;;  %1670 = vmatpush1.bf16.msra.mxu1 %v5936_v31 }
 0x56f   :  { %1628 = vmatprep.subr.bf16.mxu0 %v5942_v13  ;;  %1671 = vmatprep.subr.bf16.mxu1 %v5948_v32 }
 0x570   :  { %1658 = vmatprep.mubr.bf16.mxu0 %v7215_v3  ;;  %1701 = vmatprep.mubr.bf16.mxu1 %v7215_v3 }
 0x572   :  { %1629 = vmatpush1.bf16.msra.mxu0 %v5956_v33  ;;  %1672 = vmatpush1.bf16.msra.mxu1 %v5962_v34 }
 0x573   :  { %1630 = vmatprep.subr.bf16.mxu0 %v5968_v36  ;;  %1673 = vmatprep.subr.bf16.mxu1 %v5974_v39 }
 0x576   :  { %1631 = vmatpush1.bf16.msra.mxu0 %v5980_v41  ;;  %1674 = vmatpush1.bf16.msra.mxu1 %v5986_v2 }
 0x577   :  { %1632 = vmatprep.subr.bf16.mxu0 %v5992_v4  ;;  %1675 = vmatprep.subr.bf16.mxu1 %v5998_v21 }
 0x57a   :  { %1633 = vmatpush1.bf16.msra.mxu0 %v6004_v49  ;;  %1676 = vmatpush1.bf16.msra.mxu1 %v6109_v23 }
 0x57b   :  { %1634 = vmatprep.subr.bf16.mxu0 %v6011_v51  ;;  %1677 = vmatprep.subr.bf16.mxu1 %v6116_v47 }
 0x57e   :  { %1635 = vmatpush1.bf16.msra.mxu0 %v6018_v59  ;;  %1678 = vmatpush1.bf16.msra.mxu1 %v6123_v62 }
 0x57f   :  { %1636 = vmatprep.subr.bf16.mxu0 %v6025_v35  ;;  %1679 = vmatprep.subr.bf16.mxu1 %v6130_v12 }
 0x582   :  { %1637 = vmatpush1.bf16.msra.mxu0 %v6032_v37  ;;  %1680 = vmatpush1.bf16.msra.mxu1 %v6137_v48 }
 0x583   :  { %1638 = vmatprep.subr.bf16.mxu0 %v6039_v40  ;;  %1681 = vmatprep.subr.bf16.mxu1 %v6144_v38 }
 0x586   :  { %1639 = vmatpush1.bf16.msra.mxu0 %v6046_v42  ;;  %1682 = vmatpush1.bf16.msra.mxu1 %v6151_v0 }
 0x587   :  { %1640 = vmatprep.subr.bf16.mxu0 %v6053_v43  ;;  %1683 = vmatprep.subr.bf16.mxu1 %v6158_v50 }
 0x58a   :  { %1641 = vmatpush1.bf16.msra.mxu0 %v6060_v44  ;;  %1684 = vmatpush1.bf16.msra.mxu1 %v6165_v61 }
 0x58b   :  { %1782 = vmatprep.subr.bf16.mxu0 %v5903_v14  ;;  %1825 = vmatprep.subr.bf16.mxu1 %v6068_v46 }
 0x640   :  { %v1504_v58 = vpop.f32.mrb[20].mxu0  ;;  %v1547_v1 = vpop.f32.mrb[28].mxu1 }
 0x641   :  { %v4303_v45 = vadd.f32 %v1504_v58, %v5720_v6  ;;  %v1506_v11 = vpop.f32.mrb[21].mxu0  ;;  %v1549_v15 = vpop.f32.mrb[29].mxu1  ;;  %v4343_v63 = vadd.f32 %v1547_v1, %v5734_v5 }
 0x642   :  { %v4304_v17 = vadd.f32 %v1506_v11, %v5724_v7  ;;  %v1508_v18 = vpop.f32.mrb[22].mxu0  ;;  %v1551_v22 = vpop.f32.mrb[30].mxu1  ;;  %v4344_v11 = vadd.f32 %v1549_v15, %v5738_v9 }
 0x643   :  { %v4103_v24 = vmul.f32 -1.442695, %v4303_v45  ;;  %v4305_v26 = vadd.f32 %v1508_v18, %v5720_v6  ;;  %v1510_v27 = vpop.f32.mrb[23].mxu0  ;;  %v1553_v57 = vpop.f32.mrb[31].mxu1  ;;  %v4345_v58 = vadd.f32 %v1551_v22, %v5734_v5  ;;  %v4105_v45 = vmul.f32 -1.442695, %v4343_v63 }
 0x644   :  { %v4104_v28 = vmul.f32 -1.442695, %v4304_v17  ;;  %v4306_v14 = vadd.f32 %v1510_v27, %v5724_v7  ;;  %v4346_v17 = vadd.f32 %v1553_v57, %v5738_v9 }
 0x645   :  { %4874 = vpow2.f32 %v4103_v24  ;;  %v4106_v46 = vmul.f32 -1.442695, %v4305_v26  ;;  %v4108_v56 = vmul.f32 -1.442695, %v4345_v58 }
 0x646   :  { %v4107_v19 = vmul.f32 -1.442695, %v4306_v14  ;;  %4876 = vpow2.f32 %v4104_v28 }
 0x647   :  { %4878 = vpow2.f32 %v4106_v46 }
 0x648   :  { %4880 = vpow2.f32 %v4107_v19 }
 0x649   :  { %4882 = vtanh.f32 %v4344_v11 }
 0x64a   :  { %4884 = vpow2.f32 %v4105_v45 }
 0x64b   :  { %4886 = vpow2.f32 %v4108_v56 }
 0x64f   :  { %v4875_v18 = vpop.eup %4874 }
 0x650   :  { %v1582_v10 = vadd.f32 1.0, %v4875_v18  ;;  %v4877_v24 = vpop.eup %4876 }
 0x651   :  { %v4879_v26 = vpop.eup %4878  ;;  %v1583_v27 = vadd.f32 1.0, %v4877_v24 }
 0x652   :  { %4888 = vrcp.f32 %v1582_v10  ;;  %v1585_v1 = vadd.f32 1.0, %v4879_v26  ;;  %v4881_v28 = vpop.eup %4880 }
 0x653   :  { %4890 = vtanh.f32 %v4346_v17  ;;  %v1586_v22 = vadd.f32 1.0, %v4881_v28  ;;  %v4883_v15 = vpop.eup %4882 }
 0x654   :  { %4892 = vrcp.f32 %v1583_v27  ;;  %v4885_v14 = vpop.eup %4884 }
 0x655   :  { %4894 = vrcp.f32 %v1585_v1  ;;  %v4887_v46 = vpop.eup %4886  ;;  %v1584_v45 = vadd.f32 1.0, %v4885_v14 }
 0x656   :  { %4896 = vrcp.f32 %v1586_v22  ;;  %v1587_v17 = vadd.f32 1.0, %v4887_v46 }
 0x657   :  { %4898 = vrcp.f32 %v1584_v45 }
 0x65c   :  { %v4889_v19 = vpop.eup %4888 }
 0x65d   :  { %v4891_v63 = vpop.eup %4890  ;;  %v1604_v57 = vmul.f32 %v4889_v19, %v4883_v15 }
 0x65e   :  { %v4893_v58 = vpop.eup %4892 }
 0x65f   :  { %v4895_v11 = vpop.eup %4894  ;;  %v1602_v56 = vmul.f32 %v4893_v58, %v6080_v20 }
 0x660   :  { %v1605_v10 = vmul.f32 %v4895_v11, %v4891_v63  ;;  %v4897_v18 = vpop.eup %4896 }
 0x661   :  { %v6179_v24 = vadd.f32 %v1604_v57, %v1602_v56  ;;  %v1603_v26 = vmul.f32 %v4897_v18, %v6084_v25  ;;  %v4899_v1 = vpop.eup %4898 }
 0x663   :  { %4900 = vtanh.f32 %v6179_v24  ;;  %v6183_v27 = vadd.f32 %v1605_v10, %v1603_v26 }
 0x664   :  { %4902 = vrcp.f32 %v1587_v17 }
 0x665   :  { %4904 = vtanh.f32 %v6183_v27 }
 0x66d   :  { %v4901_v28 = vpop.eup %4900 }
 0x66e   :  { %v4903_v22 = vpop.eup %4902  ;;  %v1610_v20 = vmul.f32 %v4901_v28, %v4899_v1 }
 0x66f   :  { %v4905_v15 = vpop.eup %4904 }
 0x670   :  { %v1611_v14 = vmul.f32 %v4905_v15, %v4903_v22 }
 0x672   :  { %v6186_v19 = vpack.c.bf16 %v1611_v14, %v1610_v20 }
 0x674   :  { %1659 = vmatmul.mubr.bf16.vlgmr.msra.gmra.mrb[24].mxu0 %v6186_v19  ;;  %1702 = vmatmul.mubr.bf16.vlgmr.msra.gmra.mrb[32].mxu1 %v6186_v19 }
 0x675   :  { %1783 = vmatpush1.bf16.msra.mxu0 %v5930_v16  ;;  %1826 = vmatpush1.bf16.msra.mxu1 %v5936_v31  ;;  %v4612_v16 = vld [vmem:[%s7192_s6 + $0x4] ss:$16 sps:$4 sm:$0xff]   ;;  %v4615_v31 = vld [vmem:[%s7192_s6 + $0xc] ss:$16 sps:$4 sm:$0xff]  }
 0x676   :  { %1784 = vmatprep.subr.bf16.mxu0 %v5942_v13  ;;  %1827 = vmatprep.subr.bf16.mxu1 %v5948_v32  ;;  %v324_v13 = vadd.f32 %v5695_v52, %v5720_v6  ;;  %v326_v32 = vadd.f32 %v5697_v53, %v5724_v7 }
 0x677   :  { %1814 = vmatprep.mubr.bf16.mxu0 %v7215_v3  ;;  %1857 = vmatprep.mubr.bf16.mxu1 %v7215_v3 }
 0x679   :  { %1785 = vmatpush1.bf16.msra.mxu0 %v5956_v33  ;;  %1828 = vmatpush1.bf16.msra.mxu1 %v5962_v34 }
 0x67a   :  { %1786 = vmatprep.subr.bf16.mxu0 %v5968_v36  ;;  %1829 = vmatprep.subr.bf16.mxu1 %v5974_v39  ;;  %v328_v36 = vadd.f32 %v5699_v54, %v5720_v6 }
 0x67d   :  { %1787 = vmatpush1.bf16.msra.mxu0 %v5980_v41  ;;  %1830 = vmatpush1.bf16.msra.mxu1 %v5986_v2 }
 0x67e   :  { %1788 = vmatprep.subr.bf16.mxu0 %v5992_v4  ;;  %1831 = vmatprep.subr.bf16.mxu1 %v5998_v21  ;;  %v330_v4 = vadd.f32 %v5701_v55, %v5724_v7 }
 0x681   :  { %1789 = vmatpush1.bf16.msra.mxu0 %v6004_v49  ;;  %1832 = vmatpush1.bf16.msra.mxu1 %v6109_v23 }
 0x682   :  { %1790 = vmatprep.subr.bf16.mxu0 %v6011_v51  ;;  %1833 = vmatprep.subr.bf16.mxu1 %v6116_v47 }
 0x685   :  { %1791 = vmatpush1.bf16.msra.mxu0 %v6018_v59  ;;  %1834 = vmatpush1.bf16.msra.mxu1 %v6123_v62 }
 0x686   :  { %1792 = vmatprep.subr.bf16.mxu0 %v6025_v35  ;;  %1835 = vmatprep.subr.bf16.mxu1 %v6130_v12 }
 0x689   :  { %1793 = vmatpush1.bf16.msra.mxu0 %v6032_v37  ;;  %1836 = vmatpush1.bf16.msra.mxu1 %v6137_v48 }
 0x68a   :  { %1794 = vmatprep.subr.bf16.mxu0 %v6039_v40  ;;  %1837 = vmatprep.subr.bf16.mxu1 %v6144_v38 }
 0x68d   :  { %1795 = vmatpush1.bf16.msra.mxu0 %v6046_v42  ;;  %1838 = vmatpush1.bf16.msra.mxu1 %v6151_v0 }
 0x68e   :  { %1796 = vmatprep.subr.bf16.mxu0 %v6053_v43  ;;  %1839 = vmatprep.subr.bf16.mxu1 %v6158_v50 }
 0x691   :  { %1797 = vmatpush1.bf16.msra.mxu0 %v6060_v44  ;;  %1840 = vmatpush1.bf16.msra.mxu1 %v6165_v61 }
 0x692   :  { %2191 = vmatprep.subr.bf16.mxu0 %v4612_v16  ;;  %2304 = vmatprep.subr.bf16.mxu1 %v4615_v31 }
 0x747   :  { %v1660_v33 = vpop.f32.mrb[24].mxu0  ;;  %v1703_v34 = vpop.f32.mrb[32].mxu1 }
 0x748   :  { %v1712_v39 = vadd.f32 %v1660_v33, %v324_v13  ;;  %v1662_v41 = vpop.f32.mrb[25].mxu0  ;;  %v1705_v2 = vpop.f32.mrb[33].mxu1  ;;  %v4347_v54 = vadd.f32 %v1703_v34, %v5734_v5  ;;  %v4610_v34 = vld [vmem:[%s7192_s6] ss:$16 sps:$4 sm:$0xff]  }
 0x749   :  { %v1713_v21 = vadd.f32 %v1662_v41, %v326_v32  ;;  %v1664_v49 = vpop.f32.mrb[26].mxu0  ;;  %v1707_v51 = vpop.f32.mrb[34].mxu1  ;;  %v4348_v55 = vadd.f32 %v1705_v2, %v5738_v9  ;;  %v4621_v41 = vld [vmem:[%s7192_s6 + $0x2c] ss:$16 sps:$4 sm:$0xff]   ;;  %v4616_v2 = vld [vmem:[%s7192_s6 + $0x20] ss:$16 sps:$4 sm:$0xff]  }
 0x74a   :  { %v4109_v59 = vmul.f32 -1.442695, %v1712_v39  ;;  %v1716_v35 = vadd.f32 %v1664_v49, %v328_v36  ;;  %v1666_v52 = vpop.f32.mrb[27].mxu0  ;;  %v1709_v37 = vpop.f32.mrb[35].mxu1  ;;  %v4349_v44 = vadd.f32 %v1707_v51, %v5734_v5  ;;  %v4111_v25 = vmul.f32 -1.442695, %v4347_v54 }
 0x74b   :  { %v4110_v40 = vmul.f32 -1.442695, %v1713_v21  ;;  %v1717_v53 = vadd.f32 %v1666_v52, %v330_v4  ;;  %v4350_v62 = vadd.f32 %v1709_v37, %v5738_v9  ;;  %v4618_v39 = vld [vmem:[%s7192_s6 + $0x24] ss:$16 sps:$4 sm:$0xff]   ;;  %v4619_v4 = vld [vmem:[%s7192_s6 + $0x28] ss:$16 sps:$4 sm:$0xff]  }
 0x74c   :  { %4906 = vpow2.f32 %v4109_v59  ;;  %v4112_v42 = vmul.f32 -1.442695, %v1716_v35  ;;  %v4114_v23 = vmul.f32 -1.442695, %v4349_v44  ;;  %v4624_v21 = vld [vmem:[%s7192_s6 + $0x44] ss:$16 sps:$4 sm:$0xff]  }
 0x74d   :  { %v4113_v43 = vmul.f32 -1.442695, %v1717_v53  ;;  %4908 = vpow2.f32 %v4110_v40  ;;  %v4627_v49 = vld [vmem:[%s7192_s6 + $0x4c] ss:$16 sps:$4 sm:$0xff]   ;;  %v4622_v51 = vld [vmem:[%s7192_s6 + $0x40] ss:$16 sps:$4 sm:$0xff]  }
 0x74e   :  { %4910 = vpow2.f32 %v4112_v42  ;;  %v4625_v59 = vld [vmem:[%s7192_s6 + $0x48] ss:$16 sps:$4 sm:$0xff]   ;;  %v4630_v35 = vld [vmem:[%s7192_s6 + $0x64] ss:$16 sps:$4 sm:$0xff]   ;;  %v4633_v52 = vld [vmem:[%s7192_s6 + $0x6c] ss:$16 sps:$4 sm:$0xff]  }
 0x74f   :  { %4912 = vpow2.f32 %v4113_v43  ;;  %v4628_v37 = vld [vmem:[%s7192_s6 + $0x60] ss:$16 sps:$4 sm:$0xff]   ;;  %v4631_v40 = vld [vmem:[%s7192_s6 + $0x68] ss:$16 sps:$4 sm:$0xff]   ;;  %v4636_v53 = vld [vmem:[%s7192_s6 + $0x84] ss:$16 sps:$4 sm:$0xff]  }
 0x750   :  { %4914 = vtanh.f32 %v4348_v55  ;;  %v4639_v42 = vld [vmem:[%s7192_s6 + $0x8c] ss:$16 sps:$4 sm:$0xff]   ;;  %v4634_v43 = vld [vmem:[%s7192_s6 + $0x80] ss:$16 sps:$4 sm:$0xff]   ;;  %v4637_v54 = vld [vmem:[%s7192_s6 + $0x88] ss:$16 sps:$4 sm:$0xff]  }
 0x751   :  { %4916 = vpow2.f32 %v4111_v25  ;;  %v4642_v44 = vld [vmem:[%s7192_s6 + $0xa4] ss:$16 sps:$4 sm:$0xff]   ;;  %v4645_v55 = vld [vmem:[%s7192_s6 + $0xac] ss:$16 sps:$4 sm:$0xff]   ;;  %v4640_v25 = vld [vmem:[%s7192_s6 + $0xa0] ss:$16 sps:$4 sm:$0xff]  }
 0x752   :  { %4918 = vpow2.f32 %v4114_v23  ;;  %v4643_v23 = vld [vmem:[%s7192_s6 + $0xa8] ss:$16 sps:$4 sm:$0xff]  }
 0x756   :  { %v4907_v47 = vpop.eup %4906 }
 0x757   :  { %v1738_v12 = vadd.f32 1.0, %v4907_v47  ;;  %v4909_v48 = vpop.eup %4908  ;;  %v4648_v47 = vld [vmem:[%s7192_s6 + $0xc4] ss:$16 sps:$4 sm:$0xff]  }
 0x758   :  { %v4911_v38 = vpop.eup %4910  ;;  %v1739_v0 = vadd.f32 1.0, %v4909_v48  ;;  %v4649_v48 = vld [vmem:[%s7192_s6 + $0xc8] ss:$16 sps:$4 sm:$0xff]  }
 0x759   :  { %4920 = vrcp.f32 %v1738_v12  ;;  %v1741_v50 = vadd.f32 1.0, %v4911_v38  ;;  %v4913_v61 = vpop.eup %4912  ;;  %v4646_v12 = vld [vmem:[%s7192_s6 + $0xc0] ss:$16 sps:$4 sm:$0xff]   ;;  %v4654_v38 = vld [vmem:[%s7192_s6 + $0xe4] ss:$16 sps:$4 sm:$0xff]  }
 0x75a   :  { %4922 = vtanh.f32 %v4350_v62  ;;  %v1742_v46 = vadd.f32 1.0, %v4913_v61  ;;  %v4915_v63 = vpop.eup %4914  ;;  %v4651_v62 = vld [vmem:[%s7192_s6 + $0xcc] ss:$16 sps:$4 sm:$0xff]   ;;  %v4655_v61 = vld [vmem:[%s7192_s6 + $0xe8] ss:$16 sps:$4 sm:$0xff]  }
 0x75b   :  { %4924 = vrcp.f32 %v1739_v0  ;;  %v4917_v57 = vpop.eup %4916  ;;  %v4657_v0 = vld [vmem:[%s7192_s6 + $0xec] ss:$16 sps:$4 sm:$0xff]  }
 0x75c   :  { %4926 = vrcp.f32 %v1741_v50  ;;  %v4919_v58 = vpop.eup %4918  ;;  %v1740_v17 = vadd.f32 1.0, %v4917_v57  ;;  %v4652_v50 = vld [vmem:[%s7192_s6 + $0xe0] ss:$16 sps:$4 sm:$0xff]  }
 0x75d   :  { %4928 = vrcp.f32 %v1742_v46  ;;  %v1743_v15 = vadd.f32 1.0, %v4919_v58  ;;  %v6347_v46 = vld [vmem:[%s7193_s7 + $0x4] ss:$16 sps:$4 sm:$0xff]   ;;  %v6409_v57 = vld [vmem:[%s7193_s7 + $0x20] ss:$16 sps:$4 sm:$0xff]  }
 0x75e   :  { %4930 = vrcp.f32 %v1740_v17  ;;  %v6414_v58 = vld [vmem:[%s7193_s7 + $0x28] ss:$16 sps:$4 sm:$0xff]   ;;  %v6449_v17 = vld [vmem:[%s7193_s7 + $0x6c] ss:$16 sps:$4 sm:$0xff]  }
 0x763   :  { %v4921_v11 = vpop.eup %4920 }
 0x764   :  { %v4923_v45 = vpop.eup %4922  ;;  %v1760_v56 = vmul.f32 %v4921_v11, %v4915_v63  ;;  %v6353_v63 = vld [vmem:[%s7193_s7] ss:$16 sps:$4 sm:$0xff]   ;;  %v6423_v11 = vld [vmem:[%s7193_s7 + $0x44] ss:$16 sps:$4 sm:$0xff]  }
 0x765   :  { %v4925_v10 = vpop.eup %4924 }
 0x766   :  { %v4927_v18 = vpop.eup %4926  ;;  %v1758_v26 = vmul.f32 %v4925_v10, %v6179_v24  ;;  %v6438_v10 = vld [vmem:[%s7193_s7 + $0x4c] ss:$16 sps:$4 sm:$0xff]  }
 0x767   :  { %v1761_v1 = vmul.f32 %v4927_v18, %v4923_v45  ;;  %v4929_v28 = vpop.eup %4928  ;;  %v6428_v45 = vld [vmem:[%s7193_s7 + $0x40] ss:$16 sps:$4 sm:$0xff]   ;;  %v6444_v18 = vld [vmem:[%s7193_s7 + $0x48] ss:$16 sps:$4 sm:$0xff]  }
 0x768   :  { %v6241_v22 = vadd.f32 %v1760_v56, %v1758_v26  ;;  %v1759_v20 = vmul.f32 %v4929_v28, %v6183_v27  ;;  %v4931_v16 = vpop.eup %4930  ;;  %v4613_v27 = vld [vmem:[%s7192_s6 + $0x8] ss:$16 sps:$4 sm:$0xff]   ;;  %v6433_v56 = vld [vmem:[%s7193_s7 + $0x64] ss:$16 sps:$4 sm:$0xff]   ;;  %v6455_v26 = vld [vmem:[%s7193_s7 + $0x60] ss:$16 sps:$4 sm:$0xff]  }
 0x769   :  { %v6468_v28 = vld [vmem:[%s7193_s7 + $0x68] ss:$16 sps:$4 sm:$0xff]  }
 0x76a   :  { %4932 = vtanh.f32 %v6241_v22  ;;  %v6245_v14 = vadd.f32 %v1761_v1, %v1759_v20  ;;  %v6462_v1 = vld [vmem:[%s7193_s7 + $0x84] ss:$16 sps:$4 sm:$0xff]   ;;  %v6480_v20 = vld [vmem:[%s7193_s7 + $0x80] ss:$16 sps:$4 sm:$0xff]  }
 0x76b   :  { %4934 = vrcp.f32 %v1743_v15  ;;  %v6474_v15 = vld [vmem:[%s7193_s7 + $0x8c] ss:$16 sps:$4 sm:$0xff]  }
 0x76c   :  { %4936 = vtanh.f32 %v6245_v14 }
 0x774   :  { %v4933_v31 = vpop.eup %4932 }
 0x775   :  { %v4935_v13 = vpop.eup %4934  ;;  %v1766_v24 = vmul.f32 %v4933_v31, %v4931_v16  ;;  %v6486_v16 = vld [vmem:[%s7193_s7 + $0xa4] ss:$16 sps:$4 sm:$0xff]   ;;  %v6492_v31 = vld [vmem:[%s7193_s7 + $0x88] ss:$16 sps:$4 sm:$0xff]  }
 0x776   :  { %v4937_v32 = vpop.eup %4936 }
 0x777   :  { %v1767_v33 = vmul.f32 %v4937_v32, %v4935_v13  ;;  %v6498_v13 = vld [vmem:[%s7193_s7 + $0xac] ss:$16 sps:$4 sm:$0xff]   ;;  %v6504_v32 = vld [vmem:[%s7193_s7 + $0xa0] ss:$16 sps:$4 sm:$0xff]  }
 0x779   :  { %v6254_v36 = vpack.c.bf16 %v1767_v33, %v1766_v24  ;;  %v6510_v24 = vld [vmem:[%s7193_s7 + $0xc4] ss:$16 sps:$4 sm:$0xff]   ;;  %v6516_v33 = vld [vmem:[%s7193_s7 + $0xa8] ss:$16 sps:$4 sm:$0xff]  }
 0x77b   :  { %1815 = vmatmul.mubr.bf16.vlgmr.msra.gmra.mrb[28].mxu0 %v6254_v36  ;;  %1858 = vmatmul.mubr.bf16.vlgmr.msra.gmra.mrb[36].mxu1 %v6254_v36 }
 0x77c   :  { %2192 = vmatpush1.bf16.msra.mxu0 %v4610_v34  ;;  %2305 = vmatpush1.bf16.msra.mxu1 %v4613_v27  ;;  %v6523_v34 = vld [vmem:[%s7193_s7 + $0xc0] ss:$16 sps:$4 sm:$0xff]   ;;  %v6528_v27 = vld [vmem:[%s7193_s7 + $0xcc] ss:$16 sps:$4 sm:$0xff]  }
 0x77d   :  { %2193 = vmatprep.subr.bf16.mxu0 %v4618_v39  ;;  %2306 = vmatprep.subr.bf16.mxu1 %v4621_v41  ;;  %v6540_v39 = vld [vmem:[%s7193_s7 + $0xc8] ss:$16 sps:$4 sm:$0xff]   ;;  %v6546_v41 = vld [vmem:[%s7193_s7 + $0xec] ss:$16 sps:$4 sm:$0xff]  }
 0x77e   :  { %2223 = vmatprep.mubr.bf16.mxu0 %v7215_v3  ;;  %2336 = vmatprep.mubr.bf16.mxu1 %v7215_v3 }
 0x780   :  { %2194 = vmatpush1.bf16.msra.mxu0 %v4616_v2  ;;  %2307 = vmatpush1.bf16.msra.mxu1 %v4619_v4  ;;  %v6552_v2 = vld [vmem:[%s7193_s7 + $0xe0] ss:$16 sps:$4 sm:$0xff]   ;;  %v6559_v4 = vld [vmem:[%s7193_s7 + $0xe8] ss:$16 sps:$4 sm:$0xff]  }
 0x781   :  { %2195 = vmatprep.subr.bf16.mxu0 %v4624_v21  ;;  %2308 = vmatprep.subr.bf16.mxu1 %v4627_v49  ;;  %v7218_v21 = vld [vmem:[#allocation4_spill] sm:$0xff] }
 0x782   :  { %v334_v49 = vadd.f32 %v7218_v21, %v5720_v6 }
 0x784   :  { %2196 = vmatpush1.bf16.msra.mxu0 %v4622_v51  ;;  %2309 = vmatpush1.bf16.msra.mxu1 %v4625_v59  ;;  %v7219_v51 = vld [vmem:[#allocation5_spill] sm:$0xff] }
 0x785   :  { %2197 = vmatprep.subr.bf16.mxu0 %v4630_v35  ;;  %2310 = vmatprep.subr.bf16.mxu1 %v4633_v52  ;;  %v336_v59 = vadd.f32 %v7219_v51, %v5724_v7 }
 0x788   :  { %2198 = vmatpush1.bf16.msra.mxu0 %v4628_v37  ;;  %2311 = vmatpush1.bf16.msra.mxu1 %v4631_v40  ;;  %v7220_v37 = vld [vmem:[#allocation6_spill] sm:$0xff] }
 0x789   :  { %2199 = vmatprep.subr.bf16.mxu0 %v4636_v53  ;;  %2312 = vmatprep.subr.bf16.mxu1 %v4639_v42  ;;  %v338_v40 = vadd.f32 %v7220_v37, %v5720_v6 }
 0x78c   :  { %2200 = vmatpush1.bf16.msra.mxu0 %v4634_v43  ;;  %2313 = vmatpush1.bf16.msra.mxu1 %v4637_v54  ;;  %v7221_v54 = vld [vmem:[#allocation7_spill] sm:$0xff] }
 0x78d   :  { %2201 = vmatprep.subr.bf16.mxu0 %v4642_v44  ;;  %2314 = vmatprep.subr.bf16.mxu1 %v4645_v55  ;;  %v340_v44 = vadd.f32 %v7221_v54, %v5724_v7 }
 0x790   :  { %2202 = vmatpush1.bf16.msra.mxu0 %v4640_v25  ;;  %2315 = vmatpush1.bf16.msra.mxu1 %v4643_v23 }
 0x791   :  { %2203 = vmatprep.subr.bf16.mxu0 %v4648_v47  ;;  %2316 = vmatprep.subr.bf16.mxu1 %v4651_v62 }
 0x794   :  { %2204 = vmatpush1.bf16.msra.mxu0 %v4646_v12  ;;  %2317 = vmatpush1.bf16.msra.mxu1 %v4649_v48 }
 0x795   :  { %2205 = vmatprep.subr.bf16.mxu0 %v4654_v38  ;;  %2318 = vmatprep.subr.bf16.mxu1 %v4657_v0 }
 0x798   :  { %2206 = vmatpush1.bf16.msra.mxu0 %v4652_v50  ;;  %2319 = vmatpush1.bf16.msra.mxu1 %v4655_v61 }
 0x799   :  { %2650 = vmatprep.subr.bf16.mxu0 %v6347_v46 }
 0x79b   :  { %2224 = vmatmul.mubr.bf16.vlgmr.msra.gmra.mrb[32].mxu0 %v5756_v29  ;;  %2337 = vmatmul.mubr.bf16.vlgmr.msra.gmra.mrb[40].mxu1 %v5756_v29  ;;  %v7217_v29 = vld [vmem:[#allocation9_spill] sm:$0xff] }
 0x79c   :  { %2233 = vmatprep.mubr.bf16.mxu0 %v7215_v3  ;;  %2346 = vmatprep.mubr.bf16.mxu1 %v7215_v3 }
 0x79d   :  { %2651 = vmatpush1.bf16.msra.mxu0 %v6353_v63 }
 0x7a3   :  { %2234 = vmatmul.mubr.bf16.gmra.mrb[36].mxu0 %v5810_v8  ;;  %2347 = vmatmul.mubr.bf16.gmra.mrb[44].mxu1 %v5810_v8  ;;  %v6387_v8 = vld [vmem:[%s7193_s7 + $0xc] ss:$16 sps:$4 sm:$0xff]  }
 0x7a4   :  { %2243 = vmatprep.mubr.bf16.mxu0 %v7215_v3  ;;  %2356 = vmatprep.mubr.bf16.mxu1 %v7215_v3 }
 0x7a5   :  { %2693 = vmatprep.subr.bf16.mxu1 %v6387_v8 }
 0x7ab   :  { %2244 = vmatmul.mubr.bf16.gmra.mrb[40].mxu0 %v5864_v60  ;;  %2357 = vmatmul.mubr.bf16.gmra.mrb[48].mxu1 %v5864_v60  ;;  %v6392_v60 = vld [vmem:[%s7193_s7 + $0x8] ss:$16 sps:$4 sm:$0xff]  }
 0x7ac   :  { %2253 = vmatprep.mubr.bf16.mxu0 %v7215_v3  ;;  %2366 = vmatprep.mubr.bf16.mxu1 %v7215_v3 }
 0x7ad   :  { %2694 = vmatpush1.bf16.msra.mxu1 %v6392_v60 }
 0x7b3   :  { %2254 = vmatmul.mubr.bf16.gmra.mrb[44].mxu0 %v5923_v30  ;;  %2367 = vmatmul.mubr.bf16.gmra.mrb[52].mxu1 %v5923_v30  ;;  %v6399_v30 = vld [vmem:[%s7193_s7 + $0x24] ss:$16 sps:$4 sm:$0xff]  }
 0x7b4   :  { %2263 = vmatprep.mubr.bf16.mxu0 %v7215_v3  ;;  %2376 = vmatprep.mubr.bf16.mxu1 %v7215_v3 }
 0x7b5   :  { %2652 = vmatprep.subr.bf16.mxu0 %v6399_v30 }
 0x7b6   :  { %2653 = vmatpush1.bf16.msra.mxu0 %v6409_v57 }
 0x7b7   :  { %2654 = vmatprep.subr.bf16.mxu0 %v6423_v11 }
 0x7ba   :  { %2655 = vmatpush1.bf16.msra.mxu0 %v6428_v45 }
 0x7bb   :  { %2264 = vmatmul.mubr.bf16.gmra.mrb[48].mxu0 %v7217_v29  ;;  %2377 = vmatmul.mubr.bf16.gmra.mrb[56].mxu1 %v7217_v29 }
 0x7bc   :  { %2273 = vmatprep.mubr.bf16.mxu0 %v7215_v3  ;;  %2386 = vmatprep.mubr.bf16.mxu1 %v7215_v3 }
 0x7bd   :  { %2656 = vmatprep.subr.bf16.mxu0 %v6433_v56 }
 0x7be   :  { %2657 = vmatpush1.bf16.msra.mxu0 %v6455_v26 }
 0x7bf   :  { %2658 = vmatprep.subr.bf16.mxu0 %v6462_v1 }
 0x7c2   :  { %2659 = vmatpush1.bf16.msra.mxu0 %v6480_v20 }
 0x7c3   :  { %2274 = vmatmul.mubr.bf16.gmra.mrb[52].mxu0 %v6186_v19  ;;  %2387 = vmatmul.mubr.bf16.gmra.mrb[60].mxu1 %v6186_v19  ;;  %v6404_v19 = vld [vmem:[%s7193_s7 + $0x2c] ss:$16 sps:$4 sm:$0xff]  }
 0x7c4   :  { %2283 = vmatprep.mubr.bf16.mxu0 %v7215_v3  ;;  %2396 = vmatprep.mubr.bf16.mxu1 %v7215_v3 }
 0x7c5   :  { %2695 = vmatprep.subr.bf16.mxu1 %v6404_v19  ;;  %2660 = vmatprep.subr.bf16.mxu0 %v6486_v16 }
 0x7c6   :  { %2696 = vmatpush1.bf16.msra.mxu1 %v6414_v58  ;;  %2661 = vmatpush1.bf16.msra.mxu0 %v6504_v32 }
 0x7c7   :  { %2697 = vmatprep.subr.bf16.mxu1 %v6438_v10  ;;  %2662 = vmatprep.subr.bf16.mxu0 %v6510_v24 }
 0x7ca   :  { %2698 = vmatpush1.bf16.msra.mxu1 %v6444_v18  ;;  %2663 = vmatpush1.bf16.msra.mxu0 %v6523_v34 }
 0x7cb   :  { %2284 = vmatmul.mubr.bf16.gmra.mrb[56].mxu0 %v6254_v36  ;;  %2397 = vmatmul.mubr.bf16.gmra.mrb[64].mxu1 %v6254_v36  ;;  %v6535_v36 = vld [vmem:[%s7193_s7 + $0xe4] ss:$16 sps:$4 sm:$0xff]  }
 0x7cc   :  { %2293 = vmatprep.mubr.bf16.mxu0 %v7215_v3  ;;  %2406 = vmatprep.mubr.bf16.mxu1 %v7215_v3 }
 0x7cd   :  { %2699 = vmatprep.subr.bf16.mxu1 %v6449_v17  ;;  %2664 = vmatprep.subr.bf16.mxu0 %v6535_v36 }
 0x7ce   :  { %2700 = vmatpush1.bf16.msra.mxu1 %v6468_v28  ;;  %2665 = vmatpush1.bf16.msra.mxu0 %v6552_v2 }
 0x7cf   :  { %2701 = vmatprep.subr.bf16.mxu1 %v6474_v15  ;;  %2801 = vmatprep.subr.bf16.mxu0 %v6347_v46 }
 0x7d2   :  { %2702 = vmatpush1.bf16.msra.mxu1 %v6492_v31 }
 0x7d3   :  { %2703 = vmatprep.subr.bf16.mxu1 %v6498_v13 }
 0x7d6   :  { %2704 = vmatpush1.bf16.msra.mxu1 %v6516_v33 }
 0x7d7   :  { %2705 = vmatprep.subr.bf16.mxu1 %v6528_v27 }
 0x7da   :  { %2706 = vmatpush1.bf16.msra.mxu1 %v6540_v39 }
 0x7db   :  { %2707 = vmatprep.subr.bf16.mxu1 %v6546_v41 }
 0x7de   :  { %2708 = vmatpush1.bf16.msra.mxu1 %v6559_v4 }
 0x7df   :  { %2844 = vmatprep.subr.bf16.mxu1 %v6387_v8 }
 0x84e   :  { %v1816_v35 = vpop.f32.mrb[28].mxu0  ;;  %v1859_v52 = vpop.f32.mrb[36].mxu1 }
 0x84f   :  { %v1868_v53 = vadd.f32 %v1816_v35, %v334_v49  ;;  %v1818_v42 = vpop.f32.mrb[29].mxu0  ;;  %v1861_v43 = vpop.f32.mrb[37].mxu1  ;;  %v4351_v6 = vadd.f32 %v1859_v52, %v5734_v5 }
 0x850   :  { %v1869_v55 = vadd.f32 %v1818_v42, %v336_v59  ;;  %v1820_v25 = vpop.f32.mrb[30].mxu0  ;;  %v1863_v23 = vpop.f32.mrb[38].mxu1  ;;  %v4352_v7 = vadd.f32 %v1861_v43, %v5738_v9 }
 0x851   :  { %v4115_v47 = vmul.f32 -1.442695, %v1868_v53  ;;  %v1872_v62 = vadd.f32 %v1820_v25, %v338_v40  ;;  %v1822_v12 = vpop.f32.mrb[31].mxu0  ;;  %v1865_v48 = vpop.f32.mrb[39].mxu1  ;;  %v4353_v29 = vadd.f32 %v1863_v23, %v5734_v5  ;;  %v4117_v21 = vmul.f32 -1.442695, %v4351_v6 }
 0x852   :  { %v4116_v38 = vmul.f32 -1.442695, %v1869_v55  ;;  %v1873_v0 = vadd.f32 %v1822_v12, %v340_v44  ;;  %v4354_v59 = vadd.f32 %v1865_v48, %v5738_v9 }
 0x853   :  { %4938 = vpow2.f32 %v4115_v47  ;;  %v4118_v50 = vmul.f32 -1.442695, %v1872_v62  ;;  %v4120_v49 = vmul.f32 -1.442695, %v4353_v29 }
 0x854   :  { %v4119_v61 = vmul.f32 -1.442695, %v1873_v0  ;;  %4940 = vpow2.f32 %v4116_v38 }
 0x855   :  { %4942 = vpow2.f32 %v4118_v50 }
 0x856   :  { %4944 = vpow2.f32 %v4119_v61 }
 0x857   :  { %4946 = vtanh.f32 %v4352_v7 }
 0x858   :  { %4948 = vpow2.f32 %v4117_v21 }
 0x859   :  { %4950 = vpow2.f32 %v4120_v49 }
 0x85d   :  { %v4939_v51 = vpop.eup %4938 }
 0x85e   :  { %v1894_v35 = vadd.f32 1.0, %v4939_v51  ;;  %v4941_v37 = vpop.eup %4940 }
 0x85f   :  { %v4943_v40 = vpop.eup %4942  ;;  %v1895_v53 = vadd.f32 1.0, %v4941_v37 }
 0x860   :  { %4952 = vrcp.f32 %v1894_v35  ;;  %v1897_v52 = vadd.f32 1.0, %v4943_v40  ;;  %v4945_v42 = vpop.eup %4944  ;;  %v4122_v35 = vld [vmem:[%s7189_s1 + $0x18] sm:$0xff]  ;;  %v2009_v40 = vld [vmem:[%s7196_s8] sm:$0xf] }
 0x861   :  { %4954 = vtanh.f32 %v4354_v59  ;;  %v1898_v5 = vadd.f32 1.0, %v4945_v42  ;;  %v4947_v43 = vpop.eup %4946  ;;  %v4121_v59 = vld [vmem:[%s7189_s1 + $0x10] sm:$0xff] }
 0x862   :  { %4956 = vrcp.f32 %v1895_v53  ;;  %v4949_v54 = vpop.eup %4948  ;;  %v2489_v37 = vpack.c.bf16 %v4122_v35, %v4121_v59  ;;  %v7222_v53 = vld [vmem:[#allocation8_spill] sm:$0xff] }
 0x863   :  { %4958 = vrcp.f32 %v1897_v52  ;;  %v4951_v44 = vpop.eup %4950  ;;  %v1896_v47 = vadd.f32 1.0, %v4949_v54  ;;  %v7223_v52 = vsub.s32 0, %v7222_v53 }
 0x864   :  { %4960 = vrcp.f32 %v1898_v5  ;;  %v1899_v50 = vadd.f32 1.0, %v4951_v44  ;;  %v7224_v5 = vsub.s32 1, %v7222_v53 }
 0x865   :  { %4962 = vrcp.f32 %v1896_v47  ;;  %v6639_v42 = vrot.slane %v2009_v40, %v7223_v52 }
 0x86a   :  { %v4953_v55 = vpop.eup %4952 }
 0x86b   :  { %v4955_v25 = vpop.eup %4954  ;;  %v1916_v9 = vmul.f32 %v4953_v55, %v4947_v43  ;;  %v6643_v43 = vrot.slane %v2009_v40, %v7224_v5 }
 0x86c   :  { %v4957_v23 = vpop.eup %4956 }
 0x86d   :  { %v4959_v62 = vpop.eup %4958  ;;  %v1914_v12 = vmul.f32 %v4957_v23, %v6241_v22 }
 0x86e   :  { %v1917_v48 = vmul.f32 %v4959_v62, %v4955_v25  ;;  %v4961_v38 = vpop.eup %4960 }
 0x86f   :  { %v1918_v0 = vadd.f32 %v1916_v9, %v1914_v12  ;;  %v1915_v61 = vmul.f32 %v4961_v38, %v6245_v14  ;;  %v4963_v22 = vpop.eup %4962 }
 0x871   :  { %4964 = vtanh.f32 %v1918_v0  ;;  %1929 = vst [vmem:[%s7194_s13] sm:$0xff] %v1918_v0  ;;  %v1919_v6 = vadd.f32 %v1917_v48, %v1915_v61 }
 0x872   :  { %4966 = vrcp.f32 %v1899_v50  ;;  %v7225_v50 = vsub.s32 2, %v7222_v53 }
 0x873   :  { %4968 = vtanh.f32 %v1919_v6  ;;  %1930 = vst [vmem:[%s7194_s13 + $0x8] sm:$0xff] %v1919_v6 }
 0x874   :  { %v6650_v61 = vrot.slane %v2009_v40, %v7225_v50 }
 0x87b   :  { %v4965_v29 = vpop.eup %4964 }
 0x87c   :  { %v1922_v7 = vmul.f32 %v4965_v29, %v4963_v22  ;;  %v4967_v21 = vpop.eup %4966 }
 0x87d   :  { %v4969_v49 = vpop.eup %4968 }
 0x87e   :  { %1927 = vst [vmem:[%s7195_s12] sm:$0xff] %v1922_v7  ;;  %v1923_v14 = vmul.f32 %v4969_v49, %v4967_v21  ;;  %v7226_v21 = vsub.s32 3, %v7222_v53 }
 0x880   :  { %v1924_v51 = vpack.c.bf16 %v1923_v14, %v1922_v7  ;;  %1928 = vst [vmem:[%s7195_s12 + $0x8] sm:$0xff] %v1923_v14  ;;  %v6655_v49 = vrot.slane %v2009_v40, %v7226_v21 }
 0x882   :  { %2294 = vmatmul.mubr.bf16.gmra.mrb[60].mxu0 %v1924_v51  ;;  %2407 = vmatmul.mubr.bf16.gmra.mrb[68].mxu1 %v1924_v51 }
 0x883   :  { %2682 = vmatprep.mubr.bf16.mxu0 %v7215_v3  ;;  %2725 = vmatprep.mubr.bf16.mxu1 %v7215_v3 }
 0x88a   :  { %2683 = vmatmul.mubr.bf16.vlgmr.msra.gmra.mrb[32].mxu0 %v2489_v37  ;;  %2726 = vmatmul.mubr.bf16.vlgmr.msra.gmra.mrb[40].mxu1 %v2489_v37 }
 0x88b   :  { %2802 = vmatpush1.bf16.msra.mxu0 %v6353_v63  ;;  %2845 = vmatpush1.bf16.msra.mxu1 %v6392_v60 }
 0x88c   :  { %2803 = vmatprep.subr.bf16.mxu0 %v6399_v30  ;;  %2846 = vmatprep.subr.bf16.mxu1 %v6404_v19 }
 0x88d   :  { %2833 = vmatprep.mubr.bf16.mxu0 %v7215_v3  ;;  %2876 = vmatprep.mubr.bf16.mxu1 %v7215_v3 }
 0x88f   :  { %2804 = vmatpush1.bf16.msra.mxu0 %v6409_v57  ;;  %2847 = vmatpush1.bf16.msra.mxu1 %v6414_v58 }
 0x890   :  { %2805 = vmatprep.subr.bf16.mxu0 %v6423_v11  ;;  %2848 = vmatprep.subr.bf16.mxu1 %v6438_v10 }
 0x893   :  { %2806 = vmatpush1.bf16.msra.mxu0 %v6428_v45  ;;  %2849 = vmatpush1.bf16.msra.mxu1 %v6444_v18 }
 0x894   :  { %2807 = vmatprep.subr.bf16.mxu0 %v6433_v56  ;;  %2850 = vmatprep.subr.bf16.mxu1 %v6449_v17 }
 0x897   :  { %2808 = vmatpush1.bf16.msra.mxu0 %v6455_v26  ;;  %2851 = vmatpush1.bf16.msra.mxu1 %v6468_v28 }
 0x898   :  { %2809 = vmatprep.subr.bf16.mxu0 %v6462_v1  ;;  %2852 = vmatprep.subr.bf16.mxu1 %v6474_v15 }
 0x89b   :  { %2810 = vmatpush1.bf16.msra.mxu0 %v6480_v20  ;;  %2853 = vmatpush1.bf16.msra.mxu1 %v6492_v31 }
 0x89c   :  { %2811 = vmatprep.subr.bf16.mxu0 %v6486_v16  ;;  %2854 = vmatprep.subr.bf16.mxu1 %v6498_v13 }
 0x89f   :  { %2812 = vmatpush1.bf16.msra.mxu0 %v6504_v32  ;;  %2855 = vmatpush1.bf16.msra.mxu1 %v6516_v33 }
 0x8a0   :  { %2813 = vmatprep.subr.bf16.mxu0 %v6510_v24  ;;  %2856 = vmatprep.subr.bf16.mxu1 %v6528_v27 }
 0x8a3   :  { %2814 = vmatpush1.bf16.msra.mxu0 %v6523_v34  ;;  %2857 = vmatpush1.bf16.msra.mxu1 %v6540_v39 }
 0x8a4   :  { %2815 = vmatprep.subr.bf16.mxu0 %v6535_v36  ;;  %2858 = vmatprep.subr.bf16.mxu1 %v6546_v41 }
 0x8a7   :  { %2816 = vmatpush1.bf16.msra.mxu0 %v6552_v2  ;;  %2859 = vmatpush1.bf16.msra.mxu1 %v6559_v4 }
 0x8a8   :  { %2952 = vmatprep.subr.bf16.mxu0 %v6347_v46  ;;  %2995 = vmatprep.subr.bf16.mxu1 %v6387_v8 }
 0x95d   :  { %v2684_v54 = vpop.f32.mrb[32].mxu0  ;;  %v2727_v44 = vpop.f32.mrb[40].mxu1 }
 0x95e   :  { %v4355_v55 = vadd.f32 %v2684_v54, %v6639_v42  ;;  %v2686_v25 = vpop.f32.mrb[33].mxu0  ;;  %v2729_v9 = vpop.f32.mrb[41].mxu1  ;;  %v4387_v14 = vadd.f32 %v2727_v44, %v6650_v61 }
 0x95f   :  { %v4356_v23 = vadd.f32 %v2686_v25, %v6643_v43  ;;  %v2688_v47 = vpop.f32.mrb[34].mxu0  ;;  %v2731_v62 = vpop.f32.mrb[42].mxu1  ;;  %v4388_v59 = vadd.f32 %v2729_v9, %v6655_v49 }
 0x960   :  { %v4189_v12 = vmul.f32 -1.442695, %v4355_v55  ;;  %v4357_v48 = vadd.f32 %v2688_v47, %v6639_v42  ;;  %v2690_v38 = vpop.f32.mrb[35].mxu0  ;;  %v2733_v0 = vpop.f32.mrb[43].mxu1  ;;  %v4389_v51 = vadd.f32 %v2731_v62, %v6650_v61  ;;  %v4191_v35 = vmul.f32 -1.442695, %v4387_v14 }
 0x961   :  { %v4190_v6 = vmul.f32 -1.442695, %v4356_v23  ;;  %v4358_v22 = vadd.f32 %v2690_v38, %v6643_v43  ;;  %v4390_v5 = vadd.f32 %v2733_v0, %v6655_v49 }
 0x962   :  { %4970 = vpow2.f32 %v4189_v12  ;;  %v4192_v29 = vmul.f32 -1.442695, %v4357_v48  ;;  %v4194_v37 = vmul.f32 -1.442695, %v4389_v51  ;;  %v4123_v48 = vld [vmem:[%s7191_s2 + $0x10] sm:$0xff] }
 0x963   :  { %v4193_v7 = vmul.f32 -1.442695, %v4358_v22  ;;  %4972 = vpow2.f32 %v4190_v6 }
 0x964   :  { %4974 = vpow2.f32 %v4192_v29 }
 0x965   :  { %4976 = vpow2.f32 %v4193_v7  ;;  %v4124_v7 = vld [vmem:[%s7191_s2 + $0x18] sm:$0xff] }
 0x966   :  { %4978 = vtanh.f32 %v4388_v59 }
 0x967   :  { %4980 = vpow2.f32 %v4191_v35 }
 0x968   :  { %4982 = vpow2.f32 %v4194_v37 }
 0x96c   :  { %v4971_v52 = vpop.eup %4970 }
 0x96d   :  { %v2762_v54 = vadd.f32 1.0, %v4971_v52  ;;  %v4973_v55 = vpop.eup %4972 }
 0x96e   :  { %v4975_v40 = vpop.eup %4974  ;;  %v2763_v53 = vadd.f32 1.0, %v4973_v55 }
 0x96f   :  { %4984 = vrcp.f32 %v2762_v54  ;;  %v2765_v44 = vadd.f32 1.0, %v4975_v40  ;;  %v4977_v25 = vpop.eup %4976 }
 0x970   :  { %4986 = vtanh.f32 %v4390_v5  ;;  %v2766_v23 = vadd.f32 1.0, %v4977_v25  ;;  %v4979_v9 = vpop.eup %4978 }
 0x971   :  { %4988 = vrcp.f32 %v2763_v53  ;;  %v4981_v47 = vpop.eup %4980 }
 0x972   :  { %4990 = vrcp.f32 %v2765_v44  ;;  %v4983_v62 = vpop.eup %4982  ;;  %v2764_v22 = vadd.f32 1.0, %v4981_v47 }
 0x973   :  { %4992 = vrcp.f32 %v2766_v23  ;;  %v2767_v59 = vadd.f32 1.0, %v4983_v62 }
 0x974   :  { %4994 = vrcp.f32 %v2764_v22 }
 0x979   :  { %v4985_v12 = vpop.eup %4984 }
 0x97a   :  { %v4987_v38 = vpop.eup %4986  ;;  %v2784_v0 = vmul.f32 %v4985_v12, %v4979_v9 }
 0x97b   :  { %v4989_v50 = vpop.eup %4988 }
 0x97c   :  { %v4991_v6 = vpop.eup %4990  ;;  %v2782_v29 = vmul.f32 %v4989_v50, %v4123_v48 }
 0x97d   :  { %v2785_v21 = vmul.f32 %v4991_v6, %v4987_v38  ;;  %v4993_v14 = vpop.eup %4992 }
 0x97e   :  { %v6667_v51 = vadd.f32 %v2784_v0, %v2782_v29  ;;  %v2783_v35 = vmul.f32 %v4993_v14, %v4124_v7  ;;  %v4995_v52 = vpop.eup %4994 }
 0x980   :  { %4996 = vtanh.f32 %v6667_v51  ;;  %v6670_v37 = vadd.f32 %v2785_v21, %v2783_v35 }
 0x981   :  { %4998 = vrcp.f32 %v2767_v59 }
 0x982   :  { %5000 = vtanh.f32 %v6670_v37 }
 0x98a   :  { %v4997_v5 = vpop.eup %4996 }
 0x98b   :  { %v4999_v54 = vpop.eup %4998  ;;  %v2790_v40 = vmul.f32 %v4997_v5, %v4995_v52 }
 0x98c   :  { %v5001_v55 = vpop.eup %5000 }
 0x98d   :  { %v2791_v53 = vmul.f32 %v5001_v55, %v4999_v54 }
 0x98f   :  { %v2800_v44 = vpack.c.bf16 %v2791_v53, %v2790_v40 }
 0x991   :  { %2834 = vmatmul.mubr.bf16.vlgmr.msra.gmra.mrb[36].mxu0 %v2800_v44  ;;  %2877 = vmatmul.mubr.bf16.vlgmr.msra.gmra.mrb[44].mxu1 %v2800_v44 }
 0x992   :  { %2953 = vmatpush1.bf16.msra.mxu0 %v6353_v63  ;;  %2996 = vmatpush1.bf16.msra.mxu1 %v6392_v60 }
 0x993   :  { %2954 = vmatprep.subr.bf16.mxu0 %v6399_v30  ;;  %2997 = vmatprep.subr.bf16.mxu1 %v6404_v19 }
 0x994   :  { %2984 = vmatprep.mubr.bf16.mxu0 %v7215_v3  ;;  %3027 = vmatprep.mubr.bf16.mxu1 %v7215_v3 }
 0x996   :  { %2955 = vmatpush1.bf16.msra.mxu0 %v6409_v57  ;;  %2998 = vmatpush1.bf16.msra.mxu1 %v6414_v58 }
 0x997   :  { %2956 = vmatprep.subr.bf16.mxu0 %v6423_v11  ;;  %2999 = vmatprep.subr.bf16.mxu1 %v6438_v10 }
 0x99a   :  { %2957 = vmatpush1.bf16.msra.mxu0 %v6428_v45  ;;  %3000 = vmatpush1.bf16.msra.mxu1 %v6444_v18 }
 0x99b   :  { %2958 = vmatprep.subr.bf16.mxu0 %v6433_v56  ;;  %3001 = vmatprep.subr.bf16.mxu1 %v6449_v17 }
 0x99e   :  { %2959 = vmatpush1.bf16.msra.mxu0 %v6455_v26  ;;  %3002 = vmatpush1.bf16.msra.mxu1 %v6468_v28 }
 0x99f   :  { %2960 = vmatprep.subr.bf16.mxu0 %v6462_v1  ;;  %3003 = vmatprep.subr.bf16.mxu1 %v6474_v15 }
 0x9a2   :  { %2961 = vmatpush1.bf16.msra.mxu0 %v6480_v20  ;;  %3004 = vmatpush1.bf16.msra.mxu1 %v6492_v31 }
 0x9a3   :  { %2962 = vmatprep.subr.bf16.mxu0 %v6486_v16  ;;  %3005 = vmatprep.subr.bf16.mxu1 %v6498_v13 }
 0x9a6   :  { %2963 = vmatpush1.bf16.msra.mxu0 %v6504_v32  ;;  %3006 = vmatpush1.bf16.msra.mxu1 %v6516_v33 }
 0x9a7   :  { %2964 = vmatprep.subr.bf16.mxu0 %v6510_v24  ;;  %3007 = vmatprep.subr.bf16.mxu1 %v6528_v27 }
 0x9aa   :  { %2965 = vmatpush1.bf16.msra.mxu0 %v6523_v34  ;;  %3008 = vmatpush1.bf16.msra.mxu1 %v6540_v39 }
 0x9ab   :  { %2966 = vmatprep.subr.bf16.mxu0 %v6535_v36  ;;  %3009 = vmatprep.subr.bf16.mxu1 %v6546_v41 }
 0x9ae   :  { %2967 = vmatpush1.bf16.msra.mxu0 %v6552_v2  ;;  %3010 = vmatpush1.bf16.msra.mxu1 %v6559_v4 }
 0x9af   :  { %3103 = vmatprep.subr.bf16.mxu0 %v6347_v46  ;;  %3146 = vmatprep.subr.bf16.mxu1 %v6387_v8 }
 0xa64   :  { %v2835_v25 = vpop.f32.mrb[36].mxu0  ;;  %v2878_v23 = vpop.f32.mrb[44].mxu1 }
 0xa65   :  { %v4359_v9 = vadd.f32 %v2835_v25, %v6639_v42  ;;  %v2837_v47 = vpop.f32.mrb[37].mxu0  ;;  %v2880_v62 = vpop.f32.mrb[45].mxu1  ;;  %v4391_v59 = vadd.f32 %v2878_v23, %v6650_v61 }
 0xa66   :  { %v4360_v12 = vadd.f32 %v2837_v47, %v6643_v43  ;;  %v2839_v48 = vpop.f32.mrb[38].mxu0  ;;  %v2882_v38 = vpop.f32.mrb[46].mxu1  ;;  %v4392_v52 = vadd.f32 %v2880_v62, %v6655_v49 }
 0xa67   :  { %v4195_v0 = vmul.f32 -1.442695, %v4359_v9  ;;  %v4361_v50 = vadd.f32 %v2839_v48, %v6639_v42  ;;  %v2841_v6 = vpop.f32.mrb[39].mxu0  ;;  %v2884_v22 = vpop.f32.mrb[47].mxu1  ;;  %v4393_v35 = vadd.f32 %v2882_v38, %v6650_v61  ;;  %v4197_v5 = vmul.f32 -1.442695, %v4391_v59 }
 0xa68   :  { %v4196_v29 = vmul.f32 -1.442695, %v4360_v12  ;;  %v4362_v7 = vadd.f32 %v2841_v6, %v6643_v43  ;;  %v4394_v40 = vadd.f32 %v2884_v22, %v6655_v49 }
 0xa69   :  { %5002 = vpow2.f32 %v4195_v0  ;;  %v4198_v21 = vmul.f32 -1.442695, %v4361_v50  ;;  %v4200_v54 = vmul.f32 -1.442695, %v4393_v35 }
 0xa6a   :  { %v4199_v14 = vmul.f32 -1.442695, %v4362_v7  ;;  %5004 = vpow2.f32 %v4196_v29 }
 0xa6b   :  { %5006 = vpow2.f32 %v4198_v21 }
 0xa6c   :  { %5008 = vpow2.f32 %v4199_v14 }
 0xa6d   :  { %5010 = vtanh.f32 %v4392_v52 }
 0xa6e   :  { %5012 = vpow2.f32 %v4197_v5 }
 0xa6f   :  { %5014 = vpow2.f32 %v4200_v54 }
 0xa73   :  { %v5003_v55 = vpop.eup %5002 }
 0xa74   :  { %v2913_v53 = vadd.f32 1.0, %v5003_v55  ;;  %v5005_v44 = vpop.eup %5004 }
 0xa75   :  { %v5007_v25 = vpop.eup %5006  ;;  %v2914_v9 = vadd.f32 1.0, %v5005_v44 }
 0xa76   :  { %5016 = vrcp.f32 %v2913_v53  ;;  %v2916_v23 = vadd.f32 1.0, %v5007_v25  ;;  %v5009_v47 = vpop.eup %5008 }
 0xa77   :  { %5018 = vtanh.f32 %v4394_v40  ;;  %v2917_v12 = vadd.f32 1.0, %v5009_v47  ;;  %v5011_v62 = vpop.eup %5010 }
 0xa78   :  { %5020 = vrcp.f32 %v2914_v9  ;;  %v5013_v48 = vpop.eup %5012 }
 0xa79   :  { %5022 = vrcp.f32 %v2916_v23  ;;  %v5015_v38 = vpop.eup %5014  ;;  %v2915_v7 = vadd.f32 1.0, %v5013_v48 }
 0xa7a   :  { %5024 = vrcp.f32 %v2917_v12  ;;  %v2918_v52 = vadd.f32 1.0, %v5015_v38 }
 0xa7b   :  { %5026 = vrcp.f32 %v2915_v7 }
 0xa80   :  { %v5017_v0 = vpop.eup %5016 }
 0xa81   :  { %v5019_v50 = vpop.eup %5018  ;;  %v2935_v6 = vmul.f32 %v5017_v0, %v5011_v62 }
 0xa82   :  { %v5021_v22 = vpop.eup %5020 }
 0xa83   :  { %v5023_v29 = vpop.eup %5022  ;;  %v2933_v21 = vmul.f32 %v5021_v22, %v6667_v51 }
 0xa84   :  { %v2936_v14 = vmul.f32 %v5023_v29, %v5019_v50  ;;  %v5025_v59 = vpop.eup %5024 }
 0xa85   :  { %v6716_v35 = vadd.f32 %v2935_v6, %v2933_v21  ;;  %v2934_v5 = vmul.f32 %v5025_v59, %v6670_v37  ;;  %v5027_v55 = vpop.eup %5026 }
 0xa87   :  { %5028 = vtanh.f32 %v6716_v35  ;;  %v6720_v54 = vadd.f32 %v2936_v14, %v2934_v5 }
 0xa88   :  { %5030 = vrcp.f32 %v2918_v52 }
 0xa89   :  { %5032 = vtanh.f32 %v6720_v54 }
 0xa91   :  { %v5029_v40 = vpop.eup %5028 }
 0xa92   :  { %v5031_v53 = vpop.eup %5030  ;;  %v2941_v51 = vmul.f32 %v5029_v40, %v5027_v55 }
 0xa93   :  { %v5033_v44 = vpop.eup %5032 }
 0xa94   :  { %v2942_v25 = vmul.f32 %v5033_v44, %v5031_v53 }
 0xa96   :  { %v2951_v9 = vpack.c.bf16 %v2942_v25, %v2941_v51 }
 0xa98   :  { %2985 = vmatmul.mubr.bf16.vlgmr.msra.gmra.mrb[40].mxu0 %v2951_v9  ;;  %3028 = vmatmul.mubr.bf16.vlgmr.msra.gmra.mrb[48].mxu1 %v2951_v9 }
 0xa99   :  { %3104 = vmatpush1.bf16.msra.mxu0 %v6353_v63  ;;  %3147 = vmatpush1.bf16.msra.mxu1 %v6392_v60 }
 0xa9a   :  { %3105 = vmatprep.subr.bf16.mxu0 %v6399_v30  ;;  %3148 = vmatprep.subr.bf16.mxu1 %v6404_v19 }
 0xa9b   :  { %3135 = vmatprep.mubr.bf16.mxu0 %v7215_v3  ;;  %3178 = vmatprep.mubr.bf16.mxu1 %v7215_v3 }
 0xa9d   :  { %3106 = vmatpush1.bf16.msra.mxu0 %v6409_v57  ;;  %3149 = vmatpush1.bf16.msra.mxu1 %v6414_v58 }
 0xa9e   :  { %3107 = vmatprep.subr.bf16.mxu0 %v6423_v11  ;;  %3150 = vmatprep.subr.bf16.mxu1 %v6438_v10 }
 0xaa1   :  { %3108 = vmatpush1.bf16.msra.mxu0 %v6428_v45  ;;  %3151 = vmatpush1.bf16.msra.mxu1 %v6444_v18 }
 0xaa2   :  { %3109 = vmatprep.subr.bf16.mxu0 %v6433_v56  ;;  %3152 = vmatprep.subr.bf16.mxu1 %v6449_v17 }
 0xaa5   :  { %3110 = vmatpush1.bf16.msra.mxu0 %v6455_v26  ;;  %3153 = vmatpush1.bf16.msra.mxu1 %v6468_v28 }
 0xaa6   :  { %3111 = vmatprep.subr.bf16.mxu0 %v6462_v1  ;;  %3154 = vmatprep.subr.bf16.mxu1 %v6474_v15 }
 0xaa9   :  { %3112 = vmatpush1.bf16.msra.mxu0 %v6480_v20  ;;  %3155 = vmatpush1.bf16.msra.mxu1 %v6492_v31 }
 0xaaa   :  { %3113 = vmatprep.subr.bf16.mxu0 %v6486_v16  ;;  %3156 = vmatprep.subr.bf16.mxu1 %v6498_v13 }
 0xaad   :  { %3114 = vmatpush1.bf16.msra.mxu0 %v6504_v32  ;;  %3157 = vmatpush1.bf16.msra.mxu1 %v6516_v33 }
 0xaae   :  { %3115 = vmatprep.subr.bf16.mxu0 %v6510_v24  ;;  %3158 = vmatprep.subr.bf16.mxu1 %v6528_v27 }
 0xab1   :  { %3116 = vmatpush1.bf16.msra.mxu0 %v6523_v34  ;;  %3159 = vmatpush1.bf16.msra.mxu1 %v6540_v39 }
 0xab2   :  { %3117 = vmatprep.subr.bf16.mxu0 %v6535_v36  ;;  %3160 = vmatprep.subr.bf16.mxu1 %v6546_v41 }
 0xab5   :  { %3118 = vmatpush1.bf16.msra.mxu0 %v6552_v2  ;;  %3161 = vmatpush1.bf16.msra.mxu1 %v6559_v4 }
 0xab6   :  { %3254 = vmatprep.subr.bf16.mxu0 %v6347_v46  ;;  %3297 = vmatprep.subr.bf16.mxu1 %v6387_v8 }
 0xb6b   :  { %v2986_v37 = vpop.f32.mrb[40].mxu0  ;;  %v3029_v23 = vpop.f32.mrb[48].mxu1 }
 0xb6c   :  { %v4363_v47 = vadd.f32 %v2986_v37, %v6639_v42  ;;  %v2988_v12 = vpop.f32.mrb[41].mxu0  ;;  %v3031_v62 = vpop.f32.mrb[49].mxu1  ;;  %v4395_v59 = vadd.f32 %v3029_v23, %v6650_v61 }
 0xb6d   :  { %v4364_v48 = vadd.f32 %v2988_v12, %v6643_v43  ;;  %v2990_v38 = vpop.f32.mrb[42].mxu0  ;;  %v3033_v0 = vpop.f32.mrb[50].mxu1  ;;  %v4396_v5 = vadd.f32 %v3031_v62, %v6655_v49 }
 0xb6e   :  { %v4201_v50 = vmul.f32 -1.442695, %v4363_v47  ;;  %v4365_v6 = vadd.f32 %v2990_v38, %v6639_v42  ;;  %v2992_v22 = vpop.f32.mrb[43].mxu0  ;;  %v3035_v29 = vpop.f32.mrb[51].mxu1  ;;  %v4397_v52 = vadd.f32 %v3033_v0, %v6650_v61  ;;  %v4203_v55 = vmul.f32 -1.442695, %v4395_v59 }
 0xb6f   :  { %v4202_v7 = vmul.f32 -1.442695, %v4364_v48  ;;  %v4366_v46 = vadd.f32 %v2992_v22, %v6643_v43  ;;  %v4398_v44 = vadd.f32 %v3035_v29, %v6655_v49 }
 0xb70   :  { %5034 = vpow2.f32 %v4201_v50  ;;  %v4204_v21 = vmul.f32 -1.442695, %v4365_v6  ;;  %v4206_v40 = vmul.f32 -1.442695, %v4397_v52 }
 0xb71   :  { %v4205_v14 = vmul.f32 -1.442695, %v4366_v46  ;;  %5036 = vpow2.f32 %v4202_v7 }
 0xb72   :  { %5038 = vpow2.f32 %v4204_v21 }
 0xb73   :  { %5040 = vpow2.f32 %v4205_v14 }
 0xb74   :  { %5042 = vtanh.f32 %v4396_v5 }
 0xb75   :  { %5044 = vpow2.f32 %v4203_v55 }
 0xb76   :  { %5046 = vpow2.f32 %v4206_v40 }
 0xb7a   :  { %v5035_v53 = vpop.eup %5034 }
 0xb7b   :  { %v3064_v51 = vadd.f32 1.0, %v5035_v53  ;;  %v5037_v25 = vpop.eup %5036 }
 0xb7c   :  { %v5039_v9 = vpop.eup %5038  ;;  %v3065_v37 = vadd.f32 1.0, %v5037_v25 }
 0xb7d   :  { %5048 = vrcp.f32 %v3064_v51  ;;  %v3067_v23 = vadd.f32 1.0, %v5039_v9  ;;  %v5041_v47 = vpop.eup %5040 }
 0xb7e   :  { %5050 = vtanh.f32 %v4398_v44  ;;  %v3068_v12 = vadd.f32 1.0, %v5041_v47  ;;  %v5043_v62 = vpop.eup %5042 }
 0xb7f   :  { %5052 = vrcp.f32 %v3065_v37  ;;  %v5045_v48 = vpop.eup %5044 }
 0xb80   :  { %5054 = vrcp.f32 %v3067_v23  ;;  %v5047_v38 = vpop.eup %5046  ;;  %v3066_v7 = vadd.f32 1.0, %v5045_v48 }
 0xb81   :  { %5056 = vrcp.f32 %v3068_v12  ;;  %v3069_v52 = vadd.f32 1.0, %v5047_v38 }
 0xb82   :  { %5058 = vrcp.f32 %v3066_v7 }
 0xb87   :  { %v5049_v0 = vpop.eup %5048 }
 0xb88   :  { %v5051_v50 = vpop.eup %5050  ;;  %v3086_v6 = vmul.f32 %v5049_v0, %v5043_v62 }
 0xb89   :  { %v5053_v22 = vpop.eup %5052 }
 0xb8a   :  { %v5055_v29 = vpop.eup %5054  ;;  %v3084_v46 = vmul.f32 %v5053_v22, %v6716_v35 }
 0xb8b   :  { %v3087_v21 = vmul.f32 %v5055_v29, %v5051_v50  ;;  %v5057_v14 = vpop.eup %5056 }
 0xb8c   :  { %v6766_v59 = vadd.f32 %v3086_v6, %v3084_v46  ;;  %v3085_v5 = vmul.f32 %v5057_v14, %v6720_v54  ;;  %v5059_v40 = vpop.eup %5058 }
 0xb8e   :  { %5060 = vtanh.f32 %v6766_v59  ;;  %v6770_v55 = vadd.f32 %v3087_v21, %v3085_v5 }
 0xb8f   :  { %5062 = vrcp.f32 %v3069_v52 }
 0xb90   :  { %5064 = vtanh.f32 %v6770_v55 }
 0xb98   :  { %v5061_v53 = vpop.eup %5060 }
 0xb99   :  { %v5063_v44 = vpop.eup %5062  ;;  %v3092_v35 = vmul.f32 %v5061_v53, %v5059_v40 }
 0xb9a   :  { %v5065_v51 = vpop.eup %5064 }
 0xb9b   :  { %v3093_v25 = vmul.f32 %v5065_v51, %v5063_v44  ;;  %v6837_v51 = vld [vmem:[%s7193_s7 + $0x8] ss:$16 sps:$4 sm:$0xff]  }
 0xb9d   :  { %v3102_v9 = vpack.c.bf16 %v3093_v25, %v3092_v35  ;;  %v6843_v35 = vld [vmem:[%s7193_s7 + $0x24] ss:$16 sps:$4 sm:$0xff]   ;;  %v6849_v25 = vld [vmem:[%s7193_s7 + $0x2c] ss:$16 sps:$4 sm:$0xff]  }
 0xb9f   :  { %3136 = vmatmul.mubr.bf16.vlgmr.msra.gmra.mrb[44].mxu0 %v3102_v9  ;;  %3179 = vmatmul.mubr.bf16.vlgmr.msra.gmra.mrb[52].mxu1 %v3102_v9  ;;  %v6857_v9 = vld [vmem:[%s7193_s7 + $0x20] ss:$16 sps:$4 sm:$0xff]  }
 0xba0   :  { %3255 = vmatpush1.bf16.msra.mxu0 %v6353_v63  ;;  %3298 = vmatpush1.bf16.msra.mxu1 %v6392_v60  ;;  %v6808_v63 = vld [vmem:[%s7193_s7 + $0x4] ss:$16 sps:$4 sm:$0xff]  }
 0xba1   :  { %3256 = vmatprep.subr.bf16.mxu0 %v6399_v30  ;;  %3299 = vmatprep.subr.bf16.mxu1 %v6404_v19 }
 0xba2   :  { %3286 = vmatprep.mubr.bf16.mxu0 %v7215_v3  ;;  %3329 = vmatprep.mubr.bf16.mxu1 %v7215_v3 }
 0xba4   :  { %3257 = vmatpush1.bf16.msra.mxu0 %v6409_v57  ;;  %3300 = vmatpush1.bf16.msra.mxu1 %v6414_v58 }
 0xba5   :  { %3258 = vmatprep.subr.bf16.mxu0 %v6423_v11  ;;  %3301 = vmatprep.subr.bf16.mxu1 %v6438_v10 }
 0xba8   :  { %3259 = vmatpush1.bf16.msra.mxu0 %v6428_v45  ;;  %3302 = vmatpush1.bf16.msra.mxu1 %v6444_v18 }
 0xba9   :  { %3260 = vmatprep.subr.bf16.mxu0 %v6433_v56  ;;  %3303 = vmatprep.subr.bf16.mxu1 %v6449_v17 }
 0xbac   :  { %3261 = vmatpush1.bf16.msra.mxu0 %v6455_v26  ;;  %3304 = vmatpush1.bf16.msra.mxu1 %v6468_v28 }
 0xbad   :  { %3262 = vmatprep.subr.bf16.mxu0 %v6462_v1  ;;  %3305 = vmatprep.subr.bf16.mxu1 %v6474_v15 }
 0xbb0   :  { %3263 = vmatpush1.bf16.msra.mxu0 %v6480_v20  ;;  %3306 = vmatpush1.bf16.msra.mxu1 %v6492_v31 }
 0xbb1   :  { %3264 = vmatprep.subr.bf16.mxu0 %v6486_v16  ;;  %3307 = vmatprep.subr.bf16.mxu1 %v6498_v13 }
 0xbb4   :  { %3265 = vmatpush1.bf16.msra.mxu0 %v6504_v32  ;;  %3308 = vmatpush1.bf16.msra.mxu1 %v6516_v33 }
 0xbb5   :  { %3266 = vmatprep.subr.bf16.mxu0 %v6510_v24  ;;  %3309 = vmatprep.subr.bf16.mxu1 %v6528_v27 }
 0xbb8   :  { %3267 = vmatpush1.bf16.msra.mxu0 %v6523_v34  ;;  %3310 = vmatpush1.bf16.msra.mxu1 %v6540_v39 }
 0xbb9   :  { %3268 = vmatprep.subr.bf16.mxu0 %v6535_v36  ;;  %3311 = vmatprep.subr.bf16.mxu1 %v6546_v41 }
 0xbbc   :  { %3269 = vmatpush1.bf16.msra.mxu0 %v6552_v2  ;;  %3312 = vmatpush1.bf16.msra.mxu1 %v6559_v4 }
 0xbbd   :  { %3405 = vmatprep.subr.bf16.mxu0 %v6808_v63  ;;  %3448 = vmatprep.subr.bf16.mxu1 %v6387_v8 }
 0xc72   :  { %v3137_v60 = vpop.f32.mrb[44].mxu0  ;;  %v3180_v30 = vpop.f32.mrb[52].mxu1 }
 0xc73   :  { %v4367_v19 = vadd.f32 %v3137_v60, %v6639_v42  ;;  %v3139_v57 = vpop.f32.mrb[45].mxu0  ;;  %v3182_v58 = vpop.f32.mrb[53].mxu1  ;;  %v4399_v20 = vadd.f32 %v3180_v30, %v6650_v61  ;;  %v6863_v60 = vld [vmem:[%s7193_s7 + $0x28] ss:$16 sps:$4 sm:$0xff]   ;;  %v6869_v30 = vld [vmem:[%s7193_s7 + $0x44] ss:$16 sps:$4 sm:$0xff]  }
 0xc74   :  { %v4368_v11 = vadd.f32 %v3139_v57, %v6643_v43  ;;  %v3141_v45 = vpop.f32.mrb[46].mxu0  ;;  %v3184_v56 = vpop.f32.mrb[54].mxu1  ;;  %v4400_v31 = vadd.f32 %v3182_v58, %v6655_v49  ;;  %v6881_v57 = vld [vmem:[%s7193_s7 + $0x40] ss:$16 sps:$4 sm:$0xff]   ;;  %v6887_v58 = vld [vmem:[%s7193_s7 + $0x48] ss:$16 sps:$4 sm:$0xff]  }
 0xc75   :  { %v4207_v10 = vmul.f32 -1.442695, %v4367_v19  ;;  %v4369_v18 = vadd.f32 %v3141_v45, %v6639_v42  ;;  %v3143_v17 = vpop.f32.mrb[47].mxu0  ;;  %v3186_v26 = vpop.f32.mrb[55].mxu1  ;;  %v4401_v16 = vadd.f32 %v3184_v56, %v6650_v61  ;;  %v4209_v13 = vmul.f32 -1.442695, %v4399_v20 }
 0xc76   :  { %v4208_v1 = vmul.f32 -1.442695, %v4368_v11  ;;  %v4370_v28 = vadd.f32 %v3143_v17, %v6643_v43  ;;  %v4402_v33 = vadd.f32 %v3186_v26, %v6655_v49  ;;  %v6875_v19 = vld [vmem:[%s7193_s7 + $0x4c] ss:$16 sps:$4 sm:$0xff]   ;;  %v6893_v11 = vld [vmem:[%s7193_s7 + $0x64] ss:$16 sps:$4 sm:$0xff]  }
 0xc77   :  { %5066 = vpow2.f32 %v4207_v10  ;;  %v4210_v8 = vmul.f32 -1.442695, %v4369_v18  ;;  %v4212_v32 = vmul.f32 -1.442695, %v4401_v16  ;;  %v6899_v45 = vld [vmem:[%s7193_s7 + $0x6c] ss:$16 sps:$4 sm:$0xff]  }
 0xc78   :  { %v4211_v15 = vmul.f32 -1.442695, %v4370_v28  ;;  %5068 = vpow2.f32 %v4208_v1  ;;  %v6905_v56 = vld [vmem:[%s7193_s7 + $0x60] ss:$16 sps:$4 sm:$0xff]   ;;  %v6911_v10 = vld [vmem:[%s7193_s7 + $0x68] ss:$16 sps:$4 sm:$0xff]  }
 0xc79   :  { %5070 = vpow2.f32 %v4210_v8  ;;  %v6917_v18 = vld [vmem:[%s7193_s7 + $0x84] ss:$16 sps:$4 sm:$0xff]   ;;  %v6923_v17 = vld [vmem:[%s7193_s7 + $0x8c] ss:$16 sps:$4 sm:$0xff]   ;;  %v6929_v26 = vld [vmem:[%s7193_s7 + $0x80] ss:$16 sps:$4 sm:$0xff]  }
 0xc7a   :  { %5072 = vpow2.f32 %v4211_v15  ;;  %v6935_v1 = vld [vmem:[%s7193_s7 + $0x88] ss:$16 sps:$4 sm:$0xff]   ;;  %v6941_v28 = vld [vmem:[%s7193_s7 + $0xa4] ss:$16 sps:$4 sm:$0xff]   ;;  %v6947_v8 = vld [vmem:[%s7193_s7 + $0xac] ss:$16 sps:$4 sm:$0xff]  }
 0xc7b   :  { %5074 = vtanh.f32 %v4400_v31  ;;  %v6953_v15 = vld [vmem:[%s7193_s7 + $0xa0] ss:$16 sps:$4 sm:$0xff]   ;;  %v6959_v20 = vld [vmem:[%s7193_s7 + $0xa8] ss:$16 sps:$4 sm:$0xff]   ;;  %v6965_v16 = vld [vmem:[%s7193_s7 + $0xc4] ss:$16 sps:$4 sm:$0xff]  }
 0xc7c   :  { %5076 = vpow2.f32 %v4209_v13  ;;  %v6971_v31 = vld [vmem:[%s7193_s7 + $0xcc] ss:$16 sps:$4 sm:$0xff]   ;;  %v6977_v13 = vld [vmem:[%s7193_s7 + $0xc0] ss:$16 sps:$4 sm:$0xff]  }
 0xc7d   :  { %5078 = vpow2.f32 %v4212_v32  ;;  %v6983_v32 = vld [vmem:[%s7193_s7 + $0xc8] ss:$16 sps:$4 sm:$0xff]  }
 0xc81   :  { %v5067_v24 = vpop.eup %5066 }
 0xc82   :  { %v3215_v34 = vadd.f32 1.0, %v5067_v24  ;;  %v5069_v27 = vpop.eup %5068  ;;  %v6989_v24 = vld [vmem:[%s7193_s7 + $0xe4] ss:$16 sps:$4 sm:$0xff]  }
 0xc83   :  { %v5071_v36 = vpop.eup %5070  ;;  %v3216_v39 = vadd.f32 1.0, %v5069_v27  ;;  %v7007_v27 = vld [vmem:[%s7193_s7 + $0xe8] ss:$16 sps:$4 sm:$0xff]  }
 0xc84   :  { %5080 = vrcp.f32 %v3215_v34  ;;  %v3218_v41 = vadd.f32 1.0, %v5071_v36  ;;  %v5073_v2 = vpop.eup %5072  ;;  %v7001_v34 = vld [vmem:[%s7193_s7 + $0xe0] ss:$16 sps:$4 sm:$0xff]   ;;  %v7014_v36 = vld [vmem:[%s7193_s7 + $0xc] ss:$16 sps:$4 sm:$0xff]  }
 0xc85   :  { %5082 = vtanh.f32 %v4402_v33  ;;  %v3219_v4 = vadd.f32 1.0, %v5073_v2  ;;  %v5075_v54 = vpop.eup %5074  ;;  %v6995_v33 = vld [vmem:[%s7193_s7 + $0xec] ss:$16 sps:$4 sm:$0xff]  }
 0xc86   :  { %5084 = vrcp.f32 %v3216_v39  ;;  %v5077_v37 = vpop.eup %5076 }
 0xc87   :  { %5086 = vrcp.f32 %v3218_v41  ;;  %v5079_v23 = vpop.eup %5078  ;;  %v3217_v0 = vadd.f32 1.0, %v5077_v37 }
 0xc88   :  { %5088 = vrcp.f32 %v3219_v4  ;;  %v3220_v7 = vadd.f32 1.0, %v5079_v23 }
 0xc89   :  { %5090 = vrcp.f32 %v3217_v0 }
 0xc8e   :  { %v5081_v47 = vpop.eup %5080 }
 0xc8f   :  { %v5083_v12 = vpop.eup %5082  ;;  %v3237_v62 = vmul.f32 %v5081_v47, %v5075_v54 }
 0xc90   :  { %v5085_v48 = vpop.eup %5084 }
 0xc91   :  { %v5087_v38 = vpop.eup %5086  ;;  %v3235_v50 = vmul.f32 %v5085_v48, %v6766_v59 }
 0xc92   :  { %v3238_v6 = vmul.f32 %v5087_v38, %v5083_v12  ;;  %v5089_v22 = vpop.eup %5088 }
 0xc93   :  { %v6821_v29 = vadd.f32 %v3237_v62, %v3235_v50  ;;  %v3236_v46 = vmul.f32 %v5089_v22, %v6770_v55  ;;  %v5091_v14 = vpop.eup %5090  ;;  %v6831_v55 = vld [vmem:[%s7193_s7] ss:$16 sps:$4 sm:$0xff]  }
 0xc95   :  { %5092 = vtanh.f32 %v6821_v29  ;;  %v6825_v21 = vadd.f32 %v3238_v6, %v3236_v46 }
 0xc96   :  { %5094 = vrcp.f32 %v3220_v7 }
 0xc97   :  { %5096 = vtanh.f32 %v6825_v21 }
 0xc9f   :  { %v5093_v52 = vpop.eup %5092 }
 0xca0   :  { %v5095_v5 = vpop.eup %5094  ;;  %v3243_v59 = vmul.f32 %v5093_v52, %v5091_v14 }
 0xca1   :  { %v5097_v40 = vpop.eup %5096 }
 0xca2   :  { %v3244_v53 = vmul.f32 %v5097_v40, %v5095_v5 }
 0xca4   :  { %v3253_v44 = vpack.c.bf16 %v3244_v53, %v3243_v59 }
 0xca6   :  { %3287 = vmatmul.mubr.bf16.vlgmr.msra.gmra.mrb[48].mxu0 %v3253_v44  ;;  %3330 = vmatmul.mubr.bf16.vlgmr.msra.gmra.mrb[56].mxu1 %v3253_v44 }
 0xca7   :  { %3406 = vmatpush1.bf16.msra.mxu0 %v6831_v55  ;;  %3449 = vmatpush1.bf16.msra.mxu1 %v6837_v51 }
 0xca8   :  { %3407 = vmatprep.subr.bf16.mxu0 %v6843_v35  ;;  %3450 = vmatprep.subr.bf16.mxu1 %v6849_v25 }
 0xca9   :  { %3437 = vmatprep.mubr.bf16.mxu0 %v7215_v3  ;;  %3480 = vmatprep.mubr.bf16.mxu1 %v7215_v3 }
 0xcab   :  { %3408 = vmatpush1.bf16.msra.mxu0 %v6857_v9  ;;  %3451 = vmatpush1.bf16.msra.mxu1 %v6863_v60 }
 0xcac   :  { %3409 = vmatprep.subr.bf16.mxu0 %v6869_v30  ;;  %3452 = vmatprep.subr.bf16.mxu1 %v6875_v19 }
 0xcaf   :  { %3410 = vmatpush1.bf16.msra.mxu0 %v6881_v57  ;;  %3453 = vmatpush1.bf16.msra.mxu1 %v6887_v58 }
 0xcb0   :  { %3411 = vmatprep.subr.bf16.mxu0 %v6893_v11  ;;  %3454 = vmatprep.subr.bf16.mxu1 %v6899_v45 }
 0xcb3   :  { %3412 = vmatpush1.bf16.msra.mxu0 %v6905_v56  ;;  %3455 = vmatpush1.bf16.msra.mxu1 %v6911_v10 }
 0xcb4   :  { %3413 = vmatprep.subr.bf16.mxu0 %v6917_v18  ;;  %3456 = vmatprep.subr.bf16.mxu1 %v6923_v17 }
 0xcb7   :  { %3414 = vmatpush1.bf16.msra.mxu0 %v6929_v26  ;;  %3457 = vmatpush1.bf16.msra.mxu1 %v6935_v1 }
 0xcb8   :  { %3415 = vmatprep.subr.bf16.mxu0 %v6941_v28  ;;  %3458 = vmatprep.subr.bf16.mxu1 %v6947_v8 }
 0xcbb   :  { %3416 = vmatpush1.bf16.msra.mxu0 %v6953_v15  ;;  %3459 = vmatpush1.bf16.msra.mxu1 %v6959_v20 }
 0xcbc   :  { %3417 = vmatprep.subr.bf16.mxu0 %v6965_v16  ;;  %3460 = vmatprep.subr.bf16.mxu1 %v6971_v31 }
 0xcbf   :  { %3418 = vmatpush1.bf16.msra.mxu0 %v6977_v13  ;;  %3461 = vmatpush1.bf16.msra.mxu1 %v6983_v32 }
 0xcc0   :  { %3419 = vmatprep.subr.bf16.mxu0 %v6989_v24  ;;  %3462 = vmatprep.subr.bf16.mxu1 %v6995_v33 }
 0xcc3   :  { %3420 = vmatpush1.bf16.msra.mxu0 %v7001_v34  ;;  %3463 = vmatpush1.bf16.msra.mxu1 %v7007_v27 }
 0xcc4   :  { %3556 = vmatprep.subr.bf16.mxu0 %v6808_v63  ;;  %3599 = vmatprep.subr.bf16.mxu1 %v7014_v36 }
 0xd79   :  { %v3288_v39 = vpop.f32.mrb[48].mxu0  ;;  %v3331_v41 = vpop.f32.mrb[56].mxu1 }
 0xd7a   :  { %v4371_v2 = vadd.f32 %v3288_v39, %v6639_v42  ;;  %v3290_v4 = vpop.f32.mrb[49].mxu0  ;;  %v3333_v54 = vpop.f32.mrb[57].mxu1  ;;  %v4403_v7 = vadd.f32 %v3331_v41, %v6650_v61 }
 0xd7b   :  { %v4372_v37 = vadd.f32 %v3290_v4, %v6643_v43  ;;  %v3292_v23 = vpop.f32.mrb[50].mxu0  ;;  %v3335_v47 = vpop.f32.mrb[58].mxu1  ;;  %v4404_v14 = vadd.f32 %v3333_v54, %v6655_v49 }
 0xd7c   :  { %v4213_v12 = vmul.f32 -1.442695, %v4371_v2  ;;  %v4373_v62 = vadd.f32 %v3292_v23, %v6639_v42  ;;  %v3294_v48 = vpop.f32.mrb[51].mxu0  ;;  %v3337_v38 = vpop.f32.mrb[59].mxu1  ;;  %v4405_v46 = vadd.f32 %v3335_v47, %v6650_v61  ;;  %v4215_v52 = vmul.f32 -1.442695, %v4403_v7 }
 0xd7d   :  { %v4214_v0 = vmul.f32 -1.442695, %v4372_v37  ;;  %v4374_v50 = vadd.f32 %v3294_v48, %v6643_v43  ;;  %v4406_v59 = vadd.f32 %v3337_v38, %v6655_v49 }
 0xd7e   :  { %5098 = vpow2.f32 %v4213_v12  ;;  %v4216_v6 = vmul.f32 -1.442695, %v4373_v62  ;;  %v4218_v5 = vmul.f32 -1.442695, %v4405_v46 }
 0xd7f   :  { %v4217_v22 = vmul.f32 -1.442695, %v4374_v50  ;;  %5100 = vpow2.f32 %v4214_v0 }
 0xd80   :  { %5102 = vpow2.f32 %v4216_v6 }
 0xd81   :  { %5104 = vpow2.f32 %v4217_v22 }
 0xd82   :  { %5106 = vtanh.f32 %v4404_v14 }
 0xd83   :  { %5108 = vpow2.f32 %v4215_v52 }
 0xd84   :  { %5110 = vpow2.f32 %v4218_v5 }
 0xd88   :  { %v5099_v40 = vpop.eup %5098 }
 0xd89   :  { %v3366_v53 = vadd.f32 1.0, %v5099_v40  ;;  %v5101_v44 = vpop.eup %5100 }
 0xd8a   :  { %v5103_v39 = vpop.eup %5102  ;;  %v3367_v2 = vadd.f32 1.0, %v5101_v44 }
 0xd8b   :  { %5112 = vrcp.f32 %v3366_v53  ;;  %v3369_v41 = vadd.f32 1.0, %v5103_v39  ;;  %v5105_v4 = vpop.eup %5104 }
 0xd8c   :  { %5114 = vtanh.f32 %v4406_v59  ;;  %v3370_v37 = vadd.f32 1.0, %v5105_v4  ;;  %v5107_v54 = vpop.eup %5106 }
 0xd8d   :  { %5116 = vrcp.f32 %v3367_v2  ;;  %v5109_v23 = vpop.eup %5108 }
 0xd8e   :  { %5118 = vrcp.f32 %v3369_v41  ;;  %v5111_v47 = vpop.eup %5110  ;;  %v3368_v50 = vadd.f32 1.0, %v5109_v23 }
 0xd8f   :  { %5120 = vrcp.f32 %v3370_v37  ;;  %v3371_v14 = vadd.f32 1.0, %v5111_v47 }
 0xd90   :  { %5122 = vrcp.f32 %v3368_v50 }
 0xd95   :  { %v5113_v12 = vpop.eup %5112 }
 0xd96   :  { %v5115_v62 = vpop.eup %5114  ;;  %v3388_v48 = vmul.f32 %v5113_v12, %v5107_v54 }
 0xd97   :  { %v5117_v38 = vpop.eup %5116 }
 0xd98   :  { %v5119_v0 = vpop.eup %5118  ;;  %v3386_v6 = vmul.f32 %v5117_v38, %v6821_v29 }
 0xd99   :  { %v3389_v22 = vmul.f32 %v5119_v0, %v5115_v62  ;;  %v5121_v7 = vpop.eup %5120 }
 0xd9a   :  { %v7026_v46 = vadd.f32 %v3388_v48, %v3386_v6  ;;  %v3387_v52 = vmul.f32 %v5121_v7, %v6825_v21  ;;  %v5123_v40 = vpop.eup %5122 }
 0xd9c   :  { %5124 = vtanh.f32 %v7026_v46  ;;  %v7030_v5 = vadd.f32 %v3389_v22, %v3387_v52 }
 0xd9d   :  { %5126 = vrcp.f32 %v3371_v14 }
 0xd9e   :  { %5128 = vtanh.f32 %v7030_v5 }
 0xda6   :  { %v5125_v59 = vpop.eup %5124 }
 0xda7   :  { %v5127_v53 = vpop.eup %5126  ;;  %v3394_v29 = vmul.f32 %v5125_v59, %v5123_v40 }
 0xda8   :  { %v5129_v44 = vpop.eup %5128 }
 0xda9   :  { %v3395_v39 = vmul.f32 %v5129_v44, %v5127_v53 }
 0xdab   :  { %v3404_v2 = vpack.c.bf16 %v3395_v39, %v3394_v29 }
 0xdad   :  { %3438 = vmatmul.mubr.bf16.vlgmr.msra.gmra.mrb[52].mxu0 %v3404_v2  ;;  %3481 = vmatmul.mubr.bf16.vlgmr.msra.gmra.mrb[60].mxu1 %v3404_v2 }
 0xdae   :  { %3557 = vmatpush1.bf16.msra.mxu0 %v6831_v55  ;;  %3600 = vmatpush1.bf16.msra.mxu1 %v6837_v51 }
 0xdaf   :  { %3558 = vmatprep.subr.bf16.mxu0 %v6843_v35  ;;  %3601 = vmatprep.subr.bf16.mxu1 %v6849_v25 }
 0xdb0   :  { %3588 = vmatprep.mubr.bf16.mxu0 %v7215_v3  ;;  %3631 = vmatprep.mubr.bf16.mxu1 %v7215_v3 }
 0xdb2   :  { %3559 = vmatpush1.bf16.msra.mxu0 %v6857_v9  ;;  %3602 = vmatpush1.bf16.msra.mxu1 %v6863_v60 }
 0xdb3   :  { %3560 = vmatprep.subr.bf16.mxu0 %v6869_v30  ;;  %3603 = vmatprep.subr.bf16.mxu1 %v6875_v19 }
 0xdb6   :  { %3561 = vmatpush1.bf16.msra.mxu0 %v6881_v57  ;;  %3604 = vmatpush1.bf16.msra.mxu1 %v6887_v58 }
 0xdb7   :  { %3562 = vmatprep.subr.bf16.mxu0 %v6893_v11  ;;  %3605 = vmatprep.subr.bf16.mxu1 %v6899_v45 }
 0xdba   :  { %3563 = vmatpush1.bf16.msra.mxu0 %v6905_v56  ;;  %3606 = vmatpush1.bf16.msra.mxu1 %v6911_v10 }
 0xdbb   :  { %3564 = vmatprep.subr.bf16.mxu0 %v6917_v18  ;;  %3607 = vmatprep.subr.bf16.mxu1 %v6923_v17 }
 0xdbe   :  { %3565 = vmatpush1.bf16.msra.mxu0 %v6929_v26  ;;  %3608 = vmatpush1.bf16.msra.mxu1 %v6935_v1 }
 0xdbf   :  { %3566 = vmatprep.subr.bf16.mxu0 %v6941_v28  ;;  %3609 = vmatprep.subr.bf16.mxu1 %v6947_v8 }
 0xdc2   :  { %3567 = vmatpush1.bf16.msra.mxu0 %v6953_v15  ;;  %3610 = vmatpush1.bf16.msra.mxu1 %v6959_v20 }
 0xdc3   :  { %3568 = vmatprep.subr.bf16.mxu0 %v6965_v16  ;;  %3611 = vmatprep.subr.bf16.mxu1 %v6971_v31 }
 0xdc6   :  { %3569 = vmatpush1.bf16.msra.mxu0 %v6977_v13  ;;  %3612 = vmatpush1.bf16.msra.mxu1 %v6983_v32 }
 0xdc7   :  { %3570 = vmatprep.subr.bf16.mxu0 %v6989_v24  ;;  %3613 = vmatprep.subr.bf16.mxu1 %v6995_v33 }
 0xdca   :  { %3571 = vmatpush1.bf16.msra.mxu0 %v7001_v34  ;;  %3614 = vmatpush1.bf16.msra.mxu1 %v7007_v27 }
 0xdcb   :  { %3707 = vmatprep.subr.bf16.mxu0 %v6808_v63  ;;  %3750 = vmatprep.subr.bf16.mxu1 %v7014_v36 }
 0xe80   :  { %v3439_v21 = vpop.f32.mrb[52].mxu0  ;;  %v3482_v41 = vpop.f32.mrb[60].mxu1 }
 0xe81   :  { %v4375_v4 = vadd.f32 %v3439_v21, %v6639_v42  ;;  %v3441_v37 = vpop.f32.mrb[53].mxu0  ;;  %v3484_v54 = vpop.f32.mrb[61].mxu1  ;;  %v4407_v22 = vadd.f32 %v3482_v41, %v6650_v61 }
 0xe82   :  { %v4376_v23 = vadd.f32 %v3441_v37, %v6643_v43  ;;  %v3443_v47 = vpop.f32.mrb[54].mxu0  ;;  %v3486_v12 = vpop.f32.mrb[62].mxu1  ;;  %v4408_v14 = vadd.f32 %v3484_v54, %v6655_v49 }
 0xe83   :  { %v4219_v62 = vmul.f32 -1.442695, %v4375_v4  ;;  %v4377_v48 = vadd.f32 %v3443_v47, %v6639_v42  ;;  %v3445_v38 = vpop.f32.mrb[55].mxu0  ;;  %v3488_v0 = vpop.f32.mrb[63].mxu1  ;;  %v4409_v7 = vadd.f32 %v3486_v12, %v6650_v61  ;;  %v4221_v52 = vmul.f32 -1.442695, %v4407_v22 }
 0xe84   :  { %v4220_v50 = vmul.f32 -1.442695, %v4376_v23  ;;  %v4378_v63 = vadd.f32 %v3445_v38, %v6643_v43  ;;  %v4410_v53 = vadd.f32 %v3488_v0, %v6655_v49 }
 0xe85   :  { %5130 = vpow2.f32 %v4219_v62  ;;  %v4222_v36 = vmul.f32 -1.442695, %v4377_v48  ;;  %v4224_v40 = vmul.f32 -1.442695, %v4409_v7 }
 0xe86   :  { %v4223_v6 = vmul.f32 -1.442695, %v4378_v63  ;;  %5132 = vpow2.f32 %v4220_v50 }
 0xe87   :  { %5134 = vpow2.f32 %v4222_v36 }
 0xe88   :  { %5136 = vpow2.f32 %v4223_v6 }
 0xe89   :  { %5138 = vtanh.f32 %v4408_v14 }
 0xe8a   :  { %5140 = vpow2.f32 %v4221_v52 }
 0xe8b   :  { %5142 = vpow2.f32 %v4224_v40 }
 0xe8f   :  { %v5131_v59 = vpop.eup %5130 }
 0xe90   :  { %v3517_v44 = vadd.f32 1.0, %v5131_v59  ;;  %v5133_v29 = vpop.eup %5132 }
 0xe91   :  { %v5135_v39 = vpop.eup %5134  ;;  %v3518_v2 = vadd.f32 1.0, %v5133_v29 }
 0xe92   :  { %5144 = vrcp.f32 %v3517_v44  ;;  %v3520_v21 = vadd.f32 1.0, %v5135_v39  ;;  %v5137_v41 = vpop.eup %5136 }
 0xe93   :  { %5146 = vtanh.f32 %v4410_v53  ;;  %v3521_v4 = vadd.f32 1.0, %v5137_v41  ;;  %v5139_v37 = vpop.eup %5138 }
 0xe94   :  { %5148 = vrcp.f32 %v3518_v2  ;;  %v5141_v54 = vpop.eup %5140 }
 0xe95   :  { %5150 = vrcp.f32 %v3520_v21  ;;  %v5143_v23 = vpop.eup %5142  ;;  %v3519_v0 = vadd.f32 1.0, %v5141_v54 }
 0xe96   :  { %5152 = vrcp.f32 %v3521_v4  ;;  %v3522_v22 = vadd.f32 1.0, %v5143_v23 }
 0xe97   :  { %5154 = vrcp.f32 %v3519_v0 }
 0xe9c   :  { %v5145_v47 = vpop.eup %5144 }
 0xe9d   :  { %v5147_v12 = vpop.eup %5146  ;;  %v3539_v62 = vmul.f32 %v5145_v47, %v5139_v37 }
 0xe9e   :  { %v5149_v48 = vpop.eup %5148 }
 0xe9f   :  { %v5151_v38 = vpop.eup %5150  ;;  %v3537_v50 = vmul.f32 %v5149_v48, %v7026_v46 }
 0xea0   :  { %v3540_v63 = vmul.f32 %v5151_v38, %v5147_v12  ;;  %v5153_v36 = vpop.eup %5152 }
 0xea1   :  { %v7076_v6 = vadd.f32 %v3539_v62, %v3537_v50  ;;  %v3538_v7 = vmul.f32 %v5153_v36, %v7030_v5  ;;  %v5155_v52 = vpop.eup %5154 }
 0xea3   :  { %5156 = vtanh.f32 %v7076_v6  ;;  %v7080_v14 = vadd.f32 %v3540_v63, %v3538_v7 }
 0xea4   :  { %5158 = vrcp.f32 %v3522_v22 }
 0xea5   :  { %5160 = vtanh.f32 %v7080_v14 }
 0xead   :  { %v5157_v40 = vpop.eup %5156 }
 0xeae   :  { %v5159_v59 = vpop.eup %5158  ;;  %v3545_v46 = vmul.f32 %v5157_v40, %v5155_v52  ;;  %v5299_v40 = vmov 0.0  }
 0xeaf   :  { %v5161_v53 = vpop.eup %5160 }
 0xeb0   :  { %v3546_v44 = vmul.f32 %v5161_v53, %v5159_v59  ;;  %v4707_v59 = vld [vmem:[%s7197_s9 + $0x8] sm:$0xff]   ;;  %v4708_v53 = vld [vmem:[%s7197_s9 + $0x10] sm:$0xff]  }
 0xeb2   :  { %v3555_v29 = vpack.c.bf16 %v3546_v44, %v3545_v46  ;;  %v4709_v46 = vld [vmem:[%s7197_s9 + $0x18] sm:$0xff]   ;;  %v4710_v44 = vld [vmem:[%s7197_s9 + $0x20] sm:$0xff]  }
 0xeb4   :  { %3589 = vmatmul.mubr.bf16.vlgmr.msra.gmra.mrb[56].mxu0 %v3555_v29  ;;  %3632 = vmatmul.mubr.bf16.vlgmr.msra.gmra.mrb[64].mxu1 %v3555_v29  ;;  %v4711_v29 = vld [vmem:[%s7197_s9 + $0x28] sm:$0xff]  }
 0xeb5   :  { %3708 = vmatpush1.bf16.msra.mxu0 %v6831_v55  ;;  %3751 = vmatpush1.bf16.msra.mxu1 %v6837_v51 }
 0xeb6   :  { %3709 = vmatprep.subr.bf16.mxu0 %v6843_v35  ;;  %3752 = vmatprep.subr.bf16.mxu1 %v6849_v25 }
 0xeb7   :  { %3739 = vmatprep.mubr.bf16.mxu0 %v7215_v3  ;;  %3782 = vmatprep.mubr.bf16.mxu1 %v7215_v3 }
 0xeb9   :  { %3710 = vmatpush1.bf16.msra.mxu0 %v6857_v9  ;;  %3753 = vmatpush1.bf16.msra.mxu1 %v6863_v60 }
 0xeba   :  { %3711 = vmatprep.subr.bf16.mxu0 %v6869_v30  ;;  %3754 = vmatprep.subr.bf16.mxu1 %v6875_v19 }
 0xebd   :  { %3712 = vmatpush1.bf16.msra.mxu0 %v6881_v57  ;;  %3755 = vmatpush1.bf16.msra.mxu1 %v6887_v58 }
 0xebe   :  { %3713 = vmatprep.subr.bf16.mxu0 %v6893_v11  ;;  %3756 = vmatprep.subr.bf16.mxu1 %v6899_v45 }
 0xec1   :  { %3714 = vmatpush1.bf16.msra.mxu0 %v6905_v56  ;;  %3757 = vmatpush1.bf16.msra.mxu1 %v6911_v10 }
 0xec2   :  { %3715 = vmatprep.subr.bf16.mxu0 %v6917_v18  ;;  %3758 = vmatprep.subr.bf16.mxu1 %v6923_v17 }
 0xec5   :  { %3716 = vmatpush1.bf16.msra.mxu0 %v6929_v26  ;;  %3759 = vmatpush1.bf16.msra.mxu1 %v6935_v1 }
 0xec6   :  { %3717 = vmatprep.subr.bf16.mxu0 %v6941_v28  ;;  %3760 = vmatprep.subr.bf16.mxu1 %v6947_v8 }
 0xec9   :  { %3718 = vmatpush1.bf16.msra.mxu0 %v6953_v15  ;;  %3761 = vmatpush1.bf16.msra.mxu1 %v6959_v20 }
 0xeca   :  { %3719 = vmatprep.subr.bf16.mxu0 %v6965_v16  ;;  %3762 = vmatprep.subr.bf16.mxu1 %v6971_v31 }
 0xecd   :  { %3720 = vmatpush1.bf16.msra.mxu0 %v6977_v13  ;;  %3763 = vmatpush1.bf16.msra.mxu1 %v6983_v32 }
 0xece   :  { %3721 = vmatprep.subr.bf16.mxu0 %v6989_v24  ;;  %3764 = vmatprep.subr.bf16.mxu1 %v6995_v33 }
 0xed1   :  { %3722 = vmatpush1.bf16.msra.mxu0 %v7001_v34  ;;  %3765 = vmatpush1.bf16.msra.mxu1 %v7007_v27 }
 0xed2   :  { %4259 = vmatprep.subr.bf16.mxu0 %v5299_v40 }
 0xf87   :  { %v3590_v3 = vpop.f32.mrb[56].mxu0  ;;  %v3633_v55 = vpop.f32.mrb[64].mxu1 }
 0xf88   :  { %v4379_v51 = vadd.f32 %v3590_v3, %v6639_v42  ;;  %v3592_v35 = vpop.f32.mrb[57].mxu0  ;;  %v3635_v25 = vpop.f32.mrb[65].mxu1  ;;  %v4411_v17 = vadd.f32 %v3633_v55, %v6650_v61  ;;  %v4712_v3 = vld [vmem:[%s7197_s9 + $0x30] sm:$0xff]   ;;  %v4713_v55 = vld [vmem:[%s7197_s9 + $0x38] sm:$0xff]  }
 0xf89   :  { %v4380_v9 = vadd.f32 %v3592_v35, %v6643_v43  ;;  %v3594_v60 = vpop.f32.mrb[58].mxu0  ;;  %v3637_v30 = vpop.f32.mrb[66].mxu1  ;;  %v4412_v1 = vadd.f32 %v3635_v25, %v6655_v49 }
 0xf8a   :  { %v4225_v19 = vmul.f32 -1.442695, %v4379_v51  ;;  %v4381_v57 = vadd.f32 %v3594_v60, %v6639_v42  ;;  %v3596_v58 = vpop.f32.mrb[59].mxu0  ;;  %v3639_v11 = vpop.f32.mrb[67].mxu1  ;;  %v4413_v26 = vadd.f32 %v3637_v30, %v6650_v61  ;;  %v4227_v28 = vmul.f32 -1.442695, %v4411_v17 }
 0xf8b   :  { %v4226_v45 = vmul.f32 -1.442695, %v4380_v9  ;;  %v4382_v56 = vadd.f32 %v3596_v58, %v6643_v43  ;;  %v4414_v20 = vadd.f32 %v3639_v11, %v6655_v49 }
 0xf8c   :  { %5162 = vpow2.f32 %v4225_v19  ;;  %v4228_v10 = vmul.f32 -1.442695, %v4381_v57  ;;  %v4230_v8 = vmul.f32 -1.442695, %v4413_v26 }
 0xf8d   :  { %v4229_v18 = vmul.f32 -1.442695, %v4382_v56  ;;  %5164 = vpow2.f32 %v4226_v45 }
 0xf8e   :  { %5166 = vpow2.f32 %v4228_v10 }
 0xf8f   :  { %5168 = vpow2.f32 %v4229_v18 }
 0xf90   :  { %5170 = vtanh.f32 %v4412_v1 }
 0xf91   :  { %5172 = vpow2.f32 %v4227_v28 }
 0xf92   :  { %5174 = vpow2.f32 %v4230_v8 }
 0xf96   :  { %v5163_v15 = vpop.eup %5162 }
 0xf97   :  { %v3668_v16 = vadd.f32 1.0, %v5163_v15  ;;  %v5165_v31 = vpop.eup %5164 }
 0xf98   :  { %v5167_v13 = vpop.eup %5166  ;;  %v3669_v32 = vadd.f32 1.0, %v5165_v31 }
 0xf99   :  { %5176 = vrcp.f32 %v3668_v16  ;;  %v3671_v24 = vadd.f32 1.0, %v5167_v13  ;;  %v5169_v33 = vpop.eup %5168 }
 0xf9a   :  { %5178 = vtanh.f32 %v4414_v20  ;;  %v3672_v34 = vadd.f32 1.0, %v5169_v33  ;;  %v5171_v27 = vpop.eup %5170 }
 0xf9b   :  { %5180 = vrcp.f32 %v3669_v32  ;;  %v5173_v5 = vpop.eup %5172 }
 0xf9c   :  { %5182 = vrcp.f32 %v3671_v24  ;;  %v5175_v39 = vpop.eup %5174  ;;  %v3670_v54 = vadd.f32 1.0, %v5173_v5 }
 0xf9d   :  { %5184 = vrcp.f32 %v3672_v34  ;;  %v3673_v48 = vadd.f32 1.0, %v5175_v39 }
 0xf9e   :  { %5186 = vrcp.f32 %v3670_v54 }
 0xfa3   :  { %v5177_v2 = vpop.eup %5176 }
 0xfa4   :  { %v5179_v21 = vpop.eup %5178  ;;  %v3690_v41 = vmul.f32 %v5177_v2, %v5171_v27 }
 0xfa5   :  { %v5181_v4 = vpop.eup %5180 }
 0xfa6   :  { %v5183_v37 = vpop.eup %5182  ;;  %v3688_v23 = vmul.f32 %v5181_v4, %v7076_v6 }
 0xfa7   :  { %v3691_v47 = vmul.f32 %v5183_v37, %v5179_v21  ;;  %v5185_v12 = vpop.eup %5184 }
 0xfa8   :  { %v7124_v62 = vadd.f32 %v3690_v41, %v3688_v23  ;;  %v3689_v38 = vmul.f32 %v5185_v12, %v7080_v14  ;;  %v5187_v50 = vpop.eup %5186  ;;  %v4706_v14 = vld [vmem:[%s7197_s9] sm:$0xff]  }
 0xfaa   :  { %5188 = vtanh.f32 %v7124_v62  ;;  %v7128_v0 = vadd.f32 %v3691_v47, %v3689_v38 }
 0xfab   :  { %5190 = vrcp.f32 %v3673_v48 }
 0xfac   :  { %5192 = vtanh.f32 %v7128_v0 }
 0xfb4   :  { %v5189_v63 = vpop.eup %5188 }
 0xfb5   :  { %v5191_v36 = vpop.eup %5190  ;;  %v3696_v6 = vmul.f32 %v5189_v63, %v5187_v50 }
 0xfb6   :  { %v5193_v22 = vpop.eup %5192 }
 0xfb7   :  { %v3697_v7 = vmul.f32 %v5193_v22, %v5191_v36 }
 0xfb9   :  { %v3706_v52 = vpack.c.bf16 %v3697_v7, %v3696_v6  ;;  %v4241_v7 = vld [vmem:[%s7198_s10] ss:$0 sm:$0xff] }
 0xfbb   :  { %3740 = vmatmul.mubr.bf16.vlgmr.msra.gmra.mrb[60].mxu0 %v3706_v52  ;;  %3783 = vmatmul.mubr.bf16.vlgmr.msra.gmra.mrb[68].mxu1 %v3706_v52 }
 0xfbc   :  { %4260 = vmatpush3.bf16.msra.mxu0 %v4706_v14  ;;  %4275 = vmatprep.mubr.msk.bf16.mxu0 %vm5300_vm1, %v5299_v40 }
 0xfbd   :  { %4261 = vmatprep.subr.bf16.mxu0 %v5299_v40 }
 0xfc0   :  { %4262 = vmatpush3.bf16.msra.mxu0 %v4707_v59 }
 0xfc1   :  { %4263 = vmatprep.subr.bf16.mxu0 %v5299_v40 }
 0xfc4   :  { %4264 = vmatpush3.bf16.msra.mxu0 %v4708_v53 }
 0xfc5   :  { %4265 = vmatprep.subr.bf16.mxu0 %v5299_v40 }
 0xfc8   :  { %4266 = vmatpush3.bf16.msra.mxu0 %v4709_v46 }
 0xfc9   :  { %4267 = vmatprep.subr.bf16.mxu0 %v5299_v40 }
 0xfcc   :  { %4268 = vmatpush3.bf16.msra.mxu0 %v4710_v44 }
 0xfcd   :  { %4269 = vmatprep.subr.bf16.mxu0 %v5299_v40 }
 0xfd0   :  { %4270 = vmatpush3.bf16.msra.mxu0 %v4711_v29 }
 0xfd1   :  { %4271 = vmatprep.subr.bf16.mxu0 %v5299_v40 }
 0xfd4   :  { %4272 = vmatpush3.bf16.msra.mxu0 %v4712_v3 }
 0xfd5   :  { %4273 = vmatprep.subr.bf16.mxu0 %v5299_v40 }
 0xfd8   :  { %4274 = vmatpush3.bf16.msra.mxu0 %v4713_v55 }
0x108e   :  { %v3741_v51 = vpop.f32.mrb[60].mxu0  ;;  %v3784_v35 = vpop.f32.mrb[68].mxu1 }
0x108f   :  { %v4383_v25 = vadd.f32 %v3741_v51, %v6639_v42  ;;  %v3743_v9 = vpop.f32.mrb[61].mxu0  ;;  %v3786_v60 = vpop.f32.mrb[69].mxu1  ;;  %v4415_v1 = vadd.f32 %v3784_v35, %v6650_v61 }
0x1090   :  { %v4384_v30 = vadd.f32 %v3743_v9, %v6643_v43  ;;  %v3745_v19 = vpop.f32.mrb[62].mxu0  ;;  %v3788_v57 = vpop.f32.mrb[70].mxu1  ;;  %v4416_v8 = vadd.f32 %v3786_v60, %v6655_v49 }
0x1091   :  { %v4231_v58 = vmul.f32 -1.442695, %v4383_v25  ;;  %v4385_v11 = vadd.f32 %v3745_v19, %v6639_v42  ;;  %v3747_v45 = vpop.f32.mrb[63].mxu0  ;;  %v3790_v56 = vpop.f32.mrb[71].mxu1  ;;  %v4417_v28 = vadd.f32 %v3788_v57, %v6650_v61  ;;  %v4233_v15 = vmul.f32 -1.442695, %v4415_v1 }
0x1092   :  { %v4232_v10 = vmul.f32 -1.442695, %v4384_v30  ;;  %v4386_v18 = vadd.f32 %v3747_v45, %v6643_v43  ;;  %v4418_v16 = vadd.f32 %v3790_v56, %v6655_v49 }
0x1093   :  { %5194 = vpow2.f32 %v4231_v58  ;;  %v4234_v17 = vmul.f32 -1.442695, %v4385_v11  ;;  %v4236_v20 = vmul.f32 -1.442695, %v4417_v28 }
0x1094   :  { %v4235_v26 = vmul.f32 -1.442695, %v4386_v18  ;;  %5196 = vpow2.f32 %v4232_v10 }
0x1095   :  { %5198 = vpow2.f32 %v4234_v17 }
0x1096   :  { %5200 = vpow2.f32 %v4235_v26 }
0x1097   :  { %5202 = vtanh.f32 %v4416_v8 }
0x1098   :  { %5204 = vpow2.f32 %v4233_v15 }
0x1099   :  { %5206 = vpow2.f32 %v4236_v20 }
0x109d   :  { %v5195_v42 = vpop.eup %5194 }
0x109e   :  { %v3819_v31 = vadd.f32 1.0, %v5195_v42  ;;  %v5197_v43 = vpop.eup %5196 }
0x109f   :  { %v5199_v13 = vpop.eup %5198  ;;  %v3820_v32 = vadd.f32 1.0, %v5197_v43 }
0x10a0   :  { %5208 = vrcp.f32 %v3819_v31  ;;  %v3822_v24 = vadd.f32 1.0, %v5199_v13  ;;  %v5201_v33 = vpop.eup %5200 }
0x10a1   :  { %5210 = vtanh.f32 %v4418_v16  ;;  %v3823_v61 = vadd.f32 1.0, %v5201_v33  ;;  %v5203_v34 = vpop.eup %5202 }
0x10a2   :  { %5212 = vrcp.f32 %v3820_v32  ;;  %v5205_v27 = vpop.eup %5204 }
0x10a3   :  { %5214 = vrcp.f32 %v3822_v24  ;;  %v5207_v5 = vpop.eup %5206  ;;  %v3821_v41 = vadd.f32 1.0, %v5205_v27 }
0x10a4   :  { %5216 = vrcp.f32 %v3823_v61  ;;  %v3824_v12 = vadd.f32 1.0, %v5207_v5 }
0x10a5   :  { %5218 = vrcp.f32 %v3821_v41 }
0x10aa   :  { %v5209_v39 = vpop.eup %5208 }
0x10ab   :  { %v5211_v2 = vpop.eup %5210  ;;  %v3841_v49 = vmul.f32 %v5209_v39, %v5203_v34 }
0x10ac   :  { %v5213_v21 = vpop.eup %5212 }
0x10ad   :  { %v5215_v4 = vpop.eup %5214  ;;  %v3839_v37 = vmul.f32 %v5213_v21, %v7124_v62 }
0x10ae   :  { %v3842_v54 = vmul.f32 %v5215_v4, %v5211_v2  ;;  %v5217_v23 = vpop.eup %5216 }
0x10af   :  { %v3843_v47 = vadd.f32 %v3841_v49, %v3839_v37  ;;  %v3840_v48 = vmul.f32 %v5217_v23, %v7128_v0  ;;  %v5219_v62 = vpop.eup %5218 }
0x10b1   :  { %5220 = vtanh.f32 %v3843_v47  ;;  %4239 = vst [vmem:[%s7194_s13 + $0x10] sm:$0xff] %v3843_v47  ;;  %v3844_v38 = vadd.f32 %v3842_v54, %v3840_v48 }
0x10b2   :  { %5222 = vrcp.f32 %v3824_v12 }
0x10b3   :  { %5224 = vtanh.f32 %v3844_v38  ;;  %4240 = vst [vmem:[%s7194_s13 + $0x18] sm:$0xff] %v3844_v38 }
0x10bb   :  { %v5221_v50 = vpop.eup %5220 }
0x10bc   :  { %v3847_v63 = vmul.f32 %v5221_v50, %v5219_v62  ;;  %v5223_v36 = vpop.eup %5222 }
0x10bd   :  { %v5225_v22 = vpop.eup %5224 }
0x10be   :  { %4237 = vst [vmem:[%s7195_s12 + $0x10] sm:$0xff] %v3847_v63  ;;  %v3848_v0 = vmul.f32 %v5225_v22, %v5223_v36 }
0x10c0   :  { %4238 = vst [vmem:[%s7195_s12 + $0x18] sm:$0xff] %v3848_v0  ;;  %v3855_v6 = vpack.c.bf16 %v3848_v0, %v3847_v63 }
0x10c2   :  { %4276 = vmatmul.mubr.bf16.vlgmr.msra.gmra.mrb[64].mxu0 %v3855_v6 }
0x1195   :  { %v3961_v52 = vpop.f32.mrb[64].mxu0 }
0x1196   :  { %v3962_v14 = vadd.f32 %v4241_v7, %v3961_v52  ;;  %v4277_v40 = vpop.f32.mrb[65].mxu0 }
0x1197   :  { %v3964_v59 = vpop.f32.mrb[66].mxu0 }
0x1198   :  { %3968 = vmax.xlane.f32.xlu0 %v3962_v14  ;;  %v4278_v53 = vpop.f32.mrb[67].mxu0  ;;  %v3965_v46 = vadd.f32 %v4241_v7, %v3964_v59 }
0x119c   :  { %3970 = vmax.xlane.f32.xlu0 %v3965_v46 }
0x1225   :  { %v3969_v44 = vpop.xlane.xlu0 %3968 }
0x1226   :  { %v3972_v29 = vsub.f32 %v3962_v14, %v3969_v44 }
0x1228   :  { %v3974_v3 = vmul.f32 1.442695, %v3972_v29 }
0x1229   :  { %v3971_v55 = vpop.xlane.xlu0 %3970 }
0x122a   :  { %v3973_v51 = vsub.f32 %v3965_v46, %v3971_v55  ;;  %5226 = vpow2.f32 %v3974_v3 }
0x122c   :  { %v3976_v35 = vmul.f32 1.442695, %v3973_v51 }
0x122e   :  { %5228 = vpow2.f32 %v3976_v35 }
0x1234   :  { %v5227_v25 = vpop.eup %5226 }
0x1235   :  { %3978 = vadd.xlane.f32.xlu1 %v5227_v25 }
0x1238   :  { %v5229_v9 = vpop.eup %5228 }
0x1239   :  { %3980 = vadd.xlane.f32.xlu1 %v5229_v9 }
0x12c2   :  { %v3979_v60 = vpop.xlane.xlu1 %3978 }
0x12c3   :  { %5230 = vlog2.f32 %v3979_v60 }
0x12c6   :  { %v3981_v30 = vpop.xlane.xlu1 %3980 }
0x12c7   :  { %5232 = vlog2.f32 %v3981_v30 }
0x12cd   :  { %v5231_v19 = vpop.eup %5230 }
0x12ce   :  { %v3983_v57 = vmul.f32 0.6931472, %v5231_v19 }
0x12d0   :  { %v3986_v58 = vsub.f32 %v3972_v29, %v3983_v57 }
0x12d1   :  { %v5233_v11 = vpop.eup %5232 }
0x12d2   :  { %3988 = vst [vmem:[%s7199_s11] sm:$0xff] %v3986_v58  ;;  %v3985_v45 = vmul.f32 0.6931472, %v5233_v11 }
0x12d4   :  { %v3987_v56 = vsub.f32 %v3973_v51, %v3985_v45 }
0x12d6   :  { %3989 = vst [vmem:[%s7199_s11 + $0x8] sm:$0xff] %v3987_v56 }

</bundles_post_ra>
